<compile_context>
chip_gen: v7x
topology: tpu7x:2x2x1
jax: 0.10.0
libtpu: 0.0.40
codegen_flags: <defaults>
</compile_context>

<pallas_src>
import jax
import jax.numpy as jnp
from jax.experimental import pallas as pl
from jax.experimental.pallas import tpu as pltpu

# ---------------- module configuration (small, consistent with GaGNet decoder usage) ----------
KH, KW = 2, 3              # kernel k
C = 16                     # c (output channels)
INTRA_CONNECT = "cat"      # 'cat' -> ConvTranspose2d(2c, c, ...); 'add' -> (c, c, ...)
CIN = 2 * C if INTRA_CONNECT == "cat" else C
STRIDE_H, STRIDE_W = 1, 2
OUT_PAD = (0, 0)
NORM_TYPE = "IN"           # InstanceNorm2d(affine=True), eps=1e-5, biased variance
# TODO(synk): norm_type='BN' (BatchNorm2d with batch/running statistics) branch not implemented;
#             this configuration uses 'IN' exactly as in the GaGNet decoder.
EPS = 1e-5

B = 2                      # batch
H = 16                     # time frames
W = 8                      # frequency bins entering this decoder stage

HOUT = (H - 1) * STRIDE_H + KH + OUT_PAD[0]       # 17
WOUT = (W - 1) * STRIDE_W + KW + OUT_PAD[1]       # 17
WE = (WOUT + 1) // 2                              # number of even output columns (9)
WO = WOUT // 2                                    # number of odd output columns  (8)
NTAPS = KH * KW


def _full_spec(shape):
    nd = len(shape)
    return pl.BlockSpec(shape, lambda *_, _nd=nd: (0,) * _nd)


def _deconv2d_unit_kernel(x_ref, w_ref, b_ref, g_ref, bt_ref, a_ref, oe_ref, oo_ref):
    """x_ref: (B*H*W, CIN). w_ref: (CIN, NTAPS*C). b/g/bt/a: (1, C).
    oe_ref: (B, HOUT, WE, C) even output columns; oo_ref: (B, HOUT, WO, C) odd columns."""
    # ---- transposed conv: one packed-tap MXU matmul + static slab scatter-adds ----
    oe_ref[...] = jnp.zeros((B, HOUT, WE, C), jnp.float32)
    oo_ref[...] = jnp.zeros((B, HOUT, WO, C), jnp.float32)

    z = jnp.dot(x_ref[...], w_ref[...], preferred_element_type=jnp.float32)   # (B*H*W, NTAPS*C)
    z4 = z.reshape(B, H, W, NTAPS * C)                                        # W=8 -> tile-exact

    for kh in range(KH):
        for kw in range(KW):
            t = kh * KW + kw
            z_tap = z4[..., t * C:(t + 1) * C]                 # (B, H, W, C)
            # output position: ho = hi + kh, wo = 2*wi + kw -> parity kw%2, column wi + kw//2
            tgt = oe_ref if kw % 2 == 0 else oo_ref
            c0 = kw // 2
            tgt[:, pl.ds(kh, H), pl.ds(c0, W), :] += z_tap

    # ---- bias + InstanceNorm2d(affine, biased var) + PReLU over both parity halves jointly ----
    bias = b_ref[...].reshape(1, 1, 1, C)
    gamma = g_ref[...].reshape(1, 1, 1, C)
    beta = bt_ref[...].reshape(1, 1, 1, C)
    alpha = a_ref[...].reshape(1, 1, 1, C)

    ye = oe_ref[...] + bias
    yo = oo_ref[...] + bias
    n = float(HOUT * WOUT)
    mu = (jnp.sum(ye, axis=(1, 2), keepdims=True)
          + jnp.sum(yo, axis=(1, 2), keepdims=True)) / n                      # (B, 1, 1, C)
    d_e = ye - mu
    d_o = yo - mu
    var = (jnp.sum(d_e * d_e, axis=(1, 2), keepdims=True)
           + jnp.sum(d_o * d_o, axis=(1, 2), keepdims=True)) / n
    inv = jax.lax.rsqrt(var + EPS)
    ye = d_e * inv * gamma + beta
    yo = d_o * inv * gamma + beta
    ye = jnp.maximum(ye, 0.0) + alpha * jnp.minimum(ye, 0.0)                  # per-channel PReLU
    yo = jnp.maximum(yo, 0.0) + alpha * jnp.minimum(yo, 0.0)
    oe_ref[...] = ye
    oo_ref[...] = yo


def deconv2d_unit(x_nchw, weight, bias, gamma, beta, alpha):
    """x_nchw: (B, CIN, H, W). weight: torch ConvTranspose2d layout (CIN, C, KH, KW).
    Returns (B, C, HOUT, WOUT)."""
    assert x_nchw.shape == (B, CIN, H, W)
    # channels-last, rows flattened for the MXU matmul (pure layout glue)
    x2d = jnp.transpose(x_nchw, (0, 2, 3, 1)).reshape(B * H * W, CIN)
    # pack every (kh, kw) tap into one (CIN, NTAPS*C) matrix -> single MXU pass in-kernel.
    # w_all[ci, (kh*KW+kw)*C + co] = weight[ci, co, kh, kw]
    w_all = jnp.transpose(weight, (0, 2, 3, 1)).reshape(CIN, NTAPS * C)
    b2, g2, bt2, a2 = (p.reshape(1, C) for p in (bias, gamma, beta, alpha))

    ye, yo = pl.pallas_call(
        _deconv2d_unit_kernel,
        out_shape=(jax.ShapeDtypeStruct((B, HOUT, WE, C), jnp.float32),
                   jax.ShapeDtypeStruct((B, HOUT, WO, C), jnp.float32)),
        grid=(1,),
        in_specs=[_full_spec((B * H * W, CIN)), _full_spec((CIN, NTAPS * C)),
                  _full_spec((1, C)), _full_spec((1, C)), _full_spec((1, C)), _full_spec((1, C))],
        out_specs=(_full_spec((B, HOUT, WE, C)), _full_spec((B, HOUT, WO, C))),
        compiler_params=pltpu.CompilerParams(dimension_semantics=("arbitrary",)),
    )(x2d, w_all, b2, g2, bt2, a2)

    # interleave even/odd output columns and restore NCHW (trivial XLA reshapes)
    y = jnp.stack([ye[:, :, :WO, :], yo], axis=3).reshape(B, HOUT, 2 * WO, C)
    if WE > WO:
        y = jnp.concatenate([y, ye[:, :, WO:, :]], axis=2)                    # (B, HOUT, WOUT, C)
    return jnp.transpose(y, (0, 3, 1, 2))                                     # (B, C, HOUT, WOUT)


# ------------- pure-JAX reference (literal transcription of the PyTorch forward) -------------
def _reference(x, weight, bias, gamma, beta, alpha):
    y = jnp.zeros((B, C, HOUT, WOUT), jnp.float32)
    for kh in range(KH):
        for kw in range(KW):
            z = jnp.einsum("bihw,io->bohw", x, weight[:, :, kh, kw],
                           precision=jax.lax.Precision.HIGHEST)
            y = y.at[:, :, kh:kh + H, kw:kw + 2 * W:2].add(z)
    y = y + bias.reshape(1, C, 1, 1)
    mu = jnp.mean(y, axis=(2, 3), keepdims=True)
    var = jnp.mean((y - mu) ** 2, axis=(2, 3), keepdims=True)
    y = (y - mu) * jax.lax.rsqrt(var + EPS) * gamma.reshape(1, C, 1, 1) + beta.reshape(1, C, 1, 1)
    return jnp.maximum(y, 0.0) + alpha.reshape(1, C, 1, 1) * jnp.minimum(y, 0.0)


if __name__ == "__main__":
    key = jax.random.PRNGKey(0)
    kx, kw_, kb = jax.random.split(key, 3)
    x = jax.random.normal(kx, (B, CIN, H, W), jnp.float32)
    weight = jax.random.normal(kw_, (CIN, C, KH, KW), jnp.float32) / jnp.sqrt(float(CIN * KH * KW))
    bias = 0.01 * jax.random.normal(kb, (C,), jnp.float32)
    gamma = jnp.ones((C,), jnp.float32)        # InstanceNorm affine weight
    beta = jnp.zeros((C,), jnp.float32)        # InstanceNorm affine bias
    alpha = jnp.full((C,), 0.25, jnp.float32)  # PReLU default init

    out = jax.jit(deconv2d_unit)(x, weight, bias, gamma, beta, alpha)
    out = jax.block_until_ready(out)
    assert out.shape == (B, C, HOUT, WOUT), out.shape
    assert bool(jnp.all(jnp.isfinite(out)))

    ref = _reference(x, weight, bias, gamma, beta, alpha)
    err = float(jnp.max(jnp.abs(out - ref)))
    assert bool(jnp.allclose(out, ref, atol=2e-3, rtol=2e-3)), err
    print("KERNEL_OK")
</pallas_src>

<mosaic_0001>
module attributes {stable_mosaic.version = 11 : i64} {
  func.func @_deconv2d_unit_kernel(%arg0: i32, %arg1: memref<256x32xf32, #tpu.memory_space<vmem>>, %arg2: memref<32x96xf32, #tpu.memory_space<vmem>>, %arg3: memref<1x16xf32, #tpu.memory_space<vmem>>, %arg4: memref<1x16xf32, #tpu.memory_space<vmem>>, %arg5: memref<1x16xf32, #tpu.memory_space<vmem>>, %arg6: memref<1x16xf32, #tpu.memory_space<vmem>>, %arg7: memref<2x17x9x16xf32, #tpu.memory_space<vmem>>, %arg8: memref<2x17x8x16xf32, #tpu.memory_space<vmem>>) attributes {dimension_semantics = [#tpu.dimension_semantics<arbitrary>], iteration_bounds = array<i64: 1>, scalar_prefetch = 0 : i64, scratch_operands = 0 : i64, tpu.core_type = #tpu.core_type<tc>, window_params = [{pipeline_mode = #tpu.pipeline_mode<synchronous>, transform_indices = @transform_0, window_bounds = array<i64: 256, 32>}, {pipeline_mode = #tpu.pipeline_mode<synchronous>, transform_indices = @transform_1, window_bounds = array<i64: 32, 96>}, {pipeline_mode = #tpu.pipeline_mode<synchronous>, transform_indices = @transform_2, window_bounds = array<i64: 1, 16>}, {pipeline_mode = #tpu.pipeline_mode<synchronous>, transform_indices = @transform_3, window_bounds = array<i64: 1, 16>}, {pipeline_mode = #tpu.pipeline_mode<synchronous>, transform_indices = @transform_4, window_bounds = array<i64: 1, 16>}, {pipeline_mode = #tpu.pipeline_mode<synchronous>, transform_indices = @transform_5, window_bounds = array<i64: 1, 16>}, {pipeline_mode = #tpu.pipeline_mode<synchronous>, transform_indices = @transform_6, window_bounds = array<i64: 2, 17, 9, 16>}, {pipeline_mode = #tpu.pipeline_mode<synchronous>, transform_indices = @transform_7, window_bounds = array<i64: 2, 17, 8, 16>}]} {
    %cst = arith.constant 0.000000e+00 : f32
    %0 = vector.broadcast %cst : f32 to vector<2x17x9x16xf32>
    %c0 = arith.constant 0 : index
    %c0_0 = arith.constant 0 : index
    %c0_1 = arith.constant 0 : index
    %c0_2 = arith.constant 0 : index
    %1 = vector.load %arg7[%c0, %c0_0, %c0_1, %c0_2] : memref<2x17x9x16xf32, #tpu.memory_space<vmem>>, vector<2x17x9x16xf32>
    tpu.vector_store %arg7[%c0, %c0_0, %c0_1, %c0_2], %0 {strides = array<i32>} : memref<2x17x9x16xf32, #tpu.memory_space<vmem>>, vector<2x17x9x16xf32>,
    %cst_3 = arith.constant 0.000000e+00 : f32
    %2 = vector.broadcast %cst_3 : f32 to vector<2x17x8x16xf32>
    %c0_4 = arith.constant 0 : index
    %c0_5 = arith.constant 0 : index
    %c0_6 = arith.constant 0 : index
    %c0_7 = arith.constant 0 : index
    %3 = vector.load %arg8[%c0_4, %c0_5, %c0_6, %c0_7] : memref<2x17x8x16xf32, #tpu.memory_space<vmem>>, vector<2x17x8x16xf32>
    tpu.vector_store %arg8[%c0_4, %c0_5, %c0_6, %c0_7], %2 {strides = array<i32>} : memref<2x17x8x16xf32, #tpu.memory_space<vmem>>, vector<2x17x8x16xf32>,
    %c0_8 = arith.constant 0 : index
    %c0_9 = arith.constant 0 : index
    %4 = vector.load %arg1[%c0_8, %c0_9] : memref<256x32xf32, #tpu.memory_space<vmem>>, vector<256x32xf32>
    %c0_10 = arith.constant 0 : index
    %c0_11 = arith.constant 0 : index
    %5 = vector.load %arg2[%c0_10, %c0_11] : memref<32x96xf32, #tpu.memory_space<vmem>>, vector<32x96xf32>
    %cst_12 = arith.constant dense<0.000000e+00> : vector<256x96xf32>
    %6 = tpu.matmul %4, %5, %cst_12 {dimension_numbers = #tpu.dot_dimension_numbers<[1], [0], [0], [1], [0, 0, 1, 1], [], []>} : vector<256x32xf32>, vector<32x96xf32>, vector<256x96xf32> -> vector<256x96xf32>
    %7 = vector.shape_cast %6 : vector<256x96xf32> to vector<2x16x8x96xf32>
    %8 = vector.extract_strided_slice %7 {offsets = [0, 0, 0, 0], sizes = [2, 16, 8, 16], strides = [1, 1, 1, 1]} : vector<2x16x8x96xf32> to vector<2x16x8x16xf32>
    %c0_13 = arith.constant 0 : index
    %c0_14 = arith.constant 0 : index
    %c0_15 = arith.constant 0 : index
    %c0_16 = arith.constant 0 : index
    %9 = vector.load %arg7[%c0_13, %c0_14, %c0_15, %c0_16] : memref<2x17x9x16xf32, #tpu.memory_space<vmem>>, vector<2x16x8x16xf32>
    %10 = arith.addf %9, %8 : vector<2x16x8x16xf32>
    %c0_17 = arith.constant 0 : index
    %c0_18 = arith.constant 0 : index
    %c0_19 = arith.constant 0 : index
    %c0_20 = arith.constant 0 : index
    %11 = vector.load %arg7[%c0_17, %c0_18, %c0_19, %c0_20] : memref<2x17x9x16xf32, #tpu.memory_space<vmem>>, vector<2x16x8x16xf32>
    tpu.vector_store %arg7[%c0_17, %c0_18, %c0_19, %c0_20], %10 {strides = array<i32>} : memref<2x17x9x16xf32, #tpu.memory_space<vmem>>, vector<2x16x8x16xf32>,
    %12 = vector.extract_strided_slice %7 {offsets = [0, 0, 0, 16], sizes = [2, 16, 8, 16], strides = [1, 1, 1, 1]} : vector<2x16x8x96xf32> to vector<2x16x8x16xf32>
    %c0_21 = arith.constant 0 : index
    %c0_22 = arith.constant 0 : index
    %c0_23 = arith.constant 0 : index
    %c0_24 = arith.constant 0 : index
    %13 = vector.load %arg8[%c0_21, %c0_22, %c0_23, %c0_24] : memref<2x17x8x16xf32, #tpu.memory_space<vmem>>, vector<2x16x8x16xf32>
    %14 = arith.addf %13, %12 : vector<2x16x8x16xf32>
    %c0_25 = arith.constant 0 : index
    %c0_26 = arith.constant 0 : index
    %c0_27 = arith.constant 0 : index
    %c0_28 = arith.constant 0 : index
    %15 = vector.load %arg8[%c0_25, %c0_26, %c0_27, %c0_28] : memref<2x17x8x16xf32, #tpu.memory_space<vmem>>, vector<2x16x8x16xf32>
    tpu.vector_store %arg8[%c0_25, %c0_26, %c0_27, %c0_28], %14 {strides = array<i32>} : memref<2x17x8x16xf32, #tpu.memory_space<vmem>>, vector<2x16x8x16xf32>,
    %16 = vector.extract_strided_slice %7 {offsets = [0, 0, 0, 32], sizes = [2, 16, 8, 16], strides = [1, 1, 1, 1]} : vector<2x16x8x96xf32> to vector<2x16x8x16xf32>
    %c0_29 = arith.constant 0 : index
    %c0_30 = arith.constant 0 : index
    %c1 = arith.constant 1 : index
    %c0_31 = arith.constant 0 : index
    %17 = vector.load %arg7[%c0_29, %c0_30, %c1, %c0_31] : memref<2x17x9x16xf32, #tpu.memory_space<vmem>>, vector<2x16x8x16xf32>
    %18 = arith.addf %17, %16 : vector<2x16x8x16xf32>
    %c0_32 = arith.constant 0 : index
    %c0_33 = arith.constant 0 : index
    %c1_34 = arith.constant 1 : index
    %c0_35 = arith.constant 0 : index
    %19 = vector.load %arg7[%c0_32, %c0_33, %c1_34, %c0_35] : memref<2x17x9x16xf32, #tpu.memory_space<vmem>>, vector<2x16x8x16xf32>
    tpu.vector_store %arg7[%c0_32, %c0_33, %c1_34, %c0_35], %18 {strides = array<i32>} : memref<2x17x9x16xf32, #tpu.memory_space<vmem>>, vector<2x16x8x16xf32>,
    %20 = vector.extract_strided_slice %7 {offsets = [0, 0, 0, 48], sizes = [2, 16, 8, 16], strides = [1, 1, 1, 1]} : vector<2x16x8x96xf32> to vector<2x16x8x16xf32>
    %c0_36 = arith.constant 0 : index
    %c1_37 = arith.constant 1 : index
    %c0_38 = arith.constant 0 : index
    %c0_39 = arith.constant 0 : index
    %21 = vector.load %arg7[%c0_36, %c1_37, %c0_38, %c0_39] : memref<2x17x9x16xf32, #tpu.memory_space<vmem>>, vector<2x16x8x16xf32>
    %22 = arith.addf %21, %20 : vector<2x16x8x16xf32>
    %c0_40 = arith.constant 0 : index
    %c1_41 = arith.constant 1 : index
    %c0_42 = arith.constant 0 : index
    %c0_43 = arith.constant 0 : index
    %23 = vector.load %arg7[%c0_40, %c1_41, %c0_42, %c0_43] : memref<2x17x9x16xf32, #tpu.memory_space<vmem>>, vector<2x16x8x16xf32>
    tpu.vector_store %arg7[%c0_40, %c1_41, %c0_42, %c0_43], %22 {strides = array<i32>} : memref<2x17x9x16xf32, #tpu.memory_space<vmem>>, vector<2x16x8x16xf32>,
    %24 = vector.extract_strided_slice %7 {offsets = [0, 0, 0, 64], sizes = [2, 16, 8, 16], strides = [1, 1, 1, 1]} : vector<2x16x8x96xf32> to vector<2x16x8x16xf32>
    %c0_44 = arith.constant 0 : index
    %c1_45 = arith.constant 1 : index
    %c0_46 = arith.constant 0 : index
    %c0_47 = arith.constant 0 : index
    %25 = vector.load %arg8[%c0_44, %c1_45, %c0_46, %c0_47] : memref<2x17x8x16xf32, #tpu.memory_space<vmem>>, vector<2x16x8x16xf32>
    %26 = arith.addf %25, %24 : vector<2x16x8x16xf32>
    %c0_48 = arith.constant 0 : index
    %c1_49 = arith.constant 1 : index
    %c0_50 = arith.constant 0 : index
    %c0_51 = arith.constant 0 : index
    %27 = vector.load %arg8[%c0_48, %c1_49, %c0_50, %c0_51] : memref<2x17x8x16xf32, #tpu.memory_space<vmem>>, vector<2x16x8x16xf32>
    tpu.vector_store %arg8[%c0_48, %c1_49, %c0_50, %c0_51], %26 {strides = array<i32>} : memref<2x17x8x16xf32, #tpu.memory_space<vmem>>, vector<2x16x8x16xf32>,
    %28 = vector.extract_strided_slice %7 {offsets = [0, 0, 0, 80], sizes = [2, 16, 8, 16], strides = [1, 1, 1, 1]} : vector<2x16x8x96xf32> to vector<2x16x8x16xf32>
    %c0_52 = arith.constant 0 : index
    %c1_53 = arith.constant 1 : index
    %c1_54 = arith.constant 1 : index
    %c0_55 = arith.constant 0 : index
    %29 = vector.load %arg7[%c0_52, %c1_53, %c1_54, %c0_55] : memref<2x17x9x16xf32, #tpu.memory_space<vmem>>, vector<2x16x8x16xf32>
    %30 = arith.addf %29, %28 : vector<2x16x8x16xf32>
    %c0_56 = arith.constant 0 : index
    %c1_57 = arith.constant 1 : index
    %c1_58 = arith.constant 1 : index
    %c0_59 = arith.constant 0 : index
    %31 = vector.load %arg7[%c0_56, %c1_57, %c1_58, %c0_59] : memref<2x17x9x16xf32, #tpu.memory_space<vmem>>, vector<2x16x8x16xf32>
    tpu.vector_store %arg7[%c0_56, %c1_57, %c1_58, %c0_59], %30 {strides = array<i32>} : memref<2x17x9x16xf32, #tpu.memory_space<vmem>>, vector<2x16x8x16xf32>,
    %c0_60 = arith.constant 0 : index
    %c0_61 = arith.constant 0 : index
    %32 = vector.load %arg3[%c0_60, %c0_61] : memref<1x16xf32, #tpu.memory_space<vmem>>, vector<1x16xf32>
    %33 = vector.shape_cast %32 : vector<1x16xf32> to vector<1x1x1x16xf32>
    %c0_62 = arith.constant 0 : index
    %c0_63 = arith.constant 0 : index
    %34 = vector.load %arg4[%c0_62, %c0_63] : memref<1x16xf32, #tpu.memory_space<vmem>>, vector<1x16xf32>
    %35 = vector.shape_cast %34 : vector<1x16xf32> to vector<1x1x1x16xf32>
    %c0_64 = arith.constant 0 : index
    %c0_65 = arith.constant 0 : index
    %36 = vector.load %arg5[%c0_64, %c0_65] : memref<1x16xf32, #tpu.memory_space<vmem>>, vector<1x16xf32>
    %37 = vector.shape_cast %36 : vector<1x16xf32> to vector<1x1x1x16xf32>
    %c0_66 = arith.constant 0 : index
    %c0_67 = arith.constant 0 : index
    %38 = vector.load %arg6[%c0_66, %c0_67] : memref<1x16xf32, #tpu.memory_space<vmem>>, vector<1x16xf32>
    %39 = vector.shape_cast %38 : vector<1x16xf32> to vector<1x1x1x16xf32>
    %c0_68 = arith.constant 0 : index
    %c0_69 = arith.constant 0 : index
    %c0_70 = arith.constant 0 : index
    %c0_71 = arith.constant 0 : index
    %40 = vector.load %arg7[%c0_68, %c0_69, %c0_70, %c0_71] : memref<2x17x9x16xf32, #tpu.memory_space<vmem>>, vector<2x17x9x16xf32>
    %41 = vector.broadcast %33 : vector<1x1x1x16xf32> to vector<2x17x9x16xf32>
    %42 = arith.addf %40, %41 : vector<2x17x9x16xf32>
    %c0_72 = arith.constant 0 : index
    %c0_73 = arith.constant 0 : index
    %c0_74 = arith.constant 0 : index
    %c0_75 = arith.constant 0 : index
    %43 = vector.load %arg8[%c0_72, %c0_73, %c0_74, %c0_75] : memref<2x17x8x16xf32, #tpu.memory_space<vmem>>, vector<2x17x8x16xf32>
    %44 = vector.broadcast %33 : vector<1x1x1x16xf32> to vector<2x17x8x16xf32>
    %45 = arith.addf %43, %44 : vector<2x17x8x16xf32>
    %cst_76 = arith.constant dense<0.000000e+00> : vector<2x16xf32>
    %46 = vector.multi_reduction <add>, %42, %cst_76 [1, 2] : vector<2x17x9x16xf32> to vector<2x16xf32>
    %47 = vector.shape_cast %46 : vector<2x16xf32> to vector<2x1x1x16xf32>
    %cst_77 = arith.constant dense<0.000000e+00> : vector<2x16xf32>
    %48 = vector.multi_reduction <add>, %45, %cst_77 [1, 2] : vector<2x17x8x16xf32> to vector<2x16xf32>
    %49 = vector.shape_cast %48 : vector<2x16xf32> to vector<2x1x1x16xf32>
    %50 = arith.addf %47, %49 : vector<2x1x1x16xf32>
    %cst_78 = arith.constant 2.890000e+02 : f32
    %51 = vector.broadcast %cst_78 : f32 to vector<2x1x1x16xf32>
    %52 = arith.divf %50, %51 : vector<2x1x1x16xf32>
    %53 = vector.broadcast %52 : vector<2x1x1x16xf32> to vector<2x17x9x16xf32>
    %54 = arith.subf %42, %53 : vector<2x17x9x16xf32>
    %55 = vector.broadcast %52 : vector<2x1x1x16xf32> to vector<2x17x8x16xf32>
    %56 = arith.subf %45, %55 : vector<2x17x8x16xf32>
    %57 = arith.mulf %54, %54 : vector<2x17x9x16xf32>
    %cst_79 = arith.constant dense<0.000000e+00> : vector<2x16xf32>
    %58 = vector.multi_reduction <add>, %57, %cst_79 [1, 2] : vector<2x17x9x16xf32> to vector<2x16xf32>
    %59 = vector.shape_cast %58 : vector<2x16xf32> to vector<2x1x1x16xf32>
    %60 = arith.mulf %56, %56 : vector<2x17x8x16xf32>
    %cst_80 = arith.constant dense<0.000000e+00> : vector<2x16xf32>
    %61 = vector.multi_reduction <add>, %60, %cst_80 [1, 2] : vector<2x17x8x16xf32> to vector<2x16xf32>
    %62 = vector.shape_cast %61 : vector<2x16xf32> to vector<2x1x1x16xf32>
    %63 = arith.addf %59, %62 : vector<2x1x1x16xf32>
    %cst_81 = arith.constant 2.890000e+02 : f32
    %64 = vector.broadcast %cst_81 : f32 to vector<2x1x1x16xf32>
    %65 = arith.divf %63, %64 : vector<2x1x1x16xf32>
    %cst_82 = arith.constant 9.99999974E-6 : f32
    %66 = vector.broadcast %cst_82 : f32 to vector<2x1x1x16xf32>
    %67 = arith.addf %65, %66 : vector<2x1x1x16xf32>
    %68 = math.rsqrt %67 : vector<2x1x1x16xf32>
    %69 = vector.broadcast %68 : vector<2x1x1x16xf32> to vector<2x17x9x16xf32>
    %70 = arith.mulf %54, %69 : vector<2x17x9x16xf32>
    %71 = vector.broadcast %35 : vector<1x1x1x16xf32> to vector<2x17x9x16xf32>
    %72 = arith.mulf %70, %71 : vector<2x17x9x16xf32>
    %73 = vector.broadcast %37 : vector<1x1x1x16xf32> to vector<2x17x9x16xf32>
    %74 = arith.addf %72, %73 : vector<2x17x9x16xf32>
    %75 = vector.broadcast %68 : vector<2x1x1x16xf32> to vector<2x17x8x16xf32>
    %76 = arith.mulf %56, %75 : vector<2x17x8x16xf32>
    %77 = vector.broadcast %35 : vector<1x1x1x16xf32> to vector<2x17x8x16xf32>
    %78 = arith.mulf %76, %77 : vector<2x17x8x16xf32>
    %79 = vector.broadcast %37 : vector<1x1x1x16xf32> to vector<2x17x8x16xf32>
    %80 = arith.addf %78, %79 : vector<2x17x8x16xf32>
    %cst_83 = arith.constant 0.000000e+00 : f32
    %81 = vector.broadcast %cst_83 : f32 to vector<2x17x9x16xf32>
    %82 = arith.maximumf %74, %81 : vector<2x17x9x16xf32>
    %cst_84 = arith.constant 0.000000e+00 : f32
    %83 = vector.broadcast %cst_84 : f32 to vector<2x17x9x16xf32>
    %84 = arith.minimumf %74, %83 : vector<2x17x9x16xf32>
    %85 = vector.broadcast %39 : vector<1x1x1x16xf32> to vector<2x17x9x16xf32>
    %86 = arith.mulf %85, %84 : vector<2x17x9x16xf32>
    %87 = arith.addf %82, %86 : vector<2x17x9x16xf32>
    %cst_85 = arith.constant 0.000000e+00 : f32
    %88 = vector.broadcast %cst_85 : f32 to vector<2x17x8x16xf32>
    %89 = arith.maximumf %80, %88 : vector<2x17x8x16xf32>
    %cst_86 = arith.constant 0.000000e+00 : f32
    %90 = vector.broadcast %cst_86 : f32 to vector<2x17x8x16xf32>
    %91 = arith.minimumf %80, %90 : vector<2x17x8x16xf32>
    %92 = vector.broadcast %39 : vector<1x1x1x16xf32> to vector<2x17x8x16xf32>
    %93 = arith.mulf %92, %91 : vector<2x17x8x16xf32>
    %94 = arith.addf %89, %93 : vector<2x17x8x16xf32>
    %c0_87 = arith.constant 0 : index
    %c0_88 = arith.constant 0 : index
    %c0_89 = arith.constant 0 : index
    %c0_90 = arith.constant 0 : index
    %95 = vector.load %arg7[%c0_87, %c0_88, %c0_89, %c0_90] : memref<2x17x9x16xf32, #tpu.memory_space<vmem>>, vector<2x17x9x16xf32>
    tpu.vector_store %arg7[%c0_87, %c0_88, %c0_89, %c0_90], %87 {strides = array<i32>} : memref<2x17x9x16xf32, #tpu.memory_space<vmem>>, vector<2x17x9x16xf32>,
    %c0_91 = arith.constant 0 : index
    %c0_92 = arith.constant 0 : index
    %c0_93 = arith.constant 0 : index
    %c0_94 = arith.constant 0 : index
    %96 = vector.load %arg8[%c0_91, %c0_92, %c0_93, %c0_94] : memref<2x17x8x16xf32, #tpu.memory_space<vmem>>, vector<2x17x8x16xf32>
    tpu.vector_store %arg8[%c0_91, %c0_92, %c0_93, %c0_94], %94 {strides = array<i32>} : memref<2x17x8x16xf32, #tpu.memory_space<vmem>>, vector<2x17x8x16xf32>,
    return
  }
  func.func @transform_0(%arg0: i32) -> (i32, i32) {
    %c0_i32 = arith.constant 0 : i32
    %c0_i32_0 = arith.constant 0 : i32
    %c0_i32_1 = arith.constant 0 : i32
    return %c0_i32, %c0_i32_0 : i32, i32
  }
  func.func @transform_1(%arg0: i32) -> (i32, i32) {
    %c0_i32 = arith.constant 0 : i32
    %c0_i32_0 = arith.constant 0 : i32
    %c0_i32_1 = arith.constant 0 : i32
    return %c0_i32, %c0_i32_0 : i32, i32
  }
  func.func @transform_2(%arg0: i32) -> (i32, i32) {
    %c0_i32 = arith.constant 0 : i32
    %c0_i32_0 = arith.constant 0 : i32
    %c0_i32_1 = arith.constant 0 : i32
    return %c0_i32, %c0_i32_0 : i32, i32
  }
  func.func @transform_3(%arg0: i32) -> (i32, i32) {
    %c0_i32 = arith.constant 0 : i32
    %c0_i32_0 = arith.constant 0 : i32
    %c0_i32_1 = arith.constant 0 : i32
    return %c0_i32, %c0_i32_0 : i32, i32
  }
  func.func @transform_4(%arg0: i32) -> (i32, i32) {
    %c0_i32 = arith.constant 0 : i32
    %c0_i32_0 = arith.constant 0 : i32
    %c0_i32_1 = arith.constant 0 : i32
    return %c0_i32, %c0_i32_0 : i32, i32
  }
  func.func @transform_5(%arg0: i32) -> (i32, i32) {
    %c0_i32 = arith.constant 0 : i32
    %c0_i32_0 = arith.constant 0 : i32
    %c0_i32_1 = arith.constant 0 : i32
    return %c0_i32, %c0_i32_0 : i32, i32
  }
  func.func @transform_6(%arg0: i32) -> (i32, i32, i32, i32) {
    %c0_i32 = arith.constant 0 : i32
    %c0_i32_0 = arith.constant 0 : i32
    %c0_i32_1 = arith.constant 0 : i32
    %c0_i32_2 = arith.constant 0 : i32
    %c0_i32_3 = arith.constant 0 : i32
    return %c0_i32, %c0_i32_0, %c0_i32_1, %c0_i32_2 : i32, i32, i32, i32
  }
  func.func @transform_7(%arg0: i32) -> (i32, i32, i32, i32) {
    %c0_i32 = arith.constant 0 : i32
    %c0_i32_0 = arith.constant 0 : i32
    %c0_i32_1 = arith.constant 0 : i32
    %c0_i32_2 = arith.constant 0 : i32
    %c0_i32_3 = arith.constant 0 : i32
    return %c0_i32, %c0_i32_0, %c0_i32_1, %c0_i32_2 : i32, i32, i32, i32
  }
}

</mosaic_0001>

<bundles_post_ra>
// kernel: deconv2d_unit.1
= control target key start
LH: loop header
LB: loop body
LE: loop exit
PB: predicated region body
PF: predicated region fallthrough
CT: control target
= control target key end

     0   :  { %vm165_vm0 = vcmask 261120   ;;  %vm25_vm1 = vcmask 130048   ;;  %v3644_v3 = vmov 0.0   ;;  %vm27_vm2 = vcmask 122880   ;;  %s3645_s20 = smov 112   ;;  %s3646_s12 = smov 96   ;;  %s9219_s1 = inlined_call_operand.vmem [shape: f32[32,96], index: 1, kind: input, shape index: {}]   ;;  %s9220_s0 = inlined_call_operand.vmem [shape: f32[256,32], index: 0, kind: input, shape index: {}]   ;;  %s9221_s6 = inlined_call_operand.vmem [shape: f32[2,17,9,16], index: 6, kind: output, shape index: {0}]   ;;  %s9222_s7 = inlined_call_operand.vmem [shape: f32[2,17,8,16], index: 7, kind: output, shape index: {1}]   ;;  %s9223_s2 = inlined_call_operand.vmem [shape: f32[1,16], index: 2, kind: input, shape index: {}]   ;;  %s9224_s3 = inlined_call_operand.vmem [shape: f32[1,16], index: 3, kind: input, shape index: {}]   ;;  %s9225_s4 = inlined_call_operand.vmem [shape: f32[1,16], index: 4, kind: input, shape index: {}]   ;;  %s9226_s5 = inlined_call_operand.vmem [shape: f32[1,16], index: 5, kind: input, shape index: {}]  }
   0x1   :  { %v161_v0 = vld [vmem:[%s9219_s1] sm:$0xff]  ;;  %v162_v1 = vld [vmem:[%s9219_s1 + $0x8] sm:$0xff]  ;;  %v163_v2 = vld [vmem:[%s9219_s1 + $0x10] sm:$0xff]  ;;  %29 = vst.msk [vmem:[%s9221_s6 + $0x10] sm:$0xff] %vm25_vm1, %v3644_v3  ;;  %s3647_s29 = smov 80   ;;  %s3649_s10 = smov 64  }
   0x2   :  { %26 = vst.msk [vmem:[%s9221_s6] sm:$0xff] %vm25_vm1, %v3644_v3  ;;  %31 = vst.msk [vmem:[%s9221_s6 + $0x20] sm:$0xff] %vm25_vm1, %v3644_v3  ;;  %v3618_v4 = vpack.c.bf16 %v162_v1, %v161_v0  ;;  %v164_v5 = vld [vmem:[%s9219_s1 + $0x18] sm:$0xff]  ;;  %v129_v6 = vld [vmem:[%s9220_s0] sm:$0xff] }
   0x3   :  { %33 = vst.msk [vmem:[%s9221_s6 + $0x30] sm:$0xff] %vm25_vm1, %v3644_v3  ;;  %35 = vst.msk [vmem:[%s9221_s6 + $0x40] sm:$0xff] %vm25_vm1, %v3644_v3  ;;  %v145_v7 = vld [vmem:[%s9220_s0 + $0x80] sm:$0xff]  ;;  %v3622_v8 = vpack.c.bf16 %v164_v5, %v163_v2  ;;  %3570 = vmatprep.mubr.msk.f32.mxu0 %vm165_vm0, %v129_v6  ;;  %v130_v9 = vld [vmem:[%s9220_s0 + $0x8] sm:$0xff] }
   0x4   :  { %37 = vst.msk [vmem:[%s9221_s6 + $0x50] sm:$0xff] %vm25_vm1, %v3644_v3  ;;  %39 = vst.msk [vmem:[%s9221_s6 + $0x60] sm:$0xff] %vm25_vm1, %v3644_v3  ;;  %3594 = vmatprep.mubr.msk.f32.mxu1 %vm165_vm0, %v145_v7  ;;  %3619 = vmatprep.subr.bf16.mxu0 %v3618_v4  ;;  %v146_v10 = vld [vmem:[%s9220_s0 + $0x88] sm:$0xff]  ;;  %v131_v11 = vld [vmem:[%s9220_s0 + $0x10] sm:$0xff] }
   0x5   :  { %41 = vst.msk [vmem:[%s9221_s6 + $0x70] sm:$0xff] %vm25_vm1, %v3644_v3  ;;  %43 = vst.msk [vmem:[%s9221_s6 + $0x80] sm:$0xff] %vm25_vm1, %v3644_v3  ;;  %3626 = vmatprep.subr.bf16.mxu1 %v3618_v4  ;;  %3621 = vmatpush3.bf16.msra.mxu0 %v3618_v4  ;;  %v147_v12 = vld [vmem:[%s9220_s0 + $0x90] sm:$0xff]  ;;  %v132_v13 = vld [vmem:[%s9220_s0 + $0x18] sm:$0xff] }
   0x6   :  { %45 = vst.msk [vmem:[%s9221_s6 + $0x90] sm:$0xff] %vm25_vm1, %v3644_v3  ;;  %47 = vst.msk [vmem:[%s9221_s6 + $0xa0] sm:$0xff] %vm25_vm1, %v3644_v3  ;;  %3628 = vmatpush3.bf16.msra.mxu1 %v3618_v4  ;;  %3623 = vmatprep.subr.bf16.mxu0 %v3622_v8  ;;  %v148_v14 = vld [vmem:[%s9220_s0 + $0x98] sm:$0xff]  ;;  %v133_v15 = vld [vmem:[%s9220_s0 + $0x20] sm:$0xff] }
   0x7   :  { %49 = vst.msk [vmem:[%s9221_s6 + $0xb0] sm:$0xff] %vm25_vm1, %v3644_v3  ;;  %51 = vst.msk [vmem:[%s9221_s6 + $0xc0] sm:$0xff] %vm25_vm1, %v3644_v3  ;;  %3627 = vmatprep.subr.bf16.mxu1 %v3622_v8  ;;  %v149_v16 = vld [vmem:[%s9220_s0 + $0xa0] sm:$0xff]  ;;  %v134_v17 = vld [vmem:[%s9220_s0 + $0x28] sm:$0xff] }
   0x8   :  { %53 = vst.msk [vmem:[%s9221_s6 + $0xd0] sm:$0xff] %vm25_vm1, %v3644_v3  ;;  %55 = vst.msk [vmem:[%s9221_s6 + $0xe0] sm:$0xff] %vm25_vm1, %v3644_v3  ;;  %v150_v18 = vld [vmem:[%s9220_s0 + $0xa8] sm:$0xff]  ;;  %v135_v19 = vld [vmem:[%s9220_s0 + $0x30] sm:$0xff] }
   0x9   :  { %57 = vst.msk [vmem:[%s9221_s6 + $0xf0] sm:$0xff] %vm25_vm1, %v3644_v3  ;;  %59 = vst.msk [vmem:[%s9221_s6 + $0x100] sm:$0xff] %vm25_vm1, %v3644_v3  ;;  %3625 = vmatpush3.bf16.msra.mxu0 %v3622_v8  ;;  %v151_v20 = vld [vmem:[%s9220_s0 + $0xb0] sm:$0xff]  ;;  %v136_v21 = vld [vmem:[%s9220_s0 + $0x38] sm:$0xff] }
   0xa   :  { %61 = vst.msk [vmem:[%s9221_s6 + $0x110] sm:$0xff] %vm25_vm1, %v3644_v3  ;;  %63 = vst.msk [vmem:[%s9221_s6 + $0x120] sm:$0xff] %vm25_vm1, %v3644_v3  ;;  %3629 = vmatpush3.bf16.msra.mxu1 %v3622_v8  ;;  %v152_v22 = vld [vmem:[%s9220_s0 + $0xb8] sm:$0xff]  ;;  %v137_v23 = vld [vmem:[%s9220_s0 + $0x40] sm:$0xff] }
   0xb   :  { %65 = vst.msk [vmem:[%s9221_s6 + $0x130] sm:$0xff] %vm25_vm1, %v3644_v3  ;;  %67 = vst.msk [vmem:[%s9221_s6 + $0x140] sm:$0xff] %vm25_vm1, %v3644_v3  ;;  %v153_v24 = vld [vmem:[%s9220_s0 + $0xc0] sm:$0xff]  ;;  %v138_v25 = vld [vmem:[%s9220_s0 + $0x48] sm:$0xff] }
   0xc   :  { %69 = vst.msk [vmem:[%s9221_s6 + $0x150] sm:$0xff] %vm25_vm1, %v3644_v3  ;;  %71 = vst.msk [vmem:[%s9221_s6 + $0x160] sm:$0xff] %vm25_vm1, %v3644_v3  ;;  %3571 = vmatmul.mubr.msk.f32.vlgmr.msra.gmra.mrb[0].mxu0 %vm165_vm0, %v130_v9  ;;  %v154_v26 = vld [vmem:[%s9220_s0 + $0xc8] sm:$0xff]  ;;  %v139_v27 = vld [vmem:[%s9220_s0 + $0x50] sm:$0xff] }
   0xd   :  { %73 = vst.msk [vmem:[%s9221_s6 + $0x170] sm:$0xff] %vm25_vm1, %v3644_v3  ;;  %75 = vst.msk [vmem:[%s9221_s6 + $0x180] sm:$0xff] %vm25_vm1, %v3644_v3  ;;  %3595 = vmatmul.mubr.msk.f32.vlgmr.msra.gmra.mrb[0].mxu1 %vm165_vm0, %v146_v10  ;;  %3573 = vmatprep.mubr.msk.f32.mxu0 %vm165_vm0, %v131_v11  ;;  %v155_v28 = vld [vmem:[%s9220_s0 + $0xd0] sm:$0xff]  ;;  %v140_v29 = vld [vmem:[%s9220_s0 + $0x58] sm:$0xff] }
   0xe   :  { %77 = vst.msk [vmem:[%s9221_s6 + $0x190] sm:$0xff] %vm25_vm1, %v3644_v3  ;;  %79 = vst.msk [vmem:[%s9221_s6 + $0x1a0] sm:$0xff] %vm25_vm1, %v3644_v3  ;;  %3597 = vmatprep.mubr.msk.f32.mxu1 %vm165_vm0, %v147_v12  ;;  %v156_v30 = vld [vmem:[%s9220_s0 + $0xd8] sm:$0xff]  ;;  %v141_v31 = vld [vmem:[%s9220_s0 + $0x60] sm:$0xff] }
   0xf   :  { %81 = vst.msk [vmem:[%s9221_s6 + $0x1b0] sm:$0xff] %vm25_vm1, %v3644_v3  ;;  %83 = vst.msk [vmem:[%s9221_s6 + $0x1c0] sm:$0xff] %vm25_vm1, %v3644_v3  ;;  %v157_v32 = vld [vmem:[%s9220_s0 + $0xe0] sm:$0xff]  ;;  %v142_v33 = vld [vmem:[%s9220_s0 + $0x68] sm:$0xff] }
  0x10   :  { %85 = vst.msk [vmem:[%s9221_s6 + $0x1d0] sm:$0xff] %vm25_vm1, %v3644_v3  ;;  %87 = vst.msk [vmem:[%s9221_s6 + $0x1e0] sm:$0xff] %vm25_vm1, %v3644_v3  ;;  %3574 = vmatmul.mubr.msk.f32.gmra.mrb[2].mxu0 %vm165_vm0, %v132_v13  ;;  %v158_v34 = vld [vmem:[%s9220_s0 + $0xe8] sm:$0xff]  ;;  %v143_v35 = vld [vmem:[%s9220_s0 + $0x70] sm:$0xff] }
  0x11   :  { %89 = vst.msk [vmem:[%s9221_s6 + $0x1f0] sm:$0xff] %vm25_vm1, %v3644_v3  ;;  %91 = vst.msk [vmem:[%s9221_s6 + $0x200] sm:$0xff] %vm25_vm1, %v3644_v3  ;;  %3598 = vmatmul.mubr.msk.f32.gmra.mrb[2].mxu1 %vm165_vm0, %v148_v14  ;;  %3576 = vmatprep.mubr.msk.f32.mxu0 %vm165_vm0, %v133_v15  ;;  %v159_v36 = vld [vmem:[%s9220_s0 + $0xf0] sm:$0xff]  ;;  %v144_v37 = vld [vmem:[%s9220_s0 + $0x78] sm:$0xff] }
  0x12   :  { %93 = vst.msk [vmem:[%s9221_s6 + $0x210] sm:$0xff] %vm25_vm1, %v3644_v3  ;;  %3600 = vmatprep.mubr.msk.f32.mxu1 %vm165_vm0, %v149_v16  ;;  %v160_v38 = vld [vmem:[%s9220_s0 + $0xf8] sm:$0xff]  ;;  %113 = vst.msk [vmem:[%s9222_s7 + $0x90] sm:$0xff] %vm25_vm1, %v3644_v3  ;;  %v488_v39 = vld [vmem:[%s9221_s6 + $0x10] sm:$0xff]  ;;  %s3648_s0 = smov 48  }
  0x13   :  { %30 = vst.msk [vmem:[%s9221_s6 + $0x18] sm:$0x1] %vm27_vm2, %v3644_v3  ;;  %28 = vst.msk [vmem:[%s9221_s6 + $0x8] sm:$0x1] %vm27_vm2, %v3644_v3  ;;  %v504_v40 = vld [vmem:[%s9221_s6 + $0x120] sm:$0xff]  ;;  %v503_v41 = vld [vmem:[%s9221_s6 + $0x110] sm:$0xff] }
  0x14   :  { %3577 = vmatmul.mubr.msk.f32.gmra.mrb[4].mxu0 %vm165_vm0, %v134_v17  ;;  %32 = vst.msk [vmem:[%s9221_s6 + $0x28] sm:$0x1] %vm27_vm2, %v3644_v3  ;;  %34 = vst.msk [vmem:[%s9221_s6 + $0x38] sm:$0x1] %vm27_vm2, %v3644_v3  ;;  %v487_v42 = vld [vmem:[%s9221_s6] sm:$0xff]  ;;  %v490_v51 = vld [vmem:[%s9221_s6 + $0x30] sm:$0xff] }
  0x15   :  { %3601 = vmatmul.mubr.msk.f32.gmra.mrb[4].mxu1 %vm165_vm0, %v150_v18  ;;  %3579 = vmatprep.mubr.msk.f32.mxu0 %vm165_vm0, %v135_v19  ;;  %36 = vst.msk [vmem:[%s9221_s6 + $0x48] sm:$0x1] %vm27_vm2, %v3644_v3  ;;  %38 = vst.msk [vmem:[%s9221_s6 + $0x58] sm:$0x1] %vm27_vm2, %v3644_v3  ;;  %v506_v52 = vld [vmem:[%s9221_s6 + $0x140] sm:$0xff]  ;;  %v505_v54 = vld [vmem:[%s9221_s6 + $0x130] sm:$0xff] }
  0x16   :  { %3603 = vmatprep.mubr.msk.f32.mxu1 %vm165_vm0, %v151_v20  ;;  %40 = vst.msk [vmem:[%s9221_s6 + $0x68] sm:$0x1] %vm27_vm2, %v3644_v3  ;;  %42 = vst.msk [vmem:[%s9221_s6 + $0x78] sm:$0x1] %vm27_vm2, %v3644_v3  ;;  %v489_v53 = vld [vmem:[%s9221_s6 + $0x20] sm:$0xff]  ;;  %v492_v63 = vld [vmem:[%s9221_s6 + $0x50] sm:$0xff] }
  0x17   :  { %44 = vst.msk [vmem:[%s9221_s6 + $0x88] sm:$0x1] %vm27_vm2, %v3644_v3  ;;  %46 = vst.msk [vmem:[%s9221_s6 + $0x98] sm:$0x1] %vm27_vm2, %v3644_v3  ;;  %v508_v0 = vld [vmem:[%s9221_s6 + $0x160] sm:$0xff]  ;;  %v507_v2 = vld [vmem:[%s9221_s6 + $0x150] sm:$0xff] }
  0x18   :  { %3580 = vmatmul.mubr.msk.f32.gmra.mrb[6].mxu0 %vm165_vm0, %v136_v21  ;;  %48 = vst.msk [vmem:[%s9221_s6 + $0xa8] sm:$0x1] %vm27_vm2, %v3644_v3  ;;  %50 = vst.msk [vmem:[%s9221_s6 + $0xb8] sm:$0x1] %vm27_vm2, %v3644_v3  ;;  %v491_v1 = vld [vmem:[%s9221_s6 + $0x40] sm:$0xff]  ;;  %v494_v12 = vld [vmem:[%s9221_s6 + $0x70] sm:$0xff] }
  0x19   :  { %3604 = vmatmul.mubr.msk.f32.gmra.mrb[6].mxu1 %vm165_vm0, %v152_v22  ;;  %3582 = vmatprep.mubr.msk.f32.mxu0 %vm165_vm0, %v137_v23  ;;  %52 = vst.msk [vmem:[%s9221_s6 + $0xc8] sm:$0x1] %vm27_vm2, %v3644_v3  ;;  %54 = vst.msk [vmem:[%s9221_s6 + $0xd8] sm:$0x1] %vm27_vm2, %v3644_v3  ;;  %v510_v11 = vld [vmem:[%s9221_s6 + $0x180] sm:$0xff]  ;;  %v509_v14 = vld [vmem:[%s9221_s6 + $0x170] sm:$0xff] }
  0x1a   :  { %3606 = vmatprep.mubr.msk.f32.mxu1 %vm165_vm0, %v153_v24  ;;  %56 = vst.msk [vmem:[%s9221_s6 + $0xe8] sm:$0x1] %vm27_vm2, %v3644_v3  ;;  %58 = vst.msk [vmem:[%s9221_s6 + $0xf8] sm:$0x1] %vm27_vm2, %v3644_v3  ;;  %v493_v13 = vld [vmem:[%s9221_s6 + $0x60] sm:$0xff] }
  0x1b   :  { %60 = vst.msk [vmem:[%s9221_s6 + $0x108] sm:$0x1] %vm27_vm2, %v3644_v3  ;;  %62 = vst.msk [vmem:[%s9221_s6 + $0x118] sm:$0x1] %vm27_vm2, %v3644_v3 }
  0x1c   :  { %3583 = vmatmul.mubr.msk.f32.gmra.mrb[8].mxu0 %vm165_vm0, %v138_v25  ;;  %64 = vst.msk [vmem:[%s9221_s6 + $0x128] sm:$0x1] %vm27_vm2, %v3644_v3  ;;  %66 = vst.msk [vmem:[%s9221_s6 + $0x138] sm:$0x1] %vm27_vm2, %v3644_v3  ;;  %v512_v25 = vld [vmem:[%s9221_s6 + $0x1a0] sm:$0xff] }
  0x1d   :  { %3607 = vmatmul.mubr.msk.f32.gmra.mrb[8].mxu1 %vm165_vm0, %v154_v26  ;;  %3585 = vmatprep.mubr.msk.f32.mxu0 %vm165_vm0, %v139_v27  ;;  %68 = vst.msk [vmem:[%s9221_s6 + $0x148] sm:$0x1] %vm27_vm2, %v3644_v3  ;;  %70 = vst.msk [vmem:[%s9221_s6 + $0x158] sm:$0x1] %vm27_vm2, %v3644_v3  ;;  %v496_v26 = vld [vmem:[%s9221_s6 + $0x90] sm:$0xff] }
  0x1e   :  { %3609 = vmatprep.mubr.msk.f32.mxu1 %vm165_vm0, %v155_v28  ;;  %72 = vst.msk [vmem:[%s9221_s6 + $0x168] sm:$0x1] %vm27_vm2, %v3644_v3  ;;  %74 = vst.msk [vmem:[%s9221_s6 + $0x178] sm:$0x1] %vm27_vm2, %v3644_v3 }
  0x1f   :  { %76 = vst.msk [vmem:[%s9221_s6 + $0x188] sm:$0x1] %vm27_vm2, %v3644_v3  ;;  %78 = vst.msk [vmem:[%s9221_s6 + $0x198] sm:$0x1] %vm27_vm2, %v3644_v3 }
  0x20   :  { %3586 = vmatmul.mubr.msk.f32.gmra.mrb[10].mxu0 %vm165_vm0, %v140_v29  ;;  %80 = vst.msk [vmem:[%s9221_s6 + $0x1a8] sm:$0x1] %vm27_vm2, %v3644_v3  ;;  %82 = vst.msk [vmem:[%s9221_s6 + $0x1b8] sm:$0x1] %vm27_vm2, %v3644_v3 }
  0x21   :  { %3610 = vmatmul.mubr.msk.f32.gmra.mrb[10].mxu1 %vm165_vm0, %v156_v30  ;;  %84 = vst.msk [vmem:[%s9221_s6 + $0x1c8] sm:$0x1] %vm27_vm2, %v3644_v3  ;;  %86 = vst.msk [vmem:[%s9221_s6 + $0x1d8] sm:$0x1] %vm27_vm2, %v3644_v3  ;;  %3588 = vmatprep.mubr.msk.f32.mxu0 %vm165_vm0, %v141_v31  ;;  %v495_v31 = vld [vmem:[%s9221_s6 + $0x80] sm:$0xff] }
  0x22   :  { %88 = vst.msk [vmem:[%s9221_s6 + $0x1e8] sm:$0x1] %vm27_vm2, %v3644_v3  ;;  %90 = vst.msk [vmem:[%s9221_s6 + $0x1f8] sm:$0x1] %vm27_vm2, %v3644_v3  ;;  %3612 = vmatprep.mubr.msk.f32.mxu1 %vm165_vm0, %v157_v32  ;;  %v511_v32 = vld [vmem:[%s9221_s6 + $0x190] sm:$0xff] }
  0x23   :  { %92 = vst.msk [vmem:[%s9221_s6 + $0x208] sm:$0x1] %vm27_vm2, %v3644_v3  ;;  %94 = vst.msk [vmem:[%s9221_s6 + $0x218] sm:$0x1] %vm27_vm2, %v3644_v3 }
  0x24   :  { %3589 = vmatmul.mubr.msk.f32.gmra.mrb[12].mxu0 %vm165_vm0, %v142_v33  ;;  %95 = vst.msk [vmem:[%s9222_s7] sm:$0xff] %vm25_vm1, %v3644_v3  ;;  %96 = vst.msk [vmem:[%s9222_s7 + $0x8] sm:$0xff] %vm25_vm1, %v3644_v3 }
  0x25   :  { %3613 = vmatmul.mubr.msk.f32.gmra.mrb[12].mxu1 %vm165_vm0, %v158_v34  ;;  %3591 = vmatprep.mubr.msk.f32.mxu0 %vm165_vm0, %v143_v35  ;;  %97 = vst.msk [vmem:[%s9222_s7 + $0x10] sm:$0xff] %vm25_vm1, %v3644_v3  ;;  %98 = vst.msk [vmem:[%s9222_s7 + $0x18] sm:$0xff] %vm25_vm1, %v3644_v3 }
  0x26   :  { %3615 = vmatprep.mubr.msk.f32.mxu1 %vm165_vm0, %v159_v36  ;;  %99 = vst.msk [vmem:[%s9222_s7 + $0x20] sm:$0xff] %vm25_vm1, %v3644_v3  ;;  %100 = vst.msk [vmem:[%s9222_s7 + $0x28] sm:$0xff] %vm25_vm1, %v3644_v3 }
  0x27   :  { %101 = vst.msk [vmem:[%s9222_s7 + $0x30] sm:$0xff] %vm25_vm1, %v3644_v3  ;;  %102 = vst.msk [vmem:[%s9222_s7 + $0x38] sm:$0xff] %vm25_vm1, %v3644_v3 }
  0x28   :  { %3592 = vmatmul.mubr.msk.f32.gmra.mrb[14].mxu0 %vm165_vm0, %v144_v37  ;;  %103 = vst.msk [vmem:[%s9222_s7 + $0x40] sm:$0xff] %vm25_vm1, %v3644_v3  ;;  %104 = vst.msk [vmem:[%s9222_s7 + $0x48] sm:$0xff] %vm25_vm1, %v3644_v3  ;;  %v514_v37 = vld [vmem:[%s9221_s6 + $0x1c0] sm:$0xff] }
  0x29   :  { %3616 = vmatmul.mubr.msk.f32.gmra.mrb[14].mxu1 %vm165_vm0, %v160_v38  ;;  %105 = vst.msk [vmem:[%s9222_s7 + $0x50] sm:$0xff] %vm25_vm1, %v3644_v3  ;;  %106 = vst.msk [vmem:[%s9222_s7 + $0x58] sm:$0xff] %vm25_vm1, %v3644_v3  ;;  %v498_v38 = vld [vmem:[%s9221_s6 + $0xb0] sm:$0xff] }
  0x2a   :  { %107 = vst.msk [vmem:[%s9222_s7 + $0x60] sm:$0xff] %vm25_vm1, %v3644_v3  ;;  %108 = vst.msk [vmem:[%s9222_s7 + $0x68] sm:$0xff] %vm25_vm1, %v3644_v3 }
  0x2b   :  { %109 = vst.msk [vmem:[%s9222_s7 + $0x70] sm:$0xff] %vm25_vm1, %v3644_v3  ;;  %110 = vst.msk [vmem:[%s9222_s7 + $0x78] sm:$0xff] %vm25_vm1, %v3644_v3 }
  0x2c   :  { %111 = vst.msk [vmem:[%s9222_s7 + $0x80] sm:$0xff] %vm25_vm1, %v3644_v3  ;;  %112 = vst.msk [vmem:[%s9222_s7 + $0x88] sm:$0xff] %vm25_vm1, %v3644_v3 }
  0x2d   :  { %114 = vst.msk [vmem:[%s9222_s7 + $0x98] sm:$0xff] %vm25_vm1, %v3644_v3  ;;  %115 = vst.msk [vmem:[%s9222_s7 + $0xa0] sm:$0xff] %vm25_vm1, %v3644_v3 }
  0x2e   :  { %116 = vst.msk [vmem:[%s9222_s7 + $0xa8] sm:$0xff] %vm25_vm1, %v3644_v3  ;;  %117 = vst.msk [vmem:[%s9222_s7 + $0xb0] sm:$0xff] %vm25_vm1, %v3644_v3 }
  0x2f   :  { %118 = vst.msk [vmem:[%s9222_s7 + $0xb8] sm:$0xff] %vm25_vm1, %v3644_v3  ;;  %119 = vst.msk [vmem:[%s9222_s7 + $0xc0] sm:$0xff] %vm25_vm1, %v3644_v3 }
  0x30   :  { %120 = vst.msk [vmem:[%s9222_s7 + $0xc8] sm:$0xff] %vm25_vm1, %v3644_v3  ;;  %121 = vst.msk [vmem:[%s9222_s7 + $0xd0] sm:$0xff] %vm25_vm1, %v3644_v3 }
  0x31   :  { %122 = vst.msk [vmem:[%s9222_s7 + $0xd8] sm:$0xff] %vm25_vm1, %v3644_v3  ;;  %123 = vst.msk [vmem:[%s9222_s7 + $0xe0] sm:$0xff] %vm25_vm1, %v3644_v3 }
  0x32   :  { %124 = vst.msk [vmem:[%s9222_s7 + $0xe8] sm:$0xff] %vm25_vm1, %v3644_v3  ;;  %125 = vst.msk [vmem:[%s9222_s7 + $0xf0] sm:$0xff] %vm25_vm1, %v3644_v3 }
  0x33   :  { %126 = vst.msk [vmem:[%s9222_s7 + $0xf8] sm:$0xff] %vm25_vm1, %v3644_v3  ;;  %127 = vst.msk [vmem:[%s9222_s7 + $0x100] sm:$0xff] %vm25_vm1, %v3644_v3 }
  0x34   :  { %128 = vst.msk [vmem:[%s9222_s7 + $0x108] sm:$0xff] %vm25_vm1, %v3644_v3 }
  0xdf   :  { %v4352_v43 = vpop.f32.mrb[0].mxu0 }
  0xe0   :  { %v4354_v44 = vpop.f32.mrb[0].mxu1  ;;  %v520_v45 = vadd.f32 %v4352_v43, %v488_v39  ;;  %649 = vrot.lane.b32.xlu0 %v4352_v43, %s3645_s20  ;;  %v4364_v48 = vpop.f32.mrb[1].mxu0 }
  0xe1   :  { %v536_v46 = vadd.f32 %v4354_v44, %v504_v40  ;;  %681 = vrot.lane.b32.xlu1 %v4354_v44, %s3645_s20  ;;  %v4360_v47 = vpop.f32.mrb[1].mxu1  ;;  %v519_v50 = vadd.f32 %v487_v42, %v4364_v48 }
  0xe2   :  { %v535_v49 = vadd.f32 %v503_v41, %v4360_v47  ;;  %552 = vst.msk [vmem:[%s9221_s6 + $0x10] sm:$0xff] %vm25_vm1, %v520_v45 }
  0xe3   :  { %568 = vst.msk [vmem:[%s9221_s6 + $0x120] sm:$0xff] %vm25_vm1, %v536_v46  ;;  %551 = vst.msk [vmem:[%s9221_s6] sm:$0xff] %vm25_vm1, %v519_v50  ;;  %v4396_v55 = vpop.f32.mrb[2].mxu0  ;;  %v500_v50 = vld [vmem:[%s9221_s6 + $0xd0] sm:$0xff] }
  0xe4   :  { %567 = vst.msk [vmem:[%s9221_s6 + $0x110] sm:$0xff] %vm25_vm1, %v535_v49  ;;  %v4398_v56 = vpop.f32.mrb[2].mxu1  ;;  %873 = vrot.lane.b32.xlu0 %v4354_v44, %s3646_s12  ;;  %v522_v57 = vadd.f32 %v4396_v55, %v490_v51  ;;  %v4405_v58 = vpop.f32.mrb[3].mxu0  ;;  %v516_v49 = vld [vmem:[%s9221_s6 + $0x1e0] sm:$0xff] }
  0xe5   :  { %841 = vrot.lane.b32.xlu1 %v4352_v43, %s3646_s12  ;;  %v538_v59 = vadd.f32 %v4398_v56, %v506_v52  ;;  %v4408_v60 = vpop.f32.mrb[3].mxu1  ;;  %v521_v61 = vadd.f32 %v489_v53, %v4405_v58 }
  0xe6   :  { %v537_v62 = vadd.f32 %v505_v54, %v4408_v60  ;;  %554 = vst.msk [vmem:[%s9221_s6 + $0x30] sm:$0xff] %vm25_vm1, %v522_v57 }
  0xe7   :  { %570 = vst.msk [vmem:[%s9221_s6 + $0x140] sm:$0xff] %vm25_vm1, %v538_v59  ;;  %553 = vst.msk [vmem:[%s9221_s6 + $0x20] sm:$0xff] %vm25_vm1, %v521_v61  ;;  %v4440_v3 = vpop.f32.mrb[4].mxu0  ;;  %v600_v59 = vld [vmem:[%s9222_s7 + $0x90] sm:$0xff] }
  0xe8   :  { %569 = vst.msk [vmem:[%s9221_s6 + $0x130] sm:$0xff] %vm25_vm1, %v537_v62  ;;  %v4442_v4 = vpop.f32.mrb[4].mxu1  ;;  %1066 = vrot.lane.b32.xlu0 %v4354_v44, %s3647_s29  ;;  %v524_v5 = vadd.f32 %v4440_v3, %v492_v63  ;;  %v4450_v7 = vpop.f32.mrb[5].mxu0 }
  0xe9   :  { %1034 = vrot.lane.b32.xlu1 %v4352_v43, %s3647_s29  ;;  %v540_v6 = vadd.f32 %v4442_v4, %v508_v0  ;;  %v4452_v8 = vpop.f32.mrb[5].mxu1  ;;  %v523_v9 = vadd.f32 %v491_v1, %v4450_v7 }
  0xea   :  { %v539_v10 = vadd.f32 %v507_v2, %v4452_v8  ;;  %556 = vst.msk [vmem:[%s9221_s6 + $0x50] sm:$0xff] %vm25_vm1, %v524_v5 }
  0xeb   :  { %572 = vst.msk [vmem:[%s9221_s6 + $0x160] sm:$0xff] %vm25_vm1, %v540_v6  ;;  %555 = vst.msk [vmem:[%s9221_s6 + $0x40] sm:$0xff] %vm25_vm1, %v523_v9  ;;  %v4486_v16 = vpop.f32.mrb[6].mxu0  ;;  %v501_v9 = vld [vmem:[%s9221_s6 + $0xe0] sm:$0xff] }
  0xec   :  { %571 = vst.msk [vmem:[%s9221_s6 + $0x150] sm:$0xff] %vm25_vm1, %v539_v10  ;;  %v4484_v15 = vpop.f32.mrb[6].mxu1  ;;  %1451 = vrot.lane.b32.xlu0 %v4354_v44, %s3648_s0  ;;  %v526_v18 = vadd.f32 %v4486_v16, %v494_v12  ;;  %v4494_v19 = vpop.f32.mrb[7].mxu0  ;;  %v517_v10 = vld [vmem:[%s9221_s6 + $0x1f0] sm:$0xff] }
  0xed   :  { %1419 = vrot.lane.b32.xlu1 %v4352_v43, %s3648_s0  ;;  %v542_v17 = vadd.f32 %v4484_v15, %v510_v11  ;;  %v4496_v20 = vpop.f32.mrb[7].mxu1  ;;  %v525_v21 = vadd.f32 %v493_v13, %v4494_v19  ;;  %v808_v12 = vld [vmem:[%s9221_s6 + $0x11] sm:$0xff]  ;;  %v824_v13 = vld [vmem:[%s9221_s6 + $0x121] sm:$0xff] }
  0xee   :  { %v541_v22 = vadd.f32 %v509_v14, %v4496_v20  ;;  %558 = vst.msk [vmem:[%s9221_s6 + $0x70] sm:$0xff] %vm25_vm1, %v526_v18 }
  0xef   :  { %574 = vst.msk [vmem:[%s9221_s6 + $0x180] sm:$0xff] %vm25_vm1, %v542_v17  ;;  %557 = vst.msk [vmem:[%s9221_s6 + $0x60] sm:$0xff] %vm25_vm1, %v525_v21  ;;  %v4530_v24 = vpop.f32.mrb[8].mxu0 }
  0xf0   :  { %573 = vst.msk [vmem:[%s9221_s6 + $0x170] sm:$0xff] %vm25_vm1, %v541_v22  ;;  %1227 = vrot.lane.b32.xlu0 %v4352_v43, %s3649_s10  ;;  %v4528_v23 = vpop.f32.mrb[8].mxu1  ;;  %v4542_v27 = vpop.f32.mrb[9].mxu0  ;;  %v528_v30 = vadd.f32 %v4530_v24, %v496_v26  ;;  %v497_v43 = vld [vmem:[%s9221_s6 + $0xa0] sm:$0xff] }
  0xf1   :  { %1259 = vrot.lane.b32.xlu1 %v4354_v44, %s3649_s10  ;;  %v4544_v28 = vpop.f32.mrb[9].mxu1  ;;  %v544_v29 = vadd.f32 %v4528_v23, %v512_v25  ;;  %v527_v33 = vadd.f32 %v495_v31, %v4542_v27  ;;  %v513_v44 = vld [vmem:[%s9221_s6 + $0x1b0] sm:$0xff] }
  0xf2   :  { %v543_v34 = vadd.f32 %v511_v32, %v4544_v28  ;;  %560 = vst.msk [vmem:[%s9221_s6 + $0x90] sm:$0xff] %vm25_vm1, %v528_v30 }
  0xf3   :  { %576 = vst.msk [vmem:[%s9221_s6 + $0x1a0] sm:$0xff] %vm25_vm1, %v544_v29  ;;  %559 = vst.msk [vmem:[%s9221_s6 + $0x80] sm:$0xff] %vm25_vm1, %v527_v33  ;;  %v4602_v36 = vpop.f32.mrb[10].mxu0  ;;  %v583_v33 = vld [vmem:[%s9222_s7] sm:$0xff] }
  0xf4   :  { %647 = vrot.lane.b32.xlu0 %v4364_v48, %s3645_s20  ;;  %575 = vst.msk [vmem:[%s9221_s6 + $0x190] sm:$0xff] %vm25_vm1, %v543_v34  ;;  %v4600_v35 = vpop.f32.mrb[10].mxu1  ;;  %v4614_v39 = vpop.f32.mrb[11].mxu0  ;;  %v530_v42 = vadd.f32 %v4602_v36, %v498_v38 }
  0xf5   :  { %1032 = vrot.lane.b32.xlu1 %v4364_v48, %s3647_s29  ;;  %v4616_v40 = vpop.f32.mrb[11].mxu1  ;;  %v546_v41 = vadd.f32 %v4600_v35, %v514_v37  ;;  %v529_v45 = vadd.f32 %v497_v43, %v4614_v39  ;;  %v599_v43 = vld [vmem:[%s9222_s7 + $0x88] sm:$0xff] }
  0xf6   :  { %v545_v46 = vadd.f32 %v513_v44, %v4616_v40  ;;  %562 = vst.msk [vmem:[%s9221_s6 + $0xb0] sm:$0xff] %vm25_vm1, %v530_v42 }
  0xf7   :  { %578 = vst.msk [vmem:[%s9221_s6 + $0x1c0] sm:$0xff] %vm25_vm1, %v546_v41  ;;  %561 = vst.msk [vmem:[%s9221_s6 + $0xa0] sm:$0xff] %vm25_vm1, %v529_v45  ;;  %v807_v45 = vld [vmem:[%s9221_s6 + $0x1] sm:$0xff] }
  0xf8   :  { %679 = vrot.lane.b32.xlu0 %v4360_v47, %s3645_s20  ;;  %577 = vst.msk [vmem:[%s9221_s6 + $0x1b0] sm:$0xff] %vm25_vm1, %v545_v46 }
  0xf9   :  { %839 = vrot.lane.b32.xlu1 %v4364_v48, %s3646_s12 }
  0xfc   :  { %1064 = vrot.lane.b32.xlu0 %v4360_v47, %s3647_s29 }
  0xfd   :  { %1417 = vrot.lane.b32.xlu1 %v4364_v48, %s3648_s0 }
 0x100   :  { %871 = vrot.lane.b32.xlu0 %v4360_v47, %s3646_s12 }
 0x101   :  { %1225 = vrot.lane.b32.xlu1 %v4364_v48, %s3649_s10  ;;  %v4674_v48 = vpop.f32.mrb[12].mxu0 }
 0x102   :  { %v4686_v51 = vpop.f32.mrb[13].mxu0  ;;  %v532_v54 = vadd.f32 %v4674_v48, %v500_v50 }
 0x103   :  { %v4744_v2 = vpop.f32.mrb[14].mxu0 }
 0x104   :  { %1449 = vrot.lane.b32.xlu0 %v4360_v47, %s3648_s0  ;;  %564 = vst.msk [vmem:[%s9221_s6 + $0xd0] sm:$0xff] %vm25_vm1, %v532_v54  ;;  %v4756_v5 = vpop.f32.mrb[15].mxu0 }
 0x105   :  { %653 = vrot.lane.b32.xlu1 %v4396_v55, %s3645_s20  ;;  %v533_v17 = vadd.f32 %v501_v9, %v4756_v5 }
 0x107   :  { %565 = vst.msk [vmem:[%s9221_s6 + $0xe0] sm:$0xff] %vm25_vm1, %v533_v17 }
 0x108   :  { %1257 = vrot.lane.b32.xlu0 %v4360_v47, %s3649_s10  ;;  %v4672_v47 = vpop.f32.mrb[12].mxu1 }
 0x109   :  { %845 = vrot.lane.b32.xlu1 %v4396_v55, %s3646_s12  ;;  %v4688_v52 = vpop.f32.mrb[13].mxu1  ;;  %v548_v53 = vadd.f32 %v4672_v47, %v516_v49 }
 0x10a   :  { %v4742_v1 = vpop.f32.mrb[14].mxu1 }
 0x10b   :  { %580 = vst.msk [vmem:[%s9221_s6 + $0x1e0] sm:$0xff] %vm25_vm1, %v548_v53  ;;  %v4758_v6 = vpop.f32.mrb[15].mxu1 }
 0x10c   :  { %877 = vrot.lane.b32.xlu0 %v4398_v56, %s3646_s12  ;;  %v549_v18 = vadd.f32 %v517_v10, %v4758_v6 }
 0x10d   :  { %1038 = vrot.lane.b32.xlu1 %v4396_v55, %s3647_s29 }
 0x10e   :  { %581 = vst.msk [vmem:[%s9221_s6 + $0x1f0] sm:$0xff] %vm25_vm1, %v549_v18 }
 0x110   :  { %1070 = vrot.lane.b32.xlu0 %v4398_v56, %s3647_s29 }
 0x111   :  { %1423 = vrot.lane.b32.xlu1 %v4396_v55, %s3648_s0 }
 0x114   :  { %1455 = vrot.lane.b32.xlu0 %v4398_v56, %s3648_s0 }
 0x115   :  { %685 = vrot.lane.b32.xlu1 %v4398_v56, %s3645_s20 }
 0x118   :  { %1231 = vrot.lane.b32.xlu0 %v4396_v55, %s3649_s10  ;;  %v499_v55 = vld [vmem:[%s9221_s6 + $0xc0] sm:$0xff] }
 0x119   :  { %1263 = vrot.lane.b32.xlu1 %v4398_v56, %s3649_s10  ;;  %v515_v56 = vld [vmem:[%s9221_s6 + $0x1d0] sm:$0xff]  ;;  %v531_v57 = vadd.f32 %v499_v55, %v4686_v51 }
 0x11b   :  { %563 = vst.msk [vmem:[%s9221_s6 + $0xc0] sm:$0xff] %vm25_vm1, %v531_v57 }
 0x11c   :  { %683 = vrot.lane.b32.xlu0 %v4408_v60, %s3645_s20 }
 0x11d   :  { %651 = vrot.lane.b32.xlu1 %v4405_v58, %s3645_s20 }
 0x120   :  { %875 = vrot.lane.b32.xlu0 %v4408_v60, %s3646_s12 }
 0x121   :  { %843 = vrot.lane.b32.xlu1 %v4405_v58, %s3646_s12 }
 0x124   :  { %1068 = vrot.lane.b32.xlu0 %v4408_v60, %s3647_s29 }
 0x125   :  { %1036 = vrot.lane.b32.xlu1 %v4405_v58, %s3647_s29 }
 0x128   :  { %1453 = vrot.lane.b32.xlu0 %v4408_v60, %s3648_s0 }
 0x129   :  { %1421 = vrot.lane.b32.xlu1 %v4405_v58, %s3648_s0 }
 0x12c   :  { %1261 = vrot.lane.b32.xlu0 %v4408_v60, %s3649_s10  ;;  %v584_v60 = vld [vmem:[%s9222_s7 + $0x8] sm:$0xff] }
 0x12d   :  { %1229 = vrot.lane.b32.xlu1 %v4405_v58, %s3649_s10  ;;  %v547_v58 = vadd.f32 %v515_v56, %v4688_v52 }
 0x12f   :  { %579 = vst.msk [vmem:[%s9221_s6 + $0x1d0] sm:$0xff] %vm25_vm1, %v547_v58 }
 0x130   :  { %881 = vrot.lane.b32.xlu0 %v4442_v4, %s3646_s12 }
 0x131   :  { %657 = vrot.lane.b32.xlu1 %v4440_v3, %s3645_s20 }
 0x134   :  { %1074 = vrot.lane.b32.xlu0 %v4442_v4, %s3647_s29 }
 0x135   :  { %849 = vrot.lane.b32.xlu1 %v4440_v3, %s3646_s12 }
 0x138   :  { %1459 = vrot.lane.b32.xlu0 %v4442_v4, %s3648_s0 }
 0x139   :  { %1042 = vrot.lane.b32.xlu1 %v4440_v3, %s3647_s29 }
 0x13c   :  { %1235 = vrot.lane.b32.xlu0 %v4440_v3, %s3649_s10 }
 0x13d   :  { %1427 = vrot.lane.b32.xlu1 %v4440_v3, %s3648_s0  ;;  %v518_v3 = vld [vmem:[%s9221_s6 + $0x200] sm:$0xff] }
 0x140   :  { %655 = vrot.lane.b32.xlu0 %v4450_v7, %s3645_s20 }
 0x141   :  { %689 = vrot.lane.b32.xlu1 %v4442_v4, %s3645_s20 }
 0x144   :  { %879 = vrot.lane.b32.xlu0 %v4452_v8, %s3646_s12 }
 0x145   :  { %1267 = vrot.lane.b32.xlu1 %v4442_v4, %s3649_s10  ;;  %v502_v4 = vld [vmem:[%s9221_s6 + $0xf0] sm:$0xff] }
 0x148   :  { %1072 = vrot.lane.b32.xlu0 %v4452_v8, %s3647_s29 }
 0x149   :  { %847 = vrot.lane.b32.xlu1 %v4450_v7, %s3646_s12 }
 0x14c   :  { %1457 = vrot.lane.b32.xlu0 %v4452_v8, %s3648_s0 }
 0x14d   :  { %1040 = vrot.lane.b32.xlu1 %v4450_v7, %s3647_s29 }
 0x150   :  { %687 = vrot.lane.b32.xlu0 %v4452_v8, %s3645_s20 }
 0x151   :  { %1425 = vrot.lane.b32.xlu1 %v4450_v7, %s3648_s0 }
 0x152   :  { %v650_v62 = vpop.permute.xlu0 %649 }
 0x153   :  { %v682_v61 = vpop.permute.xlu1 %681  ;;  %v744_v0 = vadd.f32 %v650_v62, %v584_v60 }
 0x154   :  { %v760_v63 = vadd.f32 %v682_v61, %v600_v59  ;;  %1265 = vrot.lane.b32.xlu0 %v4452_v8, %s3649_s10  ;;  %v534_v8 = vadd.f32 %v4744_v2, %v502_v4  ;;  %v823_v61 = vld [vmem:[%s9221_s6 + $0x111] sm:$0xff] }
 0x155   :  { %1233 = vrot.lane.b32.xlu1 %v4450_v7, %s3649_s10  ;;  %776 = vst.msk [vmem:[%s9222_s7 + $0x8] sm:$0xff] %vm25_vm1, %v744_v0  ;;  %v550_v7 = vadd.f32 %v4742_v1, %v518_v3  ;;  %v586_v3 = vld [vmem:[%s9222_s7 + $0x18] sm:$0xff] }
 0x156   :  { %792 = vst.msk [vmem:[%s9222_s7 + $0x90] sm:$0xff] %vm25_vm1, %v760_v63  ;;  %v874_v14 = vpop.permute.xlu0 %873  ;;  %566 = vst.msk [vmem:[%s9221_s6 + $0xf0] sm:$0xff] %vm25_vm1, %v534_v8 }
 0x157   :  { %v842_v11 = vpop.permute.xlu1 %841  ;;  %v952_v22 = vadd.f32 %v874_v14, %v824_v13  ;;  %582 = vst.msk [vmem:[%s9221_s6 + $0x200] sm:$0xff] %vm25_vm1, %v550_v7  ;;  %v810_v14 = vld [vmem:[%s9221_s6 + $0x31] sm:$0xff] }
 0x158   :  { %v936_v21 = vadd.f32 %v842_v11, %v808_v12  ;;  %885 = vrot.lane.b32.xlu0 %v4484_v15, %s3646_s12 }
 0x159   :  { %661 = vrot.lane.b32.xlu1 %v4486_v16, %s3645_s20  ;;  %984 = vst.msk [vmem:[%s9221_s6 + $0x121] sm:$0xff] %vm25_vm1, %v952_v22 }
 0x15a   :  { %968 = vst.msk [vmem:[%s9221_s6 + $0x11] sm:$0xff] %vm25_vm1, %v936_v21  ;;  %v4814_v26 = vpop.permute.xlu0 %1066 }
 0x15b   :  { %v4812_v25 = vpop.permute.xlu1 %1034 }
 0x15c   :  { %1078 = vrot.lane.b32.xlu0 %v4484_v15, %s3647_s29  ;;  %v3394_v59 = vld [vmem:[%s9222_s7 + $0x8] sm:$0xff] }
 0x15d   :  { %853 = vrot.lane.b32.xlu1 %v4486_v16, %s3646_s12  ;;  %v3410_v11 = vld [vmem:[%s9222_s7 + $0x90] sm:$0xff] }
 0x15e   :  { %v4822_v30 = vpop.permute.xlu0 %1451 }
 0x15f   :  { %v4820_v29 = vpop.permute.xlu1 %1419 }
 0x160   :  { %1463 = vrot.lane.b32.xlu0 %v4484_v15, %s3648_s0  ;;  %v3346_v54 = vld [vmem:[%s9221_s6 + $0x120] sm:$0xff] }
 0x161   :  { %1046 = vrot.lane.b32.xlu1 %v4486_v16, %s3647_s29  ;;  %v3330_v34 = vld [vmem:[%s9221_s6 + $0x10] sm:$0xff] }
 0x162   :  { %v4830_v32 = vpop.permute.xlu0 %1227 }
 0x163   :  { %v4828_v31 = vpop.permute.xlu1 %1259 }
 0x164   :  { %659 = vrot.lane.b32.xlu0 %v4494_v19, %s3645_s20 }
 0x165   :  { %1431 = vrot.lane.b32.xlu1 %v4486_v16, %s3648_s0 }
 0x166   :  { %v648_v38 = vpop.permute.xlu0 %647 }
 0x167   :  { %v1033_v37 = vpop.permute.xlu1 %1032  ;;  %v743_v42 = vadd.f32 %v648_v38, %v583_v33 }
 0x168   :  { %v1128_v41 = vadd.f32 %v3330_v34, %v1033_v37  ;;  %883 = vrot.lane.b32.xlu0 %v4496_v20, %s3646_s12  ;;  %v602_v37 = vld [vmem:[%s9222_s7 + $0xa0] sm:$0xff] }
 0x169   :  { %693 = vrot.lane.b32.xlu1 %v4484_v15, %s3645_s20  ;;  %775 = vst.msk [vmem:[%s9222_s7] sm:$0xff] %vm25_vm1, %v743_v42 }
 0x16a   :  { %3362 = vst.msk [vmem:[%s9221_s6 + $0x10] sm:$0xff] %vm25_vm1, %v1128_v41  ;;  %v680_v46 = vpop.permute.xlu0 %679 }
 0x16b   :  { %v840_v44 = vpop.permute.xlu1 %839  ;;  %v759_v50 = vadd.f32 %v680_v46, %v599_v43  ;;  %v585_v46 = vld [vmem:[%s9222_s7 + $0x10] sm:$0xff] }
 0x16c   :  { %v935_v49 = vadd.f32 %v840_v44, %v807_v45  ;;  %1076 = vrot.lane.b32.xlu0 %v4496_v20, %s3647_s29  ;;  %v601_v45 = vld [vmem:[%s9222_s7 + $0x98] sm:$0xff] }
 0x16d   :  { %851 = vrot.lane.b32.xlu1 %v4494_v19, %s3646_s12  ;;  %791 = vst.msk [vmem:[%s9222_s7 + $0x88] sm:$0xff] %vm25_vm1, %v759_v50 }
 0x16e   :  { %967 = vst.msk [vmem:[%s9221_s6 + $0x1] sm:$0xff] %vm25_vm1, %v935_v49  ;;  %v1065_v55 = vpop.permute.xlu0 %1064 }
 0x16f   :  { %v1418_v53 = vpop.permute.xlu1 %1417  ;;  %v1144_v56 = vadd.f32 %v3346_v54, %v1065_v55  ;;  %v825_v55 = vld [vmem:[%s9221_s6 + $0x131] sm:$0xff] }
 0x170   :  { %1461 = vrot.lane.b32.xlu0 %v4496_v20, %s3648_s0 }
 0x171   :  { %v3458_v57 = vld [vmem:[%s9221_s6 + $0x11] sm:$0xff]  ;;  %1044 = vrot.lane.b32.xlu1 %v4494_v19, %s3647_s29  ;;  %3378 = vst.msk [vmem:[%s9221_s6 + $0x120] sm:$0xff] %vm25_vm1, %v1144_v56 }
 0x172   :  { %v1513_v58 = vadd.f32 %v3458_v57, %v1418_v53  ;;  %v872_v62 = vpop.permute.xlu0 %871 }
 0x173   :  { %v1226_v60 = vpop.permute.xlu1 %1225  ;;  %v951_v0 = vadd.f32 %v872_v62, %v823_v61 }
 0x174   :  { %3490 = vst.msk [vmem:[%s9221_s6 + $0x11] sm:$0xff] %vm25_vm1, %v1513_v58  ;;  %v1321_v63 = vadd.f32 %v3394_v59, %v1226_v60  ;;  %691 = vrot.lane.b32.xlu0 %v4496_v20, %s3645_s20  ;;  %v809_v58 = vld [vmem:[%s9221_s6 + $0x21] sm:$0xff] }
 0x175   :  { %1429 = vrot.lane.b32.xlu1 %v4494_v19, %s3648_s0  ;;  %983 = vst.msk [vmem:[%s9221_s6 + $0x111] sm:$0xff] %vm25_vm1, %v951_v0 }
 0x176   :  { %3426 = vst.msk [vmem:[%s9222_s7 + $0x8] sm:$0xff] %vm25_vm1, %v1321_v63  ;;  %v1450_v4 = vpop.permute.xlu0 %1449 }
 0x177   :  { %v654_v7 = vpop.permute.xlu1 %653 }
 0x178   :  { %v746_v8 = vadd.f32 %v654_v7, %v586_v3  ;;  %v3474_v9 = vld [vmem:[%s9221_s6 + $0x121] sm:$0xff]  ;;  %1269 = vrot.lane.b32.xlu0 %v4496_v20, %s3649_s10 }
 0x179   :  { %1237 = vrot.lane.b32.xlu1 %v4494_v19, %s3649_s10  ;;  %v1529_v10 = vadd.f32 %v3474_v9, %v1450_v4  ;;  %v826_v20 = vld [vmem:[%s9221_s6 + $0x141] sm:$0xff] }
 0x17a   :  { %778 = vst.msk [vmem:[%s9222_s7 + $0x18] sm:$0xff] %vm25_vm1, %v746_v8  ;;  %v1258_v12 = vpop.permute.xlu0 %1257 }
 0x17b   :  { %v846_v13 = vpop.permute.xlu1 %845  ;;  %3506 = vst.msk [vmem:[%s9221_s6 + $0x121] sm:$0xff] %vm25_vm1, %v1529_v10  ;;  %v1337_v19 = vadd.f32 %v3410_v11, %v1258_v12 }
 0x17c   :  { %v938_v17 = vadd.f32 %v846_v13, %v810_v14  ;;  %889 = vrot.lane.b32.xlu0 %v4528_v23, %s3646_s12 }
 0x17d   :  { %665 = vrot.lane.b32.xlu1 %v4530_v24, %s3645_s20  ;;  %3442 = vst.msk [vmem:[%s9222_s7 + $0x90] sm:$0xff] %vm25_vm1, %v1337_v19 }
 0x17e   :  { %970 = vst.msk [vmem:[%s9221_s6 + $0x31] sm:$0xff] %vm25_vm1, %v938_v17  ;;  %v878_v18 = vpop.permute.xlu0 %877 }
 0x17f   :  { %v4947_v21 = vpop.permute.xlu1 %1038  ;;  %v954_v22 = vadd.f32 %v878_v18, %v826_v20 }
 0x180   :  { %1050 = vrot.lane.b32.xlu0 %v4530_v24, %s3647_s29 }
 0x181   :  { %857 = vrot.lane.b32.xlu1 %v4530_v24, %s3646_s12  ;;  %986 = vst.msk [vmem:[%s9221_s6 + $0x141] sm:$0xff] %vm25_vm1, %v954_v22  ;;  %v3396_v20 = vld [vmem:[%s9222_s7 + $0x18] sm:$0xff] }
 0x182   :  { %v4957_v33 = vpop.permute.xlu0 %1070 }
 0x183   :  { %v4959_v34 = vpop.permute.xlu1 %1423 }
 0x184   :  { %1467 = vrot.lane.b32.xlu0 %v4528_v23, %s3648_s0 }
 0x185   :  { %1082 = vrot.lane.b32.xlu1 %v4528_v23, %s3647_s29  ;;  %v3332_v63 = vld [vmem:[%s9221_s6 + $0x30] sm:$0xff] }
 0x186   :  { %v4968_v38 = vpop.permute.xlu0 %1455 }
 0x187   :  { %v686_v41 = vpop.permute.xlu1 %685 }
 0x188   :  { %v762_v42 = vadd.f32 %v686_v41, %v602_v37  ;;  %663 = vrot.lane.b32.xlu0 %v4542_v27, %s3645_s20  ;;  %v3348_v61 = vld [vmem:[%s9221_s6 + $0x140] sm:$0xff]  ;;  %v588_v41 = vld [vmem:[%s9222_s7 + $0x28] sm:$0xff] }
 0x189   :  { %1435 = vrot.lane.b32.xlu1 %v4530_v24, %s3648_s0 }
 0x18a   :  { %794 = vst.msk [vmem:[%s9222_s7 + $0xa0] sm:$0xff] %vm25_vm1, %v762_v42  ;;  %v4978_v43 = vpop.permute.xlu0 %1231 }
 0x18b   :  { %v4980_v44 = vpop.permute.xlu1 %1263 }
 0x18c   :  { %887 = vrot.lane.b32.xlu0 %v4544_v28, %s3646_s12 }
 0x18d   :  { %697 = vrot.lane.b32.xlu1 %v4528_v23, %s3645_s20 }
 0x18e   :  { %v684_v49 = vpop.permute.xlu0 %683 }
 0x18f   :  { %v652_v50 = vpop.permute.xlu1 %651  ;;  %v761_v53 = vadd.f32 %v684_v49, %v601_v45 }
 0x190   :  { %v745_v54 = vadd.f32 %v652_v50, %v585_v46  ;;  %1080 = vrot.lane.b32.xlu0 %v4544_v28, %s3647_s29  ;;  %v828_v46 = vld [vmem:[%s9221_s6 + $0x161] sm:$0xff] }
 0x191   :  { %855 = vrot.lane.b32.xlu1 %v4542_v27, %s3646_s12  ;;  %793 = vst.msk [vmem:[%s9222_s7 + $0x98] sm:$0xff] %vm25_vm1, %v761_v53  ;;  %v3412_v17 = vld [vmem:[%s9222_s7 + $0xa0] sm:$0xff] }
 0x192   :  { %777 = vst.msk [vmem:[%s9222_s7 + $0x10] sm:$0xff] %vm25_vm1, %v745_v54  ;;  %v876_v56 = vpop.permute.xlu0 %875 }
 0x193   :  { %v844_v57 = vpop.permute.xlu1 %843  ;;  %v953_v59 = vadd.f32 %v876_v56, %v825_v55 }
 0x194   :  { %v937_v60 = vadd.f32 %v844_v57, %v809_v58  ;;  %1465 = vrot.lane.b32.xlu0 %v4544_v28, %s3648_s0 }
 0x195   :  { %1048 = vrot.lane.b32.xlu1 %v4542_v27, %s3647_s29  ;;  %985 = vst.msk [vmem:[%s9221_s6 + $0x131] sm:$0xff] %vm25_vm1, %v953_v59  ;;  %v812_v59 = vld [vmem:[%s9221_s6 + $0x51] sm:$0xff] }
 0x196   :  { %969 = vst.msk [vmem:[%s9221_s6 + $0x21] sm:$0xff] %vm25_vm1, %v937_v60  ;;  %v1069_v62 = vpop.permute.xlu0 %1068 }
 0x197   :  { %v1037_v0 = vpop.permute.xlu1 %1036  ;;  %v1146_v3 = vadd.f32 %v3348_v61, %v1069_v62 }
 0x198   :  { %v1130_v4 = vadd.f32 %v3332_v63, %v1037_v0  ;;  %v3411_v7 = vld [vmem:[%s9222_s7 + $0x98] sm:$0xff]  ;;  %695 = vrot.lane.b32.xlu0 %v4544_v28, %s3645_s20 }
 0x199   :  { %v3395_v8 = vld [vmem:[%s9222_s7 + $0x10] sm:$0xff]  ;;  %1433 = vrot.lane.b32.xlu1 %v4542_v27, %s3648_s0  ;;  %v1338_v9 = vadd.f32 %v3411_v7, %v4828_v31  ;;  %3380 = vst.msk [vmem:[%s9221_s6 + $0x140] sm:$0xff] %vm25_vm1, %v1146_v3 }
 0x19a   :  { %v1322_v10 = vadd.f32 %v3395_v8, %v4830_v32  ;;  %3364 = vst.msk [vmem:[%s9221_s6 + $0x30] sm:$0xff] %vm25_vm1, %v1130_v4  ;;  %v1454_v11 = vpop.permute.xlu0 %1453  ;;  %v604_v3 = vld [vmem:[%s9222_s7 + $0xb0] sm:$0xff]  ;;  %v587_v4 = vld [vmem:[%s9222_s7 + $0x20] sm:$0xff] }
 0x19b   :  { %v1422_v12 = vpop.permute.xlu1 %1421  ;;  %3443 = vst.msk [vmem:[%s9222_s7 + $0x98] sm:$0xff] %vm25_vm1, %v1338_v9 }
 0x19c   :  { %3427 = vst.msk [vmem:[%s9222_s7 + $0x10] sm:$0xff] %vm25_vm1, %v1322_v10  ;;  %v3347_v31 = vld [vmem:[%s9221_s6 + $0x130] sm:$0xff]  ;;  %893 = vrot.lane.b32.xlu0 %v4600_v35, %s3646_s12 }
 0x19d   :  { %v3331_v32 = vld [vmem:[%s9221_s6 + $0x20] sm:$0xff]  ;;  %669 = vrot.lane.b32.xlu1 %v4602_v36, %s3645_s20  ;;  %v1145_v13 = vadd.f32 %v3347_v31, %v4814_v26 }
 0x19e   :  { %v1129_v14 = vadd.f32 %v3331_v32, %v4812_v25  ;;  %v1262_v19 = vpop.permute.xlu0 %1261 }
 0x19f   :  { %v1230_v18 = vpop.permute.xlu1 %1229  ;;  %3379 = vst.msk [vmem:[%s9221_s6 + $0x130] sm:$0xff] %vm25_vm1, %v1145_v13  ;;  %v1339_v25 = vadd.f32 %v3412_v17, %v1262_v19 }
 0x1a0   :  { %3363 = vst.msk [vmem:[%s9221_s6 + $0x20] sm:$0xff] %vm25_vm1, %v1129_v14  ;;  %v1323_v26 = vadd.f32 %v3396_v20, %v1230_v18  ;;  %v3476_v22 = vld [vmem:[%s9221_s6 + $0x141] sm:$0xff]  ;;  %1054 = vrot.lane.b32.xlu0 %v4602_v36, %s3647_s29 }
 0x1a1   :  { %v3460_v37 = vld [vmem:[%s9221_s6 + $0x31] sm:$0xff]  ;;  %861 = vrot.lane.b32.xlu1 %v4602_v36, %s3646_s12  ;;  %v1531_v42 = vadd.f32 %v3476_v22, %v1454_v11  ;;  %3444 = vst.msk [vmem:[%s9222_s7 + $0xa0] sm:$0xff] %vm25_vm1, %v1339_v25  ;;  %v811_v14 = vld [vmem:[%s9221_s6 + $0x41] sm:$0xff] }
 0x1a2   :  { %v1515_v45 = vadd.f32 %v3460_v37, %v1422_v12  ;;  %3428 = vst.msk [vmem:[%s9222_s7 + $0x18] sm:$0xff] %vm25_vm1, %v1323_v26  ;;  %v882_v49 = vpop.permute.xlu0 %881  ;;  %v827_v12 = vld [vmem:[%s9221_s6 + $0x151] sm:$0xff] }
 0x1a3   :  { %v658_v50 = vpop.permute.xlu1 %657  ;;  %3508 = vst.msk [vmem:[%s9221_s6 + $0x141] sm:$0xff] %vm25_vm1, %v1531_v42  ;;  %v956_v53 = vadd.f32 %v882_v49, %v828_v46 }
 0x1a4   :  { %3492 = vst.msk [vmem:[%s9221_s6 + $0x31] sm:$0xff] %vm25_vm1, %v1515_v45  ;;  %v748_v54 = vadd.f32 %v658_v50, %v588_v41  ;;  %1471 = vrot.lane.b32.xlu0 %v4600_v35, %s3648_s0 }
 0x1a5   :  { %1086 = vrot.lane.b32.xlu1 %v4600_v35, %s3647_s29  ;;  %988 = vst.msk [vmem:[%s9221_s6 + $0x161] sm:$0xff] %vm25_vm1, %v956_v53 }
 0x1a6   :  { %780 = vst.msk [vmem:[%s9222_s7 + $0x28] sm:$0xff] %vm25_vm1, %v748_v54  ;;  %v3475_v55 = vld [vmem:[%s9221_s6 + $0x131] sm:$0xff]  ;;  %v5132_v57 = vpop.permute.xlu0 %1074 }
 0x1a7   :  { %v3459_v56 = vld [vmem:[%s9221_s6 + $0x21] sm:$0xff]  ;;  %v850_v58 = vpop.permute.xlu1 %849  ;;  %v1530_v60 = vadd.f32 %v3475_v55, %v4822_v30 }
 0x1a8   :  { %v1514_v61 = vadd.f32 %v3459_v56, %v4820_v29  ;;  %v940_v62 = vadd.f32 %v850_v58, %v812_v59  ;;  %667 = vrot.lane.b32.xlu0 %v4614_v39, %s3645_s20 }
 0x1a9   :  { %701 = vrot.lane.b32.xlu1 %v4600_v35, %s3645_s20  ;;  %3507 = vst.msk [vmem:[%s9221_s6 + $0x131] sm:$0xff] %vm25_vm1, %v1530_v60 }
 0x1aa   :  { %3491 = vst.msk [vmem:[%s9221_s6 + $0x21] sm:$0xff] %vm25_vm1, %v1514_v61  ;;  %972 = vst.msk [vmem:[%s9221_s6 + $0x51] sm:$0xff] %vm25_vm1, %v940_v62  ;;  %v5155_v29 = vpop.permute.xlu0 %1459 }
 0x1ab   :  { %v5157_v30 = vpop.permute.xlu1 %1042 }
 0x1ac   :  { %891 = vrot.lane.b32.xlu0 %v4616_v40, %s3646_s12  ;;  %v3350_v19 = vld [vmem:[%s9221_s6 + $0x160] sm:$0xff] }
 0x1ad   :  { %1439 = vrot.lane.b32.xlu1 %v4602_v36, %s3648_s0  ;;  %v3398_v58 = vld [vmem:[%s9222_s7 + $0x28] sm:$0xff] }
 0x1ae   :  { %v5163_v63 = vpop.permute.xlu0 %1235 }
 0x1af   :  { %v5165_v0 = vpop.permute.xlu1 %1427 }
 0x1b0   :  { %1052 = vrot.lane.b32.xlu0 %v4614_v39, %s3647_s29 }
 0x1b1   :  { %859 = vrot.lane.b32.xlu1 %v4614_v39, %s3646_s12  ;;  %v3334_v22 = vld [vmem:[%s9221_s6 + $0x50] sm:$0xff] }
 0x1b2   :  { %v656_v8 = vpop.permute.xlu0 %655 }
 0x1b3   :  { %v690_v7 = vpop.permute.xlu1 %689  ;;  %v747_v10 = vadd.f32 %v656_v8, %v587_v4  ;;  %v590_v4 = vld [vmem:[%s9222_s7 + $0x38] sm:$0xff] }
 0x1b4   :  { %v764_v9 = vadd.f32 %v690_v7, %v604_v3  ;;  %699 = vrot.lane.b32.xlu0 %v4616_v40, %s3645_s20 }
 0x1b5   :  { %1084 = vrot.lane.b32.xlu1 %v4616_v40, %s3647_s29  ;;  %779 = vst.msk [vmem:[%s9222_s7 + $0x20] sm:$0xff] %vm25_vm1, %v747_v10 }
 0x1b6   :  { %796 = vst.msk [vmem:[%s9222_s7 + $0xb0] sm:$0xff] %vm25_vm1, %v764_v9  ;;  %v880_v31 = vpop.permute.xlu0 %879  ;;  %v830_v9 = vld [vmem:[%s9221_s6 + $0x181] sm:$0xff] }
 0x1b7   :  { %v5189_v11 = vpop.permute.xlu1 %1267  ;;  %v955_v32 = vadd.f32 %v880_v31, %v827_v12 }
 0x1b8   :  { %1469 = vrot.lane.b32.xlu0 %v4616_v40, %s3648_s0 }
 0x1b9   :  { %1437 = vrot.lane.b32.xlu1 %v4614_v39, %s3648_s0  ;;  %987 = vst.msk [vmem:[%s9221_s6 + $0x151] sm:$0xff] %vm25_vm1, %v955_v32 }
 0x1ba   :  { %v1073_v17 = vpop.permute.xlu0 %1072 }
 0x1bb   :  { %v848_v13 = vpop.permute.xlu1 %847  ;;  %v1148_v18 = vadd.f32 %v3350_v19, %v1073_v17 }
 0x1bc   :  { %v939_v20 = vadd.f32 %v848_v13, %v811_v14  ;;  %v3397_v25 = vld [vmem:[%s9222_s7 + $0x20] sm:$0xff]  ;;  %897 = vrot.lane.b32.xlu0 %v4672_v47, %s3646_s12 }
 0x1bd   :  { %673 = vrot.lane.b32.xlu1 %v4674_v48, %s3645_s20  ;;  %3382 = vst.msk [vmem:[%s9221_s6 + $0x160] sm:$0xff] %vm25_vm1, %v1148_v18  ;;  %v1324_v26 = vadd.f32 %v3397_v25, %v4978_v43  ;;  %v603_v43 = vld [vmem:[%s9222_s7 + $0xa8] sm:$0xff]  ;;  %v3414_v60 = vld [vmem:[%s9222_s7 + $0xb0] sm:$0xff] }
 0x1be   :  { %971 = vst.msk [vmem:[%s9221_s6 + $0x41] sm:$0xff] %vm25_vm1, %v939_v20  ;;  %v1458_v41 = vpop.permute.xlu0 %1457  ;;  %v814_v20 = vld [vmem:[%s9221_s6 + $0x71] sm:$0xff] }
 0x1bf   :  { %v1041_v37 = vpop.permute.xlu1 %1040  ;;  %3429 = vst.msk [vmem:[%s9222_s7 + $0x20] sm:$0xff] %vm25_vm1, %v1324_v26 }
 0x1c0   :  { %v1132_v42 = vadd.f32 %v3334_v22, %v1041_v37  ;;  %v3349_v45 = vld [vmem:[%s9221_s6 + $0x150] sm:$0xff]  ;;  %1058 = vrot.lane.b32.xlu0 %v4674_v48, %s3647_s29 }
 0x1c1   :  { %865 = vrot.lane.b32.xlu1 %v4674_v48, %s3646_s12  ;;  %v1147_v46 = vadd.f32 %v3349_v45, %v4957_v33  ;;  %v589_v22 = vld [vmem:[%s9222_s7 + $0x30] sm:$0xff]  ;;  %v606_v45 = vld [vmem:[%s9222_s7 + $0xc0] sm:$0xff] }
 0x1c2   :  { %3366 = vst.msk [vmem:[%s9221_s6 + $0x50] sm:$0xff] %vm25_vm1, %v1132_v42  ;;  %v688_v50 = vpop.permute.xlu0 %687 }
 0x1c3   :  { %v1426_v49 = vpop.permute.xlu1 %1425  ;;  %3381 = vst.msk [vmem:[%s9221_s6 + $0x150] sm:$0xff] %vm25_vm1, %v1147_v46  ;;  %v763_v53 = vadd.f32 %v688_v50, %v603_v43  ;;  %v829_v46 = vld [vmem:[%s9221_s6 + $0x171] sm:$0xff] }
 0x1c4   :  { %v3478_v54 = vld [vmem:[%s9221_s6 + $0x161] sm:$0xff]  ;;  %671 = vrot.lane.b32.xlu0 %v4686_v51, %s3645_s20 }
 0x1c5   :  { %v3333_v33 = vld [vmem:[%s9221_s6 + $0x40] sm:$0xff]  ;;  %1090 = vrot.lane.b32.xlu1 %v4672_v47, %s3647_s29  ;;  %v1533_v56 = vadd.f32 %v3478_v54, %v1458_v41  ;;  %795 = vst.msk [vmem:[%s9222_s7 + $0xa8] sm:$0xff] %vm25_vm1, %v763_v53 }
 0x1c6   :  { %v1131_v55 = vadd.f32 %v3333_v33, %v4947_v21  ;;  %v1266_v61 = vpop.permute.xlu0 %1265  ;;  %v813_v54 = vld [vmem:[%s9221_s6 + $0x61] sm:$0xff] }
 0x1c7   :  { %v1234_v59 = vpop.permute.xlu1 %1233  ;;  %3510 = vst.msk [vmem:[%s9221_s6 + $0x161] sm:$0xff] %vm25_vm1, %v1533_v56  ;;  %v1341_v62 = vadd.f32 %v3414_v60, %v1266_v61 }
 0x1c8   :  { %3365 = vst.msk [vmem:[%s9221_s6 + $0x40] sm:$0xff] %vm25_vm1, %v1131_v55  ;;  %v1325_v21 = vadd.f32 %v3398_v58, %v1234_v59  ;;  %895 = vrot.lane.b32.xlu0 %v4688_v52, %s3646_s12 }
 0x1c9   :  { %v3462_v3 = vld [vmem:[%s9221_s6 + $0x51] sm:$0xff]  ;;  %705 = vrot.lane.b32.xlu1 %v4672_v47, %s3645_s20  ;;  %3446 = vst.msk [vmem:[%s9222_s7 + $0xb0] sm:$0xff] %vm25_vm1, %v1341_v62 }
 0x1ca   :  { %v1517_v7 = vadd.f32 %v3462_v3, %v1426_v49  ;;  %3430 = vst.msk [vmem:[%s9222_s7 + $0x28] sm:$0xff] %vm25_vm1, %v1325_v21  ;;  %v3477_v8 = vld [vmem:[%s9221_s6 + $0x151] sm:$0xff]  ;;  %v886_v10 = vpop.permute.xlu0 %885 }
 0x1cb   :  { %v662_v12 = vpop.permute.xlu1 %661  ;;  %v1532_v31 = vadd.f32 %v3477_v8, %v4968_v38  ;;  %v958_v32 = vadd.f32 %v886_v10, %v830_v9  ;;  %v605_v8 = vld [vmem:[%s9222_s7 + $0xb8] sm:$0xff] }
 0x1cc   :  { %3494 = vst.msk [vmem:[%s9221_s6 + $0x51] sm:$0xff] %vm25_vm1, %v1517_v7  ;;  %v750_v13 = vadd.f32 %v662_v12, %v590_v4  ;;  %v3413_v14 = vld [vmem:[%s9222_s7 + $0xa8] sm:$0xff]  ;;  %1056 = vrot.lane.b32.xlu0 %v4686_v51, %s3647_s29 }
 0x1cd   :  { %863 = vrot.lane.b32.xlu1 %v4686_v51, %s3646_s12  ;;  %3509 = vst.msk [vmem:[%s9221_s6 + $0x151] sm:$0xff] %vm25_vm1, %v1532_v31  ;;  %v1340_v38 = vadd.f32 %v3413_v14, %v4980_v44  ;;  %990 = vst.msk [vmem:[%s9221_s6 + $0x181] sm:$0xff] %vm25_vm1, %v958_v32 }
 0x1ce   :  { %782 = vst.msk [vmem:[%s9222_s7 + $0x38] sm:$0xff] %vm25_vm1, %v750_v13  ;;  %v5331_v17 = vpop.permute.xlu0 %1078 }
 0x1cf   :  { %v3461_v19 = vld [vmem:[%s9221_s6 + $0x41] sm:$0xff]  ;;  %v854_v44 = vpop.permute.xlu1 %853  ;;  %3445 = vst.msk [vmem:[%s9222_s7 + $0xa8] sm:$0xff] %vm25_vm1, %v1340_v38 }
 0x1d0   :  { %v1516_v18 = vadd.f32 %v3461_v19, %v4959_v34  ;;  %v942_v25 = vadd.f32 %v854_v44, %v814_v20  ;;  %703 = vrot.lane.b32.xlu0 %v4688_v52, %s3645_s20  ;;  %v592_v44 = vld [vmem:[%s9222_s7 + $0x48] sm:$0xff] }
 0x1d1   :  { %1088 = vrot.lane.b32.xlu1 %v4688_v52, %s3647_s29 }
 0x1d2   :  { %3493 = vst.msk [vmem:[%s9221_s6 + $0x41] sm:$0xff] %vm25_vm1, %v1516_v18  ;;  %974 = vst.msk [vmem:[%s9221_s6 + $0x71] sm:$0xff] %vm25_vm1, %v942_v25  ;;  %v5353_v34 = vpop.permute.xlu0 %1463 }
 0x1d3   :  { %v5355_v26 = vpop.permute.xlu1 %1046 }
 0x1d4   :  { %901 = vrot.lane.b32.xlu0 %v4742_v1, %s3646_s12  ;;  %v3352_v55 = vld [vmem:[%s9221_s6 + $0x180] sm:$0xff] }
 0x1d5   :  { %677 = vrot.lane.b32.xlu1 %v4744_v2, %s3645_s20  ;;  %v3400_v32 = vld [vmem:[%s9222_s7 + $0x38] sm:$0xff] }
 0x1d6   :  { %v660_v41 = vpop.permute.xlu0 %659 }
 0x1d7   :  { %v5364_v37 = vpop.permute.xlu1 %1431  ;;  %v749_v42 = vadd.f32 %v660_v41, %v589_v22 }
 0x1d8   :  { %675 = vrot.lane.b32.xlu0 %v4756_v5, %s3645_s20 }
 0x1d9   :  { %869 = vrot.lane.b32.xlu1 %v4744_v2, %s3646_s12  ;;  %781 = vst.msk [vmem:[%s9222_s7 + $0x30] sm:$0xff] %vm25_vm1, %v749_v42  ;;  %v3336_v21 = vld [vmem:[%s9221_s6 + $0x70] sm:$0xff] }
 0x1da   :  { %v884_v49 = vpop.permute.xlu0 %883 }
 0x1db   :  { %v694_v43 = vpop.permute.xlu1 %693  ;;  %v957_v53 = vadd.f32 %v884_v49, %v829_v46 }
 0x1dc   :  { %v766_v50 = vadd.f32 %v694_v43, %v606_v45  ;;  %899 = vrot.lane.b32.xlu0 %v4758_v6, %s3646_s12 }
 0x1dd   :  { %867 = vrot.lane.b32.xlu1 %v4756_v5, %s3646_s12  ;;  %989 = vst.msk [vmem:[%s9221_s6 + $0x171] sm:$0xff] %vm25_vm1, %v957_v53 }
 0x1de   :  { %798 = vst.msk [vmem:[%s9222_s7 + $0xc0] sm:$0xff] %vm25_vm1, %v766_v50  ;;  %v1077_v56 = vpop.permute.xlu0 %1076  ;;  %v816_v50 = vld [vmem:[%s9221_s6 + $0x91] sm:$0xff] }
 0x1df   :  { %v852_v33 = vpop.permute.xlu1 %851  ;;  %v1150_v59 = vadd.f32 %v3352_v55, %v1077_v56  ;;  %v591_v55 = vld [vmem:[%s9222_s7 + $0x40] sm:$0xff] }
 0x1e0   :  { %v941_v58 = vadd.f32 %v852_v33, %v813_v54  ;;  %v3399_v60 = vld [vmem:[%s9222_s7 + $0x30] sm:$0xff]  ;;  %1060 = vrot.lane.b32.xlu0 %v4756_v5, %s3647_s29 }
 0x1e1   :  { %1092 = vrot.lane.b32.xlu1 %v4758_v6, %s3647_s29  ;;  %v1326_v61 = vadd.f32 %v3399_v60, %v5163_v63  ;;  %3384 = vst.msk [vmem:[%s9221_s6 + $0x180] sm:$0xff] %vm25_vm1, %v1150_v59  ;;  %v608_v60 = vld [vmem:[%s9222_s7 + $0xd0] sm:$0xff] }
 0x1e2   :  { %973 = vst.msk [vmem:[%s9221_s6 + $0x61] sm:$0xff] %vm25_vm1, %v941_v58  ;;  %v1462_v3 = vpop.permute.xlu0 %1461 }
 0x1e3   :  { %v1045_v62 = vpop.permute.xlu1 %1044  ;;  %3431 = vst.msk [vmem:[%s9222_s7 + $0x30] sm:$0xff] %vm25_vm1, %v1326_v61  ;;  %v831_v61 = vld [vmem:[%s9221_s6 + $0x191] sm:$0xff] }
 0x1e4   :  { %v1134_v63 = vadd.f32 %v3336_v21, %v1045_v62  ;;  %v3351_v4 = vld [vmem:[%s9221_s6 + $0x170] sm:$0xff]  ;;  %1239 = vrot.lane.b32.xlu0 %v4486_v16, %s3649_s10  ;;  %v815_v62 = vld [vmem:[%s9221_s6 + $0x81] sm:$0xff] }
 0x1e5   :  { %1271 = vrot.lane.b32.xlu1 %v4484_v15, %s3649_s10  ;;  %v1149_v7 = vadd.f32 %v3351_v4, %v5132_v57 }
 0x1e6   :  { %3368 = vst.msk [vmem:[%s9221_s6 + $0x70] sm:$0xff] %vm25_vm1, %v1134_v63  ;;  %v692_v15 = vpop.permute.xlu0 %691 }
 0x1e7   :  { %v1430_v9 = vpop.permute.xlu1 %1429  ;;  %3383 = vst.msk [vmem:[%s9221_s6 + $0x170] sm:$0xff] %vm25_vm1, %v1149_v7  ;;  %v765_v16 = vadd.f32 %v692_v15, %v605_v8 }
 0x1e8   :  { %v3480_v10 = vld [vmem:[%s9221_s6 + $0x181] sm:$0xff]  ;;  %707 = vrot.lane.b32.xlu0 %v4758_v6, %s3645_s20 }
 0x1e9   :  { %v3335_v57 = vld [vmem:[%s9221_s6 + $0x60] sm:$0xff]  ;;  %1241 = vrot.lane.b32.xlu1 %v4542_v27, %s3649_s10  ;;  %v1535_v31 = vadd.f32 %v3480_v10, %v1462_v3  ;;  %797 = vst.msk [vmem:[%s9222_s7 + $0xb8] sm:$0xff] %vm25_vm1, %v765_v16 }
 0x1ea   :  { %v1133_v12 = vadd.f32 %v3335_v57, %v5157_v30  ;;  %v3416_v30 = vld [vmem:[%s9222_s7 + $0xc0] sm:$0xff]  ;;  %v1270_v14 = vpop.permute.xlu0 %1269 }
 0x1eb   :  { %v1238_v13 = vpop.permute.xlu1 %1237  ;;  %3512 = vst.msk [vmem:[%s9221_s6 + $0x181] sm:$0xff] %vm25_vm1, %v1535_v31  ;;  %v1343_v19 = vadd.f32 %v3416_v30, %v1270_v14 }
 0x1ec   :  { %3367 = vst.msk [vmem:[%s9221_s6 + $0x60] sm:$0xff] %vm25_vm1, %v1133_v12  ;;  %v1327_v27 = vadd.f32 %v3400_v32, %v1238_v13  ;;  %1273 = vrot.lane.b32.xlu0 %v4544_v28, %s3649_s10  ;;  %v832_v28 = vld [vmem:[%s9221_s6 + $0x1a1] sm:$0xff] }
 0x1ed   :  { %v3464_v38 = vld [vmem:[%s9221_s6 + $0x71] sm:$0xff]  ;;  %1441 = vrot.lane.b32.xlu1 %v4686_v51, %s3648_s0  ;;  %3448 = vst.msk [vmem:[%s9222_s7 + $0xc0] sm:$0xff] %vm25_vm1, %v1343_v19 }
 0x1ee   :  { %v1519_v20 = vadd.f32 %v3464_v38, %v1430_v9  ;;  %3432 = vst.msk [vmem:[%s9222_s7 + $0x38] sm:$0xff] %vm25_vm1, %v1327_v27  ;;  %v3479_v18 = vld [vmem:[%s9221_s6 + $0x171] sm:$0xff]  ;;  %v890_v41 = vpop.permute.xlu0 %889 }
 0x1ef   :  { %v666_v25 = vpop.permute.xlu1 %665  ;;  %v1534_v22 = vadd.f32 %v3479_v18, %v5155_v29  ;;  %v960_v45 = vadd.f32 %v890_v41, %v832_v28  ;;  %v818_v18 = vld [vmem:[%s9221_s6 + $0xb1] sm:$0xff] }
 0x1f0   :  { %3496 = vst.msk [vmem:[%s9221_s6 + $0x71] sm:$0xff] %vm25_vm1, %v1519_v20  ;;  %v752_v42 = vadd.f32 %v666_v25, %v592_v44  ;;  %v3415_v29 = vld [vmem:[%s9222_s7 + $0xb8] sm:$0xff]  ;;  %1473 = vrot.lane.b32.xlu0 %v4688_v52, %s3648_s0 }
 0x1f1   :  { %709 = vrot.lane.b32.xlu1 %v4742_v1, %s3645_s20  ;;  %3511 = vst.msk [vmem:[%s9221_s6 + $0x171] sm:$0xff] %vm25_vm1, %v1534_v22  ;;  %v1342_v46 = vadd.f32 %v3415_v29, %v5189_v11  ;;  %992 = vst.msk [vmem:[%s9221_s6 + $0x1a1] sm:$0xff] %vm25_vm1, %v960_v45 }
 0x1f2   :  { %784 = vst.msk [vmem:[%s9222_s7 + $0x48] sm:$0xff] %vm25_vm1, %v752_v42  ;;  %v5525_v33 = vpop.permute.xlu0 %1050 }
 0x1f3   :  { %v3463_v43 = vld [vmem:[%s9221_s6 + $0x61] sm:$0xff]  ;;  %v858_v49 = vpop.permute.xlu1 %857  ;;  %3447 = vst.msk [vmem:[%s9222_s7 + $0xb8] sm:$0xff] %vm25_vm1, %v1342_v46 }
 0x1f4   :  { %v1518_v53 = vadd.f32 %v3463_v43, %v5165_v0  ;;  %v944_v54 = vadd.f32 %v858_v49, %v816_v50  ;;  %1062 = vrot.lane.b32.xlu0 %v4744_v2, %s3647_s29  ;;  %v833_v49 = vld [vmem:[%s9221_s6 + $0x1b1] sm:$0xff] }
 0x1f5   :  { %1094 = vrot.lane.b32.xlu1 %v4742_v1, %s3647_s29 }
 0x1f6   :  { %3495 = vst.msk [vmem:[%s9221_s6 + $0x61] sm:$0xff] %vm25_vm1, %v1518_v53  ;;  %976 = vst.msk [vmem:[%s9221_s6 + $0x91] sm:$0xff] %vm25_vm1, %v944_v54  ;;  %v5545_v11 = vpop.permute.xlu0 %1467 }
 0x1f7   :  { %v5543_v0 = vpop.permute.xlu1 %1082 }
 0x1f8   :  { %1243 = vrot.lane.b32.xlu0 %v4530_v24, %s3649_s10  ;;  %v3354_v63 = vld [vmem:[%s9221_s6 + $0x1a0] sm:$0xff] }
 0x1f9   :  { %1275 = vrot.lane.b32.xlu1 %v4528_v23, %s3649_s10 }
 0x1fa   :  { %v664_v58 = vpop.permute.xlu0 %663 }
 0x1fb   :  { %v5554_v56 = vpop.permute.xlu1 %1435  ;;  %v751_v59 = vadd.f32 %v664_v58, %v591_v55 }
 0x1fc   :  { %1245 = vrot.lane.b32.xlu0 %v4614_v39, %s3649_s10 }
 0x1fd   :  { %1277 = vrot.lane.b32.xlu1 %v4616_v40, %s3649_s10  ;;  %783 = vst.msk [vmem:[%s9222_s7 + $0x40] sm:$0xff] %vm25_vm1, %v751_v59  ;;  %v3338_v8 = vld [vmem:[%s9221_s6 + $0x90] sm:$0xff] }
 0x1fe   :  { %v888_v21 = vpop.permute.xlu0 %887 }
 0x1ff   :  { %v698_v23 = vpop.permute.xlu1 %697  ;;  %v959_v40 = vadd.f32 %v888_v21, %v831_v61 }
 0x200   :  { %v768_v24 = vadd.f32 %v698_v23, %v608_v60  ;;  %1443 = vrot.lane.b32.xlu0 %v4674_v48, %s3648_s0  ;;  %v609_v60 = vld [vmem:[%s9222_s7 + $0xd8] sm:$0xff] }
 0x201   :  { %1475 = vrot.lane.b32.xlu1 %v4672_v47, %s3648_s0  ;;  %991 = vst.msk [vmem:[%s9221_s6 + $0x191] sm:$0xff] %vm25_vm1, %v959_v40  ;;  %v1615_v40 = vld [vmem:[%s9221_s6 + $0x110] sm:$0xff] }
 0x202   :  { %800 = vst.msk [vmem:[%s9222_s7 + $0xd0] sm:$0xff] %vm25_vm1, %v768_v24  ;;  %v1081_v4 = vpop.permute.xlu0 %1080 }
 0x203   :  { %v856_v39 = vpop.permute.xlu1 %855  ;;  %v1152_v7 = vadd.f32 %v3354_v63, %v1081_v4  ;;  %v5770_v63 = vld [vmem:[%s9223_s2] ss:$0 sm:$0xff] }
 0x204   :  { %v943_v3 = vadd.f32 %v856_v39, %v815_v62  ;;  %1247 = vrot.lane.b32.xlu0 %v4602_v36, %s3649_s10  ;;  %v607_v36 = vld [vmem:[%s9222_s7 + $0xc8] sm:$0xff]  ;;  %v1616_v39 = vld [vmem:[%s9221_s6 + $0x118] sm:$0x1]  ;;  %v1617_v4 = vld [vmem:[%s9221_s6 + $0x120] sm:$0xff] }
 0x205   :  { %1279 = vrot.lane.b32.xlu1 %v4600_v35, %s3649_s10  ;;  %3386 = vst.msk [vmem:[%s9221_s6 + $0x1a0] sm:$0xff] %vm25_vm1, %v1152_v7 }
 0x206   :  { %975 = vst.msk [vmem:[%s9221_s6 + $0x81] sm:$0xff] %vm25_vm1, %v943_v3  ;;  %v1466_v35 = vpop.permute.xlu0 %1465 }
 0x207   :  { %v1049_v9 = vpop.permute.xlu1 %1048 }
 0x208   :  { %v1136_v15 = vadd.f32 %v3338_v8, %v1049_v9  ;;  %v3353_v57 = vld [vmem:[%s9221_s6 + $0x190] sm:$0xff]  ;;  %1249 = vrot.lane.b32.xlu0 %v4686_v51, %s3649_s10  ;;  %v594_v51 = vld [vmem:[%s9222_s7 + $0x58] sm:$0xff]  ;;  %v5781_v9 = vadd.f32 %v5770_v63, %v1615_v40 }
 0x209   :  { %1281 = vrot.lane.b32.xlu1 %v4688_v52, %s3649_s10  ;;  %v1151_v10 = vadd.f32 %v3353_v57, %v5331_v17  ;;  %v596_v57 = vld [vmem:[%s9222_s7 + $0x68] sm:$0xff]  ;;  %v612_v40 = vld [vmem:[%s9222_s7 + $0xf0] sm:$0xff] }
 0x20a   :  { %3370 = vst.msk [vmem:[%s9221_s6 + $0x90] sm:$0xff] %vm25_vm1, %v1136_v15  ;;  %v696_v52 = vpop.permute.xlu0 %695  ;;  %v5784_v15 = vadd.f32 %v5770_v63, %v1616_v39 }
 0x20b   :  { %v1434_v16 = vpop.permute.xlu1 %1433  ;;  %3385 = vst.msk [vmem:[%s9221_s6 + $0x190] sm:$0xff] %vm25_vm1, %v1151_v10  ;;  %v767_v31 = vadd.f32 %v696_v52, %v607_v36  ;;  %v5797_v36 = vadd.f32 %v5770_v63, %v1617_v4  ;;  %v1621_v4 = vld [vmem:[%s9221_s6 + $0x140] sm:$0xff] }
 0x20c   :  { %v3482_v32 = vld [vmem:[%s9221_s6 + $0x1a1] sm:$0xff]  ;;  %1445 = vrot.lane.b32.xlu0 %v4756_v5, %s3648_s0 }
 0x20d   :  { %v3337_v12 = vld [vmem:[%s9221_s6 + $0x80] sm:$0xff]  ;;  %1477 = vrot.lane.b32.xlu1 %v4758_v6, %s3648_s0  ;;  %v1537_v13 = vadd.f32 %v3482_v32, %v1466_v35  ;;  %799 = vst.msk [vmem:[%s9222_s7 + $0xc8] sm:$0xff] %vm25_vm1, %v767_v31 }
 0x20e   :  { %v1135_v17 = vadd.f32 %v3337_v12, %v5355_v26  ;;  %v834_v26 = vld [vmem:[%s9221_s6 + $0x1c1] sm:$0xff]  ;;  %v894_v30 = vpop.permute.xlu0 %893 }
 0x20f   :  { %v670_v27 = vpop.permute.xlu1 %669  ;;  %3514 = vst.msk [vmem:[%s9221_s6 + $0x1a1] sm:$0xff] %vm25_vm1, %v1537_v13  ;;  %v962_v19 = vadd.f32 %v894_v30, %v834_v26  ;;  %v1581_v31 = vld [vmem:[%s9221_s6] sm:$0xff]  ;;  %v1618_v26 = vld [vmem:[%s9221_s6 + $0x128] sm:$0x1]  ;;  %v1619_v30 = vld [vmem:[%s9221_s6 + $0x130] sm:$0xff] }
 0x210   :  { %3369 = vst.msk [vmem:[%s9221_s6 + $0x80] sm:$0xff] %vm25_vm1, %v1135_v17  ;;  %v754_v14 = vadd.f32 %v670_v27, %v594_v51  ;;  %1251 = vrot.lane.b32.xlu0 %v4674_v48, %s3649_s10  ;;  %v1582_v51 = vld [vmem:[%s9221_s6 + $0x8] sm:$0x1]  ;;  %v1864_v17 = vsel %vm25_vm1, %v5781_v9, 0.0 }
 0x211   :  { %v3466_v38 = vld [vmem:[%s9221_s6 + $0x91] sm:$0xff]  ;;  %1283 = vrot.lane.b32.xlu1 %v4672_v47, %s3649_s10  ;;  %994 = vst.msk [vmem:[%s9221_s6 + $0x1c1] sm:$0xff] %vm25_vm1, %v962_v19  ;;  %v836_v32 = vld [vmem:[%s9221_s6 + $0x1e1] sm:$0xff]  ;;  %v1867_v19 = vsel %vm25_vm1, %v5797_v36, 0.0 }
 0x212   :  { %v1521_v44 = vadd.f32 %v3466_v38, %v1434_v16  ;;  %786 = vst.msk [vmem:[%s9222_s7 + $0x58] sm:$0xff] %vm25_vm1, %v754_v14  ;;  %v3481_v47 = vld [vmem:[%s9221_s6 + $0x191] sm:$0xff]  ;;  %v5676_v48 = vpop.permute.xlu0 %1054 }
 0x213   :  { %v862_v20 = vpop.permute.xlu1 %861  ;;  %v1536_v22 = vadd.f32 %v3481_v47, %v5353_v34 }
 0x214   :  { %3498 = vst.msk [vmem:[%s9221_s6 + $0x91] sm:$0xff] %vm25_vm1, %v1521_v44  ;;  %v946_v25 = vadd.f32 %v862_v20, %v818_v18  ;;  %1253 = vrot.lane.b32.xlu0 %v4756_v5, %s3649_s10  ;;  %v610_v5 = vld [vmem:[%s9222_s7 + $0xe0] sm:$0xff]  ;;  %v5840_v20 = vadd.f32 %v5770_v63, %v1581_v31  ;;  %v1583_v18 = vld [vmem:[%s9221_s6 + $0x10] sm:$0xff]  ;;  %v5939_v31 = vadd.f32 %v5770_v63, %v1621_v4 }
 0x215   :  { %1285 = vrot.lane.b32.xlu1 %v4758_v6, %s3649_s10  ;;  %3513 = vst.msk [vmem:[%s9221_s6 + $0x191] sm:$0xff] %vm25_vm1, %v1536_v22  ;;  %v820_v22 = vld [vmem:[%s9221_s6 + $0xd1] sm:$0xff] }
 0x216   :  { %978 = vst.msk [vmem:[%s9221_s6 + $0xb1] sm:$0xff] %vm25_vm1, %v946_v25  ;;  %v5697_v41 = vpop.permute.xlu0 %1471  ;;  %9444 = vst [vmem:[#allocation2_spill] sm:$0xff] %v5840_v20 }
 0x217   :  { %v3465_v34 = vld [vmem:[%s9221_s6 + $0x81] sm:$0xff]  ;;  %v5694_v28 = vpop.permute.xlu1 %1086 }
 0x218   :  { %v1520_v6 = vadd.f32 %v3465_v34, %v5364_v37  ;;  %1447 = vrot.lane.b32.xlu0 %v4744_v2, %s3648_s0  ;;  %v593_v37 = vld [vmem:[%s9222_s7 + $0x50] sm:$0xff]  ;;  %v3356_v23 = vld [vmem:[%s9221_s6 + $0x1c0] sm:$0xff]  ;;  %v5853_v34 = vadd.f32 %v5770_v63, %v1582_v51 }
 0x219   :  { %1479 = vrot.lane.b32.xlu1 %v4742_v1, %s3648_s0  ;;  %v819_v51 = vld [vmem:[%s9221_s6 + $0xc1] sm:$0xff] }
 0x21a   :  { %3497 = vst.msk [vmem:[%s9221_s6 + $0x81] sm:$0xff] %vm25_vm1, %v1520_v6  ;;  %v668_v29 = vpop.permute.xlu0 %667  ;;  %9445 = vst [vmem:[#allocation3_spill] sm:$0xff] %v5853_v34  ;;  %v5856_v6 = vadd.f32 %v5770_v63, %v1618_v26 }
 0x21b   :  { %v702_v42 = vpop.permute.xlu1 %701  ;;  %v753_v43 = vadd.f32 %v668_v29, %v593_v37 }
 0x21c   :  { %v770_v45 = vadd.f32 %v702_v42, %v610_v5  ;;  %1255 = vrot.lane.b32.xlu0 %v4744_v2, %s3649_s10  ;;  %v817_v2 = vld [vmem:[%s9221_s6 + $0xa1] sm:$0xff]  ;;  %v5859_v5 = vadd.f32 %v5770_v63, %v1619_v30 }
 0x21d   :  { %1287 = vrot.lane.b32.xlu1 %v4742_v1, %s3649_s10  ;;  %785 = vst.msk [vmem:[%s9222_s7 + $0x50] sm:$0xff] %vm25_vm1, %v753_v43  ;;  %v3340_v55 = vld [vmem:[%s9221_s6 + $0xb0] sm:$0xff] }
 0x21e   :  { %802 = vst.msk [vmem:[%s9222_s7 + $0xe0] sm:$0xff] %vm25_vm1, %v770_v45  ;;  %v892_v1 = vpop.permute.xlu0 %891 }
 0x21f   :  { %v5725_v46 = vpop.permute.xlu1 %1439  ;;  %v961_v50 = vadd.f32 %v892_v1, %v833_v49  ;;  %v5872_v49 = vadd.f32 %v5770_v63, %v1583_v18  ;;  %v595_v1 = vld [vmem:[%s9222_s7 + $0x60] sm:$0xff] }
 0x221   :  { %993 = vst.msk [vmem:[%s9221_s6 + $0x1b1] sm:$0xff] %vm25_vm1, %v961_v50  ;;  %9446 = vst [vmem:[#allocation4_spill] sm:$0xff] %v5872_v49  ;;  %v1791_v50 = vsel %vm25_vm1, %v5840_v20, 0.0  ;;  %v1794_v39 = vsel %vm25_vm1, %v5872_v49, 0.0 }
 0x222   :  { %v1053_v58 = vpop.permute.xlu0 %1052 }
 0x223   :  { %v860_v53 = vpop.permute.xlu1 %859  ;;  %v1138_v59 = vadd.f32 %v3340_v55, %v1053_v58  ;;  %v1869_v55 = vsel %vm27_vm2, %v5856_v6, 0.0  ;;  %v1871_v58 = vsel %vm25_vm1, %v5859_v5, 0.0 }
 0x224   :  { %v945_v54 = vadd.f32 %v860_v53, %v817_v2  ;;  %v1620_v53 = vld [vmem:[%s9221_s6 + $0x138] sm:$0x1] }
 0x225   :  { %3372 = vst.msk [vmem:[%s9221_s6 + $0xb0] sm:$0xff] %vm25_vm1, %v1138_v59 }
 0x226   :  { %977 = vst.msk [vmem:[%s9221_s6 + $0xa1] sm:$0xff] %vm25_vm1, %v945_v54  ;;  %v700_v21 = vpop.permute.xlu0 %699  ;;  %v1792_v54 = vsel %vm27_vm2, %v5853_v34, 0.0 }
 0x227   :  { %v1085_v24 = vpop.permute.xlu1 %1084  ;;  %v769_v62 = vadd.f32 %v700_v21, %v609_v60 }
 0x228   :  { %v1154_v61 = vadd.f32 %v3356_v23, %v1085_v24  ;;  %v3355_v3 = vld [vmem:[%s9221_s6 + $0x1b0] sm:$0xff]  ;;  %v1584_v23 = vld [vmem:[%s9221_s6 + $0x18] sm:$0x1] }
 0x229   :  { %v1153_v7 = vadd.f32 %v3355_v3, %v5543_v0  ;;  %801 = vst.msk [vmem:[%s9222_s7 + $0xd8] sm:$0xff] %vm25_vm1, %v769_v62  ;;  %v1793_v62 = vadd.f32 %v1792_v54, %v1791_v50 }
 0x22a   :  { %3388 = vst.msk [vmem:[%s9221_s6 + $0x1c0] sm:$0xff] %vm25_vm1, %v1154_v61  ;;  %v1470_v35 = vpop.permute.xlu0 %1469  ;;  %v1585_v61 = vld [vmem:[%s9221_s6 + $0x20] sm:$0xff] }
 0x22b   :  { %v1438_v8 = vpop.permute.xlu1 %1437  ;;  %3387 = vst.msk [vmem:[%s9221_s6 + $0x1b0] sm:$0xff] %vm25_vm1, %v1153_v7 }
 0x22c   :  { %v3468_v16 = vld [vmem:[%s9221_s6 + $0xb1] sm:$0xff] }
 0x22d   :  { %v3339_v0 = vld [vmem:[%s9221_s6 + $0xa0] sm:$0xff]  ;;  %v1523_v52 = vadd.f32 %v3468_v16, %v1438_v8  ;;  %v5928_v8 = vadd.f32 %v5770_v63, %v1584_v23  ;;  %v1795_v16 = vadd.f32 %v1794_v39, %v1793_v62  ;;  %v1588_v39 = vld [vmem:[%s9221_s6 + $0x38] sm:$0x1] }
 0x22e   :  { %v1137_v10 = vadd.f32 %v3339_v0, %v5525_v33  ;;  %v1865_v33 = vsel %vm27_vm2, %v5784_v15, 0.0  ;;  %v898_v13 = vpop.permute.xlu0 %897 }
 0x22f   :  { %v674_v12 = vpop.permute.xlu1 %673  ;;  %3500 = vst.msk [vmem:[%s9221_s6 + $0xb1] sm:$0xff] %vm25_vm1, %v1523_v52  ;;  %v964_v38 = vadd.f32 %v898_v13, %v836_v32  ;;  %v1866_v47 = vadd.f32 %v1865_v33, %v1864_v17  ;;  %9447 = vst [vmem:[#allocation5_spill] sm:$0xff] %v5928_v8  ;;  %v1586_v17 = vld [vmem:[%s9221_s6 + $0x28] sm:$0x1]  ;;  %v1623_v13 = vld [vmem:[%s9221_s6 + $0x150] sm:$0xff]  ;;  %v1796_v26 = vsel %vm27_vm2, %v5928_v8, 0.0 }
 0x230   :  { %3371 = vst.msk [vmem:[%s9221_s6 + $0xa0] sm:$0xff] %vm25_vm1, %v1137_v10  ;;  %v756_v27 = vadd.f32 %v674_v12, %v596_v57  ;;  %v835_v57 = vld [vmem:[%s9221_s6 + $0x1d1] sm:$0xff]  ;;  %v1622_v32 = vld [vmem:[%s9221_s6 + $0x148] sm:$0x1] }
 0x231   :  { %v3484_v14 = vld [vmem:[%s9221_s6 + $0x1c1] sm:$0xff]  ;;  %996 = vst.msk [vmem:[%s9221_s6 + $0x1e1] sm:$0xff] %vm25_vm1, %v964_v38  ;;  %v1868_v29 = vadd.f32 %v1867_v19, %v1866_v47  ;;  %v5969_v47 = vadd.f32 %v5770_v63, %v1622_v32 }
 0x232   :  { %v1539_v44 = vadd.f32 %v3484_v14, %v1470_v35  ;;  %788 = vst.msk [vmem:[%s9222_s7 + $0x68] sm:$0xff] %vm25_vm1, %v756_v27  ;;  %v3483_v37 = vld [vmem:[%s9221_s6 + $0x1b1] sm:$0xff]  ;;  %v5868_v42 = vpop.permute.xlu0 %1058  ;;  %v5931_v35 = vadd.f32 %v5770_v63, %v1585_v61 }
 0x233   :  { %v866_v25 = vpop.permute.xlu1 %865  ;;  %v1538_v43 = vadd.f32 %v3483_v37, %v5545_v11  ;;  %v1870_v24 = vadd.f32 %v1869_v55, %v1868_v29  ;;  %v5977_v37 = vadd.f32 %v5770_v63, %v1623_v13  ;;  %v1624_v55 = vld [vmem:[%s9221_s6 + $0x158] sm:$0x1] }
 0x234   :  { %3516 = vst.msk [vmem:[%s9221_s6 + $0x1c1] sm:$0xff] %vm25_vm1, %v1539_v44  ;;  %v948_v45 = vadd.f32 %v866_v25, %v820_v22  ;;  %9448 = vst [vmem:[#allocation6_spill] sm:$0xff] %v5931_v35  ;;  %v1798_v30 = vsel %vm25_vm1, %v5931_v35, 0.0  ;;  %v1797_v44 = vadd.f32 %v1796_v26, %v1795_v16  ;;  %v1875_v25 = vsel %vm25_vm1, %v5939_v31, 0.0 }
 0x235   :  { %3515 = vst.msk [vmem:[%s9221_s6 + $0x1b1] sm:$0xff] %vm25_vm1, %v1538_v43  ;;  %v1872_v3 = vadd.f32 %v1871_v58, %v1870_v24  ;;  %v5974_v22 = vadd.f32 %v5770_v63, %v1586_v17  ;;  %v1587_v43 = vld [vmem:[%s9221_s6 + $0x30] sm:$0xff]  ;;  %v1879_v61 = vsel %vm25_vm1, %v5977_v37, 0.0  ;;  %v6046_v17 = vadd.f32 %v5770_v63, %v1588_v39 }
 0x236   :  { %980 = vst.msk [vmem:[%s9221_s6 + $0xd1] sm:$0xff] %vm25_vm1, %v948_v45  ;;  %v672_v60 = vpop.permute.xlu0 %671  ;;  %v611_v45 = vld [vmem:[%s9222_s7 + $0xe8] sm:$0xff]  ;;  %v6005_v23 = vadd.f32 %v5770_v63, %v1587_v43 }
 0x237   :  { %v3467_v11 = vld [vmem:[%s9221_s6 + $0xa1] sm:$0xff]  ;;  %v5893_v2 = vpop.permute.xlu1 %1090  ;;  %v755_v21 = vadd.f32 %v672_v60, %v595_v1  ;;  %9449 = vst [vmem:[#allocation7_spill] sm:$0xff] %v5974_v22  ;;  %v1799_v1 = vadd.f32 %v1798_v30, %v1797_v44  ;;  %v1877_v60 = vsel %vm27_vm2, %v5969_v47, 0.0  ;;  %v1800_v24 = vsel %vm27_vm2, %v5974_v22, 0.0  ;;  %9451 = vst [vmem:[#allocation9_spill] sm:$0xff] %v6046_v17 }
 0x238   :  { %v1522_v59 = vadd.f32 %v3467_v11, %v5554_v56  ;;  %v5914_v56 = vadd.f32 %v5770_v63, %v1620_v53  ;;  %v3358_v50 = vld [vmem:[%s9221_s6 + $0x1e0] sm:$0xff]  ;;  %9450 = vst [vmem:[#allocation8_spill] sm:$0xff] %v6005_v23 }
 0x239   :  { %787 = vst.msk [vmem:[%s9222_s7 + $0x60] sm:$0xff] %vm25_vm1, %v755_v21  ;;  %v1801_v62 = vadd.f32 %v1800_v24, %v1799_v1  ;;  %v1804_v1 = vsel %vm27_vm2, %v6046_v17, 0.0 }
 0x23a   :  { %3499 = vst.msk [vmem:[%s9221_s6 + $0xa1] sm:$0xff] %vm25_vm1, %v1522_v59  ;;  %v896_v10 = vpop.permute.xlu0 %895  ;;  %v1873_v12 = vsel %vm27_vm2, %v5914_v56, 0.0  ;;  %v598_v59 = vld [vmem:[%s9222_s7 + $0x78] sm:$0xff] }
 0x23b   :  { %v706_v7 = vpop.permute.xlu1 %705  ;;  %v963_v52 = vadd.f32 %v896_v10, %v835_v57  ;;  %v1874_v33 = vadd.f32 %v1873_v12, %v1872_v3  ;;  %v1589_v3 = vld [vmem:[%s9221_s6 + $0x40] sm:$0xff] }
 0x23c   :  { %v772_v0 = vadd.f32 %v706_v7, %v612_v40  ;;  %v838_v57 = vld [vmem:[%s9221_s6 + $0x201] sm:$0xff]  ;;  %v6051_v32 = vadd.f32 %v5770_v63, %v1589_v3 }
 0x23d   :  { %995 = vst.msk [vmem:[%s9221_s6 + $0x1d1] sm:$0xff] %vm25_vm1, %v963_v52  ;;  %v3342_v38 = vld [vmem:[%s9221_s6 + $0xd0] sm:$0xff]  ;;  %v1876_v29 = vadd.f32 %v1875_v25, %v1874_v33  ;;  %v1802_v33 = vsel %vm25_vm1, %v6005_v23, 0.0  ;;  %v1590_v25 = vld [vmem:[%s9221_s6 + $0x48] sm:$0x1] }
 0x23e   :  { %804 = vst.msk [vmem:[%s9222_s7 + $0xf0] sm:$0xff] %vm25_vm1, %v772_v0  ;;  %v1057_v19 = vpop.permute.xlu0 %1056  ;;  %v6030_v0 = vadd.f32 %v5770_v63, %v1624_v55  ;;  %9452 = vst [vmem:[#allocation10_spill] sm:$0xff] %v6051_v32  ;;  %v1803_v26 = vadd.f32 %v1802_v33, %v1801_v62  ;;  %v821_v55 = vld [vmem:[%s9221_s6 + $0xe1] sm:$0xff] }
 0x23f   :  { %v864_v27 = vpop.permute.xlu1 %863  ;;  %v1140_v18 = vadd.f32 %v3342_v38, %v1057_v19  ;;  %v1878_v40 = vadd.f32 %v1877_v60, %v1876_v29  ;;  %v1626_v38 = vld [vmem:[%s9221_s6 + $0x168] sm:$0x1]  ;;  %v1627_v29 = vld [vmem:[%s9221_s6 + $0x170] sm:$0xff]  ;;  %v6110_v60 = vadd.f32 %v5770_v63, %v1590_v25  ;;  %v1629_v25 = vld [vmem:[%s9221_s6 + $0x180] sm:$0xff] }
 0x240   :  { %v947_v14 = vadd.f32 %v864_v27, %v819_v51  ;;  %v597_v27 = vld [vmem:[%s9222_s7 + $0x70] sm:$0xff]  ;;  %v6113_v24 = vadd.f32 %v5770_v63, %v1627_v29 }
 0x241   :  { %3374 = vst.msk [vmem:[%s9221_s6 + $0xd0] sm:$0xff] %vm25_vm1, %v1140_v18  ;;  %v1880_v52 = vadd.f32 %v1879_v61, %v1878_v40  ;;  %9453 = vst [vmem:[#allocation11_spill] sm:$0xff] %v6110_v60  ;;  %v837_v40 = vld [vmem:[%s9221_s6 + $0x1f1] sm:$0xff] }
 0x242   :  { %979 = vst.msk [vmem:[%s9221_s6 + $0xc1] sm:$0xff] %vm25_vm1, %v947_v14  ;;  %v704_v54 = vpop.permute.xlu0 %703  ;;  %v1881_v14 = vsel %vm27_vm2, %v6030_v0, 0.0 }
 0x243   :  { %v1089_v53 = vpop.permute.xlu1 %1088  ;;  %v771_v58 = vadd.f32 %v704_v54, %v611_v45  ;;  %v1882_v45 = vadd.f32 %v1881_v14, %v1880_v52  ;;  %v1593_v14 = vld [vmem:[%s9221_s6 + $0x60] sm:$0xff] }
 0x244   :  { %v1156_v11 = vadd.f32 %v3358_v50, %v1089_v53  ;;  %v3357_v21 = vld [vmem:[%s9221_s6 + $0x1d0] sm:$0xff]  ;;  %v1806_v50 = vsel %vm25_vm1, %v6051_v32, 0.0  ;;  %v1805_v53 = vadd.f32 %v1804_v1, %v1803_v26 }
 0x245   :  { %v1155_v4 = vadd.f32 %v3357_v21, %v5694_v28  ;;  %803 = vst.msk [vmem:[%s9222_s7 + $0xe8] sm:$0xff] %vm25_vm1, %v771_v58  ;;  %v1625_v28 = vld [vmem:[%s9221_s6 + $0x160] sm:$0xff] }
 0x246   :  { %3390 = vst.msk [vmem:[%s9221_s6 + $0x1e0] sm:$0xff] %vm25_vm1, %v1156_v11  ;;  %v902_v10 = vpop.permute.xlu0 %901  ;;  %v6074_v19 = vadd.f32 %v5770_v63, %v1625_v28  ;;  %v6095_v11 = vadd.f32 %v5770_v63, %v1626_v38  ;;  %v1807_v3 = vadd.f32 %v1806_v50, %v1805_v53  ;;  %v6185_v50 = vadd.f32 %v5770_v63, %v1593_v14 }
 0x247   :  { %v678_v7 = vpop.permute.xlu1 %677  ;;  %3389 = vst.msk [vmem:[%s9221_s6 + $0x1d0] sm:$0xff] %vm25_vm1, %v1155_v4  ;;  %v966_v51 = vadd.f32 %v902_v10, %v838_v57 }
 0x248   :  { %v758_v16 = vadd.f32 %v678_v7, %v598_v59  ;;  %v1883_v58 = vsel %vm25_vm1, %v6074_v19, 0.0  ;;  %v1591_v59 = vld [vmem:[%s9221_s6 + $0x50] sm:$0xff]  ;;  %v1885_v57 = vsel %vm27_vm2, %v6095_v11, 0.0  ;;  %9456 = vst [vmem:[#allocation14_spill] sm:$0xff] %v6185_v50 }
 0x249   :  { %v3341_v12 = vld [vmem:[%s9221_s6 + $0xc0] sm:$0xff]  ;;  %998 = vst.msk [vmem:[%s9221_s6 + $0x201] sm:$0xff] %vm25_vm1, %v966_v51  ;;  %v1884_v62 = vadd.f32 %v1883_v58, %v1882_v45  ;;  %v6129_v10 = vadd.f32 %v5770_v63, %v1591_v59  ;;  %v1887_v51 = vsel %vm25_vm1, %v6113_v24, 0.0  ;;  %v3417_v45 = vld [vmem:[%s9222_s7 + $0xc8] sm:$0xff] }
 0x24a   :  { %v1139_v13 = vadd.f32 %v3341_v12, %v5676_v48  ;;  %790 = vst.msk [vmem:[%s9222_s7 + $0x78] sm:$0xff] %vm25_vm1, %v758_v16  ;;  %v822_v48 = vld [vmem:[%s9221_s6 + $0xf1] sm:$0xff]  ;;  %v676_v18 = vpop.permute.xlu0 %675  ;;  %v1808_v12 = vsel %vm27_vm2, %v6110_v60, 0.0 }
 0x24b   :  { %v870_v30 = vpop.permute.xlu1 %869  ;;  %v757_v43 = vadd.f32 %v676_v18, %v597_v27  ;;  %9454 = vst [vmem:[#allocation12_spill] sm:$0xff] %v6129_v10  ;;  %v1628_v16 = vld [vmem:[%s9221_s6 + $0x178] sm:$0x1]  ;;  %v1886_v26 = vadd.f32 %v1885_v57, %v1884_v62  ;;  %v1810_v1 = vsel %vm25_vm1, %v6129_v10, 0.0 }
 0x24c   :  { %3373 = vst.msk [vmem:[%s9221_s6 + $0xc0] sm:$0xff] %vm25_vm1, %v1139_v13  ;;  %v950_v44 = vadd.f32 %v870_v30, %v822_v48  ;;  %v1592_v30 = vld [vmem:[%s9221_s6 + $0x58] sm:$0x1]  ;;  %v1809_v48 = vadd.f32 %v1808_v12, %v1807_v3  ;;  %v1814_v12 = vsel %vm25_vm1, %v6185_v50, 0.0 }
 0x24d   :  { %789 = vst.msk [vmem:[%s9222_s7 + $0x70] sm:$0xff] %vm25_vm1, %v757_v43  ;;  %v1888_v18 = vadd.f32 %v1887_v51, %v1886_v26  ;;  %v6180_v43 = vadd.f32 %v5770_v63, %v1592_v30  ;;  %v613_v62 = vld [vmem:[%s9222_s7 + $0xf8] sm:$0xff] }
 0x24e   :  { %982 = vst.msk [vmem:[%s9221_s6 + $0xf1] sm:$0xff] %vm25_vm1, %v950_v44  ;;  %v3485_v61 = vld [vmem:[%s9221_s6 + $0x1d1] sm:$0xff]  ;;  %v900_v39 = vpop.permute.xlu0 %899  ;;  %v6163_v44 = vadd.f32 %v5770_v63, %v1628_v16  ;;  %v1811_v58 = vadd.f32 %v1810_v1, %v1809_v48 }
 0x24f   :  { %v868_v54 = vpop.permute.xlu1 %867  ;;  %v1540_v4 = vadd.f32 %v3485_v61, %v5697_v41  ;;  %v965_v7 = vadd.f32 %v900_v39, %v837_v40  ;;  %9455 = vst [vmem:[#allocation13_spill] sm:$0xff] %v6180_v43  ;;  %v1630_v40 = vld [vmem:[%s9221_s6 + $0x188] sm:$0x1]  ;;  %v6203_v39 = vadd.f32 %v5770_v63, %v1629_v25  ;;  %v1631_v16 = vld [vmem:[%s9221_s6 + $0x190] sm:$0xff] }
 0x250   :  { %v949_v21 = vadd.f32 %v868_v54, %v821_v55  ;;  %v3360_v52 = vld [vmem:[%s9221_s6 + $0x200] sm:$0xff]  ;;  %v6251_v48 = vadd.f32 %v5770_v63, %v1631_v16 }
 0x251   :  { %3517 = vst.msk [vmem:[%s9221_s6 + $0x1d1] sm:$0xff] %vm25_vm1, %v1540_v4  ;;  %997 = vst.msk [vmem:[%s9221_s6 + $0x1f1] sm:$0xff] %vm25_vm1, %v965_v7  ;;  %v3401_v54 = vld [vmem:[%s9222_s7 + $0x40] sm:$0xff]  ;;  %v1594_v7 = vld [vmem:[%s9221_s6 + $0x68] sm:$0x1]  ;;  %v1891_v26 = vsel %vm25_vm1, %v6203_v39, 0.0 }
 0x252   :  { %981 = vst.msk [vmem:[%s9221_s6 + $0xe1] sm:$0xff] %vm25_vm1, %v949_v21  ;;  %v1061_v27 = vpop.permute.xlu0 %1060  ;;  %v1889_v21 = vsel %vm27_vm2, %v6163_v44, 0.0  ;;  %v6248_v30 = vadd.f32 %v5770_v63, %v1594_v7 }
 0x253   :  { %v3469_v41 = vld [vmem:[%s9221_s6 + $0xc1] sm:$0xff]  ;;  %v1093_v28 = vpop.permute.xlu1 %1092  ;;  %v1890_v57 = vadd.f32 %v1889_v21, %v1888_v18  ;;  %v3470_v18 = vld [vmem:[%s9221_s6 + $0xd1] sm:$0xff]  ;;  %v1895_v21 = vsel %vm25_vm1, %v6251_v48, 0.0 }
 0x254   :  { %v1524_v33 = vadd.f32 %v3469_v41, %v5725_v46  ;;  %v1158_v13 = vadd.f32 %v3360_v52, %v1093_v28  ;;  %v3402_v41 = vld [vmem:[%s9222_s7 + $0x48] sm:$0xff]  ;;  %v1812_v28 = vsel %vm27_vm2, %v6180_v43, 0.0  ;;  %9457 = vst [vmem:[#allocation15_spill] sm:$0xff] %v6248_v30 }
 0x255   :  { %v3344_v38 = vld [vmem:[%s9221_s6 + $0xf0] sm:$0xff]  ;;  %v1892_v14 = vadd.f32 %v1891_v26, %v1890_v57  ;;  %v3345_v26 = vld [vmem:[%s9221_s6 + $0x100] sm:$0xff] }
 0x256   :  { %3501 = vst.msk [vmem:[%s9221_s6 + $0xc1] sm:$0xff] %vm25_vm1, %v1524_v33  ;;  %3392 = vst.msk [vmem:[%s9221_s6 + $0x200] sm:$0xff] %vm25_vm1, %v1158_v13  ;;  %v1142_v46 = vadd.f32 %v3344_v38, %v1061_v27  ;;  %v1240_v55 = vpop.permute.xlu0 %1239  ;;  %v1813_v13 = vadd.f32 %v1812_v28, %v1811_v58  ;;  %v1595_v38 = vld [vmem:[%s9221_s6 + $0x70] sm:$0xff]  ;;  %v1633_v28 = vld [vmem:[%s9221_s6 + $0x1a0] sm:$0xff] }
 0x257   :  { %v1272_v29 = vpop.permute.xlu1 %1271  ;;  %v1328_v59 = vadd.f32 %v3401_v54, %v1240_v55  ;;  %v614_v55 = vld [vmem:[%s9222_s7 + $0x100] sm:$0xff] }
 0x258   :  { %3376 = vst.msk [vmem:[%s9221_s6 + $0xf0] sm:$0xff] %vm25_vm1, %v1142_v46  ;;  %v1344_v53 = vadd.f32 %v3417_v45, %v1272_v29  ;;  %v3359_v3 = vld [vmem:[%s9221_s6 + $0x1f0] sm:$0xff]  ;;  %v1815_v46 = vadd.f32 %v1814_v12, %v1813_v13 }
 0x259   :  { %v3343_v61 = vld [vmem:[%s9221_s6 + $0xe0] sm:$0xff]  ;;  %3433 = vst.msk [vmem:[%s9222_s7 + $0x40] sm:$0xff] %vm25_vm1, %v1328_v59  ;;  %v3418_v29 = vld [vmem:[%s9222_s7 + $0xd0] sm:$0xff]  ;;  %v6279_v59 = vadd.f32 %v5770_v63, %v1595_v38  ;;  %v1724_v38 = vld [vmem:[%s9222_s7 + $0x8] sm:$0xff] }
 0x25a   :  { %3449 = vst.msk [vmem:[%s9222_s7 + $0xc8] sm:$0xff] %vm25_vm1, %v1344_v53  ;;  %v1141_v4 = vadd.f32 %v3343_v61, %v5868_v42  ;;  %v1157_v42 = vadd.f32 %v3359_v3, %v5893_v2  ;;  %v708_v33 = vpop.permute.xlu0 %707  ;;  %v6243_v2 = vadd.f32 %v5770_v63, %v1630_v40  ;;  %v1632_v53 = vld [vmem:[%s9221_s6 + $0x198] sm:$0x1]  ;;  %v1816_v61 = vsel %vm27_vm2, %v6248_v30, 0.0  ;;  %v1727_v30 = vld [vmem:[%s9222_s7 + $0x20] sm:$0xff] }
 0x25b   :  { %v1242_v52 = vpop.permute.xlu1 %1241  ;;  %v773_v27 = vadd.f32 %v708_v33, %v613_v62  ;;  %9458 = vst [vmem:[#allocation16_spill] sm:$0xff] %v6279_v59  ;;  %v1596_v62 = vld [vmem:[%s9221_s6 + $0x78] sm:$0x1]  ;;  %v1817_v3 = vadd.f32 %v1816_v61, %v1815_v46  ;;  %v6300_v57 = vadd.f32 %v5770_v63, %v1632_v53  ;;  %v1818_v13 = vsel %vm25_vm1, %v6279_v59, 0.0  ;;  %v1635_v61 = vld [vmem:[%s9221_s6 + $0x1b0] sm:$0xff] }
 0x25c   :  { %v1329_v51 = vadd.f32 %v3402_v41, %v1242_v52  ;;  %3375 = vst.msk [vmem:[%s9221_s6 + $0xe0] sm:$0xff] %vm25_vm1, %v1141_v4  ;;  %3391 = vst.msk [vmem:[%s9221_s6 + $0x1f0] sm:$0xff] %vm25_vm1, %v1157_v42  ;;  %v1893_v58 = vsel %vm27_vm2, %v6243_v2, 0.0  ;;  %v1597_v4 = vld [vmem:[%s9221_s6 + $0x80] sm:$0xff]  ;;  %v6312_v33 = vadd.f32 %v5770_v63, %v1596_v62  ;;  %v1740_v62 = vld [vmem:[%s9222_s7 + $0x88] sm:$0xff] }
 0x25d   :  { %805 = vst.msk [vmem:[%s9222_s7 + $0xf8] sm:$0xff] %vm25_vm1, %v773_v27  ;;  %v1894_v40 = vadd.f32 %v1893_v58, %v1892_v14  ;;  %v3486_v41 = vld [vmem:[%s9221_s6 + $0x1e1] sm:$0xff]  ;;  %v6317_v27 = vadd.f32 %v5770_v63, %v1597_v4  ;;  %v1819_v46 = vadd.f32 %v1818_v13, %v1817_v3  ;;  %v6360_v3 = vadd.f32 %v5770_v63, %v1724_v38  ;;  %v1726_v13 = vld [vmem:[%s9222_s7 + $0x18] sm:$0xff] }
 0x25e   :  { %3434 = vst.msk [vmem:[%s9222_s7 + $0x48] sm:$0xff] %vm25_vm1, %v1329_v51  ;;  %v1274_v1 = vpop.permute.xlu0 %1273  ;;  %v3361_v51 = vld [vmem:[%s9221_s6 + $0x210] sm:$0xff]  ;;  %9459 = vst [vmem:[#allocation17_spill] sm:$0xff] %v6312_v33  ;;  %v1723_v14 = vld [vmem:[%s9222_s7] sm:$0xff]  ;;  %v1820_v4 = vsel %vm27_vm2, %v6312_v33, 0.0  ;;  %v6398_v38 = vadd.f32 %v5770_v63, %v1635_v61 }
 0x25f   :  { %v1442_v25 = vpop.permute.xlu1 %1441  ;;  %v1345_v54 = vadd.f32 %v3418_v29, %v1274_v1  ;;  %v1896_v42 = vadd.f32 %v1895_v21, %v1894_v40  ;;  %9460 = vst [vmem:[#allocation18_spill] sm:$0xff] %v6317_v27  ;;  %v1634_v29 = vld [vmem:[%s9221_s6 + $0x1a8] sm:$0x1]  ;;  %v6345_v1 = vadd.f32 %v5770_v63, %v1633_v28  ;;  %v6354_v40 = vadd.f32 %v5770_v63, %v1723_v14  ;;  %v3419_v28 = vld [vmem:[%s9222_s7 + $0xd8] sm:$0xff] }
 0x260   :  { %v1525_v45 = vadd.f32 %v3470_v18, %v1442_v25  ;;  %v1741_v25 = vld [vmem:[%s9222_s7 + $0x90] sm:$0xff]  ;;  %9462 = vst [vmem:[#allocation20_spill] sm:$0xff] %v6360_v3  ;;  %v3488_v32 = vld [vmem:[%s9221_s6 + $0x201] sm:$0xff] }
 0x261   :  { %3450 = vst.msk [vmem:[%s9222_s7 + $0xd0] sm:$0xff] %vm25_vm1, %v1345_v54  ;;  %9461 = vst [vmem:[#allocation19_spill] sm:$0xff] %v6354_v40  ;;  %v1937_v61 = vsel %vm25_vm1, %v6354_v40, 0.0 }
 0x262   :  { %3502 = vst.msk [vmem:[%s9221_s6 + $0xd1] sm:$0xff] %vm25_vm1, %v1525_v45  ;;  %v1474_v52 = vpop.permute.xlu0 %1473  ;;  %v1897_v45 = vsel %vm27_vm2, %v6300_v57, 0.0 }
 0x263   :  { %v710_v7 = vpop.permute.xlu1 %709  ;;  %v1541_v12 = vadd.f32 %v3486_v41, %v1474_v52  ;;  %v1898_v58 = vadd.f32 %v1897_v45, %v1896_v42  ;;  %v1725_v41 = vld [vmem:[%s9222_s7 + $0x10] sm:$0xff]  ;;  %v1821_v52 = vadd.f32 %v1820_v4, %v1819_v46  ;;  %v6377_v42 = vadd.f32 %v5770_v63, %v1634_v29 }
 0x264   :  { %v774_v16 = vadd.f32 %v710_v7, %v614_v55  ;;  %v1598_v55 = vld [vmem:[%s9221_s6 + $0x88] sm:$0x1]  ;;  %v1822_v7 = vsel %vm25_vm1, %v6317_v27, 0.0  ;;  %v6404_v45 = vadd.f32 %v5770_v63, %v1740_v62  ;;  %v6414_v4 = vadd.f32 %v5770_v63, %v1725_v41  ;;  %v1636_v41 = vld [vmem:[%s9221_s6 + $0x1b8] sm:$0x1] }
 0x265   :  { %3518 = vst.msk [vmem:[%s9221_s6 + $0x1e1] sm:$0xff] %vm25_vm1, %v1541_v12  ;;  %v6395_v14 = vadd.f32 %v5770_v63, %v1598_v55 }
 0x266   :  { %806 = vst.msk [vmem:[%s9222_s7 + $0x100] sm:$0xff] %vm25_vm1, %v774_v16  ;;  %v1063_v54 = vpop.permute.xlu0 %1062  ;;  %v6371_v16 = vadd.f32 %v5770_v63, %v1741_v25  ;;  %9464 = vst [vmem:[#allocation22_spill] sm:$0xff] %v6414_v4  ;;  %v1940_v59 = vsel %vm25_vm1, %v6414_v4, 0.0 }
 0x267   :  { %v1095_v18 = vpop.permute.xlu1 %1094  ;;  %v1143_v21 = vadd.f32 %v3345_v26, %v1063_v54  ;;  %v1899_v26 = vsel %vm25_vm1, %v6345_v1, 0.0  ;;  %9463 = vst [vmem:[#allocation21_spill] sm:$0xff] %v6395_v14  ;;  %v1823_v54 = vadd.f32 %v1822_v7, %v1821_v52  ;;  %v6426_v7 = vadd.f32 %v5770_v63, %v1726_v13 }
 0x268   :  { %v1159_v53 = vadd.f32 %v3361_v51, %v1095_v18  ;;  %v1742_v51 = vld [vmem:[%s9222_s7 + $0x98] sm:$0xff]  ;;  %v3403_v18 = vld [vmem:[%s9222_s7 + $0x50] sm:$0xff]  ;;  %v1900_v29 = vadd.f32 %v1899_v26, %v1898_v58  ;;  %v1977_v58 = vsel %vm25_vm1, %v6371_v16, 0.0  ;;  %v1901_v52 = vsel %vm27_vm2, %v6377_v42, 0.0 }
 0x269   :  { %3377 = vst.msk [vmem:[%s9221_s6 + $0x100] sm:$0xff] %vm25_vm1, %v1143_v21  ;;  %v1938_v21 = vsel %vm25_vm1, %v6360_v3, 0.0  ;;  %v6423_v62 = vadd.f32 %v5770_v63, %v1742_v51  ;;  %9465 = vst [vmem:[#allocation23_spill] sm:$0xff] %v6426_v7  ;;  %v1743_v51 = vld [vmem:[%s9222_s7 + $0xa0] sm:$0xff]  ;;  %v1824_v26 = vsel %vm27_vm2, %v6395_v14, 0.0  ;;  %v1976_v3 = vsel %vm25_vm1, %v6404_v45, 0.0 }
 0x26a   :  { %3393 = vst.msk [vmem:[%s9221_s6 + $0x210] sm:$0xff] %vm25_vm1, %v1159_v53  ;;  %v1244_v25 = vpop.permute.xlu0 %1243  ;;  %v1599_v53 = vld [vmem:[%s9221_s6 + $0x90] sm:$0xff]  ;;  %v1902_v40 = vadd.f32 %v1901_v52, %v1900_v29  ;;  %v1825_v27 = vadd.f32 %v1824_v26, %v1823_v54  ;;  %v1601_v14 = vld [vmem:[%s9221_s6 + $0xa0] sm:$0xff]  ;;  %v6467_v29 = vadd.f32 %v5770_v63, %v1636_v41 }
 0x26b   :  { %v1276_v12 = vpop.permute.xlu1 %1275  ;;  %v1330_v55 = vadd.f32 %v3403_v18, %v1244_v25  ;;  %v6444_v13 = vadd.f32 %v5770_v63, %v1599_v53  ;;  %v3404_v25 = vld [vmem:[%s9222_s7 + $0x58] sm:$0xff]  ;;  %v1979_v54 = vsel %vm25_vm1, %v6423_v62, 0.0  ;;  %v6496_v26 = vadd.f32 %v5770_v63, %v1601_v14  ;;  %v1728_v14 = vld [vmem:[%s9222_s7 + $0x28] sm:$0xff] }
 0x26c   :  { %v1346_v46 = vadd.f32 %v3419_v28, %v1276_v12  ;;  %v3420_v28 = vld [vmem:[%s9222_s7 + $0xe0] sm:$0xff]  ;;  %v1600_v53 = vld [vmem:[%s9221_s6 + $0x98] sm:$0x1] }
 0x26d   :  { %3435 = vst.msk [vmem:[%s9222_s7 + $0x50] sm:$0xff] %vm25_vm1, %v1330_v55  ;;  %9466 = vst [vmem:[#allocation24_spill] sm:$0xff] %v6444_v13  ;;  %v3487_v41 = vld [vmem:[%s9221_s6 + $0x1f1] sm:$0xff] }
 0x26e   :  { %3451 = vst.msk [vmem:[%s9222_s7 + $0xd8] sm:$0xff] %vm25_vm1, %v1346_v46  ;;  %v1903_v46 = vsel %vm25_vm1, %v6398_v38, 0.0  ;;  %v1246_v55 = vpop.permute.xlu0 %1245  ;;  %9468 = vst [vmem:[#allocation26_spill] sm:$0xff] %v6496_v26 }
 0x26f   :  { %v1278_v12 = vpop.permute.xlu1 %1277  ;;  %v1331_v33 = vadd.f32 %v3404_v25, %v1246_v55  ;;  %v6502_v55 = vadd.f32 %v5770_v63, %v1727_v30 }
 0x270   :  { %v1347_v18 = vadd.f32 %v3420_v28, %v1278_v12  ;;  %v1939_v28 = vadd.f32 %v1938_v21, %v1937_v61  ;;  %v1978_v12 = vadd.f32 %v1977_v58, %v1976_v3  ;;  %v6476_v3 = vadd.f32 %v5770_v63, %v1743_v51  ;;  %v1637_v58 = vld [vmem:[%s9221_s6 + $0x1c0] sm:$0xff] }
 0x271   :  { %v1942_v61 = vsel %vm25_vm1, %v6426_v7, 0.0  ;;  %v1904_v21 = vadd.f32 %v1903_v46, %v1902_v40  ;;  %3436 = vst.msk [vmem:[%s9222_s7 + $0x58] sm:$0xff] %vm25_vm1, %v1331_v33  ;;  %v6491_v51 = vadd.f32 %v5770_v63, %v1600_v53  ;;  %v1826_v40 = vsel %vm25_vm1, %v6444_v13, 0.0  ;;  %v3471_v33 = vld [vmem:[%s9221_s6 + $0xe1] sm:$0xff]  ;;  %9469 = vst [vmem:[#allocation27_spill] sm:$0xff] %v6502_v55 }
 0x272   :  { %3452 = vst.msk [vmem:[%s9222_s7 + $0xe0] sm:$0xff] %vm25_vm1, %v1347_v18  ;;  %v1444_v18 = vpop.permute.xlu0 %1443  ;;  %v1941_v25 = vadd.f32 %v1940_v59, %v1939_v28  ;;  %v1744_v53 = vld [vmem:[%s9222_s7 + $0xa8] sm:$0xff]  ;;  %v1827_v7 = vadd.f32 %v1826_v40, %v1825_v27  ;;  %v6516_v30 = vadd.f32 %v5770_v63, %v1637_v58  ;;  %v1980_v27 = vadd.f32 %v1979_v54, %v1978_v12  ;;  %v1639_v58 = vld [vmem:[%s9221_s6 + $0x1d0] sm:$0xff] }
 0x273   :  { %v1476_v52 = vpop.permute.xlu1 %1475  ;;  %9467 = vst [vmem:[#allocation25_spill] sm:$0xff] %v6491_v51  ;;  %v1526_v4 = vadd.f32 %v3471_v33, %v1444_v18  ;;  %v1638_v59 = vld [vmem:[%s9221_s6 + $0x1c8] sm:$0x1]  ;;  %v1981_v28 = vsel %vm25_vm1, %v6476_v3, 0.0  ;;  %v1944_v13 = vsel %vm25_vm1, %v6502_v55, 0.0 }
 0x274   :  { %v1542_v46 = vadd.f32 %v3487_v41, %v1476_v52  ;;  %v1905_v52 = vsel %vm27_vm2, %v6467_v29, 0.0  ;;  %v1943_v41 = vadd.f32 %v1942_v61, %v1941_v25  ;;  %v1602_v40 = vld [vmem:[%s9221_s6 + $0xa8] sm:$0x1]  ;;  %v6538_v61 = vadd.f32 %v5770_v63, %v1744_v53  ;;  %v3405_v25 = vld [vmem:[%s9222_s7 + $0x60] sm:$0xff]  ;;  %v1729_v53 = vld [vmem:[%s9222_s7 + $0x30] sm:$0xff] }
 0x275   :  { %v1906_v18 = vadd.f32 %v1905_v52, %v1904_v21  ;;  %3503 = vst.msk [vmem:[%s9221_s6 + $0xe1] sm:$0xff] %vm25_vm1, %v1526_v4  ;;  %v3421_v12 = vld [vmem:[%s9222_s7 + $0xe8] sm:$0xff]  ;;  %v1828_v21 = vsel %vm27_vm2, %v6491_v51, 0.0  ;;  %v6548_v52 = vadd.f32 %v5770_v63, %v1728_v14  ;;  %v6562_v14 = vadd.f32 %v5770_v63, %v1602_v40  ;;  %v1603_v40 = vld [vmem:[%s9221_s6 + $0xb0] sm:$0xff] }
 0x276   :  { %3519 = vst.msk [vmem:[%s9221_s6 + $0x1f1] sm:$0xff] %vm25_vm1, %v1542_v46  ;;  %v1830_v46 = vsel %vm25_vm1, %v6496_v26, 0.0  ;;  %v1248_v4 = vpop.permute.xlu0 %1247  ;;  %v1829_v51 = vadd.f32 %v1828_v21, %v1827_v7  ;;  %v6565_v26 = vadd.f32 %v5770_v63, %v1638_v59  ;;  %v1907_v55 = vsel %vm25_vm1, %v6516_v30, 0.0  ;;  %v3422_v59 = vld [vmem:[%s9222_s7 + $0xf0] sm:$0xff] }
 0x277   :  { %v1280_v54 = vpop.permute.xlu1 %1279  ;;  %9470 = vst [vmem:[#allocation28_spill] sm:$0xff] %v6548_v52  ;;  %v1332_v50 = vadd.f32 %v3405_v25, %v1248_v4  ;;  %9471 = vst [vmem:[#allocation29_spill] sm:$0xff] %v6562_v14  ;;  %v6570_v7 = vadd.f32 %v5770_v63, %v1639_v58  ;;  %v1982_v21 = vadd.f32 %v1981_v28, %v1980_v27  ;;  %v1983_v27 = vsel %vm25_vm1, %v6538_v61, 0.0 }
 0x278   :  { %v1348_v33 = vadd.f32 %v3421_v12, %v1280_v54  ;;  %v1745_v12 = vld [vmem:[%s9222_s7 + $0xb0] sm:$0xff]  ;;  %v1746_v54 = vld [vmem:[%s9222_s7 + $0xb8] sm:$0xff]  ;;  %v1831_v25 = vadd.f32 %v1830_v46, %v1829_v51  ;;  %v1908_v4 = vadd.f32 %v1907_v55, %v1906_v18  ;;  %v1945_v43 = vadd.f32 %v1944_v13, %v1943_v41 }
 0x279   :  { %3437 = vst.msk [vmem:[%s9222_s7 + $0x60] sm:$0xff] %vm25_vm1, %v1332_v50  ;;  %v6589_v28 = vadd.f32 %v5770_v63, %v1729_v53  ;;  %v1730_v51 = vld [vmem:[%s9222_s7 + $0x38] sm:$0xff]  ;;  %v3406_v50 = vld [vmem:[%s9222_s7 + $0x68] sm:$0xff]  ;;  %v1946_v46 = vsel %vm25_vm1, %v6548_v52, 0.0  ;;  %v6600_v13 = vadd.f32 %v5770_v63, %v1745_v12  ;;  %v6603_v41 = vadd.f32 %v5770_v63, %v1746_v54  ;;  %v1641_v53 = vld [vmem:[%s9221_s6 + $0x1e0] sm:$0xff] }
 0x27a   :  { %3453 = vst.msk [vmem:[%s9222_s7 + $0xe8] sm:$0xff] %vm25_vm1, %v1348_v33  ;;  %v1250_v18 = vpop.permute.xlu0 %1249  ;;  %v1640_v33 = vld [vmem:[%s9221_s6 + $0x1d8] sm:$0x1]  ;;  %v6615_v52 = vadd.f32 %v5770_v63, %v1603_v40  ;;  %v1832_v12 = vsel %vm27_vm2, %v6562_v14, 0.0  ;;  %v1909_v54 = vsel %vm27_vm2, %v6565_v26, 0.0  ;;  %v1911_v10 = vsel %vm25_vm1, %v6570_v7, 0.0 }
 0x27b   :  { %v1282_v58 = vpop.permute.xlu1 %1281  ;;  %9472 = vst [vmem:[#allocation30_spill] sm:$0xff] %v6589_v28  ;;  %9473 = vst [vmem:[#allocation31_spill] sm:$0xff] %v6603_v41  ;;  %v1833_v40 = vadd.f32 %v1832_v12, %v1831_v25  ;;  %v1910_v60 = vadd.f32 %v1909_v54, %v1908_v4  ;;  %v1605_v14 = vld [vmem:[%s9221_s6 + $0xc0] sm:$0xff]  ;;  %v6644_v25 = vadd.f32 %v5770_v63, %v1641_v53 }
 0x27c   :  { %v1349_v55 = vadd.f32 %v3422_v59, %v1282_v58  ;;  %v1333_v59 = vadd.f32 %v3406_v50, %v1250_v18  ;;  %v1604_v58 = vld [vmem:[%s9221_s6 + $0xb8] sm:$0x1]  ;;  %9474 = vst [vmem:[#allocation32_spill] sm:$0xff] %v6615_v52  ;;  %v1984_v50 = vadd.f32 %v1983_v27, %v1982_v21  ;;  %v6628_v18 = vadd.f32 %v5770_v63, %v1730_v51  ;;  %v1747_v54 = vld [vmem:[%s9222_s7 + $0xc0] sm:$0xff] }
 0x27d   :  { %v6641_v21 = vadd.f32 %v5770_v63, %v1640_v33  ;;  %v3472_v27 = vld [vmem:[%s9221_s6 + $0xf1] sm:$0xff]  ;;  %v1947_v12 = vadd.f32 %v1946_v46, %v1945_v43  ;;  %v6655_v33 = vadd.f32 %v5770_v63, %v1604_v58  ;;  %v1912_v17 = vadd.f32 %v1911_v10, %v1910_v60  ;;  %v1748_v43 = vld [vmem:[%s9222_s7 + $0xc8] sm:$0xff] }
 0x27e   :  { %3454 = vst.msk [vmem:[%s9222_s7 + $0xf0] sm:$0xff] %vm25_vm1, %v1349_v55  ;;  %9475 = vst [vmem:[#allocation33_spill] sm:$0xff] %v6628_v18  ;;  %v1446_v51 = vpop.permute.xlu0 %1445  ;;  %v6662_v23 = vadd.f32 %v5770_v63, %v1605_v14  ;;  %v1987_v60 = vsel %vm25_vm1, %v6603_v41, 0.0  ;;  %v1950_v46 = vsel %vm25_vm1, %v6628_v18, 0.0  ;;  %v1642_v14 = vld [vmem:[%s9221_s6 + $0x1e8] sm:$0x1]  ;;  %v6710_v49 = vadd.f32 %v5770_v63, %v1748_v43 }
 0x27f   :  { %3438 = vst.msk [vmem:[%s9222_s7 + $0x68] sm:$0xff] %vm25_vm1, %v1333_v59  ;;  %v1478_v55 = vpop.permute.xlu1 %1477  ;;  %v1948_v59 = vsel %vm25_vm1, %v6589_v28, 0.0  ;;  %9476 = vst [vmem:[#allocation34_spill] sm:$0xff] %v6655_v33  ;;  %v1527_v53 = vadd.f32 %v3472_v27, %v1446_v51  ;;  %v1643_v27 = vld [vmem:[%s9221_s6 + $0x1f0] sm:$0xff]  ;;  %v1915_v18 = vsel %vm25_vm1, %v6644_v25, 0.0  ;;  %v6718_v34 = vadd.f32 %v5770_v63, %v1642_v14  ;;  %v1750_v14 = vld [vmem:[%s9222_s7 + $0xd8] sm:$0xff] }
 0x280   :  { %v1543_v4 = vadd.f32 %v3488_v32, %v1478_v55  ;;  %v1985_v32 = vsel %vm25_vm1, %v6600_v13, 0.0  ;;  %v1834_v55 = vsel %vm25_vm1, %v6615_v52, 0.0  ;;  %9477 = vst [vmem:[#allocation35_spill] sm:$0xff] %v6662_v23  ;;  %v1949_v51 = vadd.f32 %v1948_v59, %v1947_v12  ;;  %v3407_v59 = vld [vmem:[%s9222_s7 + $0x70] sm:$0xff]  ;;  %9479 = vst [vmem:[#allocation37_spill] sm:$0xff] %v6710_v49  ;;  %v1609_v41 = vld [vmem:[%s9221_s6 + $0xe0] sm:$0xff] }
 0x281   :  { %v1986_v10 = vadd.f32 %v1985_v32, %v1984_v50  ;;  %v1835_v58 = vadd.f32 %v1834_v55, %v1833_v40  ;;  %3504 = vst.msk [vmem:[%s9221_s6 + $0xf1] sm:$0xff] %vm25_vm1, %v1527_v53  ;;  %v3423_v50 = vld [vmem:[%s9222_s7 + $0xf8] sm:$0xff]  ;;  %v6689_v40 = vadd.f32 %v5770_v63, %v1747_v54  ;;  %v1606_v32 = vld [vmem:[%s9221_s6 + $0xc8] sm:$0x1]  ;;  %v1607_v55 = vld [vmem:[%s9221_s6 + $0xd0] sm:$0xff]  ;;  %v1913_v53 = vsel %vm27_vm2, %v6641_v21, 0.0 }
 0x282   :  { %3520 = vst.msk [vmem:[%s9221_s6 + $0x201] sm:$0xff] %vm25_vm1, %v1543_v4  ;;  %v1252_v12 = vpop.permute.xlu0 %1251  ;;  %v1836_v54 = vsel %vm27_vm2, %v6655_v33, 0.0  ;;  %v1749_v52 = vld [vmem:[%s9222_s7 + $0xd0] sm:$0xff]  ;;  %v1914_v22 = vadd.f32 %v1913_v53, %v1912_v17  ;;  %9480 = vst [vmem:[#allocation38_spill] sm:$0xff] %v6718_v34  ;;  %v6721_v33 = vadd.f32 %v5770_v63, %v1643_v27  ;;  %v6728_v43 = vadd.f32 %v5770_v63, %v1606_v32 }
 0x283   :  { %v1284_v4 = vpop.permute.xlu1 %1283  ;;  %9478 = vst [vmem:[#allocation36_spill] sm:$0xff] %v6689_v40  ;;  %v1334_v35 = vadd.f32 %v3407_v59, %v1252_v12  ;;  %v1988_v8 = vadd.f32 %v1987_v60, %v1986_v10  ;;  %v1837_v17 = vadd.f32 %v1836_v54, %v1835_v58  ;;  %v6731_v60 = vadd.f32 %v5770_v63, %v1607_v55 }
 0x284   :  { %v1350_v28 = vadd.f32 %v3423_v50, %v1284_v4  ;;  %v1731_v4 = vld [vmem:[%s9222_s7 + $0x40] sm:$0xff]  ;;  %v1838_v50 = vsel %vm25_vm1, %v6662_v23, 0.0  ;;  %9481 = vst [vmem:[#allocation39_spill] sm:$0xff] %v6721_v33  ;;  %9482 = vst [vmem:[#allocation40_spill] sm:$0xff] %v6728_v43  ;;  %v1916_v10 = vadd.f32 %v1915_v18, %v1914_v22  ;;  %v1989_v27 = vsel %vm25_vm1, %v6689_v40, 0.0  ;;  %v3408_v18 = vld [vmem:[%s9222_s7 + $0x78] sm:$0xff] }
 0x285   :  { %9483 = vst [vmem:[#allocation41_spill] sm:$0xff] %v6731_v60  ;;  %3439 = vst.msk [vmem:[%s9222_s7 + $0x70] sm:$0xff] %vm25_vm1, %v1334_v35  ;;  %v6746_v32 = vadd.f32 %v5770_v63, %v1749_v52  ;;  %v1751_v35 = vld [vmem:[%s9222_s7 + $0xe0] sm:$0xff]  ;;  %v6754_v53 = vadd.f32 %v1950_v46, %v1949_v51  ;;  %v6757_v59 = vadd.f32 %v5770_v63, %v1731_v4  ;;  %v1644_v52 = vld [vmem:[%s9221_s6 + $0x1f8] sm:$0x1]  ;;  %v1917_v23 = vsel %vm27_vm2, %v6718_v34, 0.0 }
 0x286   :  { %3455 = vst.msk [vmem:[%s9222_s7 + $0xf8] sm:$0xff] %vm25_vm1, %v1350_v28  ;;  %v3424_v28 = vld [vmem:[%s9222_s7 + $0x100] sm:$0xff]  ;;  %v1254_v55 = vpop.permute.xlu0 %1253  ;;  %v1839_v12 = vadd.f32 %v1838_v50, %v1837_v17  ;;  %v1919_v46 = vsel %vm25_vm1, %v6721_v33, 0.0  ;;  %v6774_v51 = vadd.f32 %v5770_v63, %v1750_v14  ;;  %v1991_v4 = vsel %vm25_vm1, %v6710_v49, 0.0  ;;  %v3489_v63 = vld [vmem:[%s9221_s6 + $0x211] sm:$0xff] }
 0x287   :  { %v1286_v58 = vpop.permute.xlu1 %1285  ;;  %9484 = vst [vmem:[#allocation42_spill] sm:$0xff] %v6746_v32  ;;  %9485 = vst [vmem:[#allocation43_spill] sm:$0xff] %v6757_v59  ;;  %v1840_v50 = vsel %vm27_vm2, %v6728_v43, 0.0  ;;  %v1842_v17 = vsel %vm25_vm1, %v6731_v60, 0.0  ;;  %v3473_v43 = vld [vmem:[%s9221_s6 + $0x101] sm:$0xff] }
 0x288   :  { %v1351_v22 = vadd.f32 %v3424_v28, %v1286_v58  ;;  %v1335_v28 = vadd.f32 %v3408_v18, %v1254_v55  ;;  %v1990_v58 = vadd.f32 %v1989_v27, %v1988_v8  ;;  %9486 = vst [vmem:[#allocation44_spill] sm:$0xff] %v6774_v51  ;;  %v1732_v8 = vld [vmem:[%s9222_s7 + $0x48] sm:$0xff]  ;;  %v1918_v27 = vadd.f32 %v1917_v23, %v1916_v10  ;;  %v6798_v18 = vld [vmem:[%s9223_s2] ss:$0 sm:$0xff]  ;;  %v1608_v10 = vld [vmem:[%s9221_s6 + $0xd8] sm:$0x1] }
 0x289   :  { %v1645_v54 = vld [vmem:[%s9221_s6 + $0x200] sm:$0xff]  ;;  %v6801_v23 = vadd.f32 %v6798_v18, %v1751_v35  ;;  %v6807_v55 = vadd.f32 %v6798_v18, %v1644_v52  ;;  %v1993_v35 = vsel %vm25_vm1, %v6746_v32, 0.0  ;;  %v1841_v49 = vadd.f32 %v1840_v50, %v1839_v12  ;;  %v3425_v52 = vld [vmem:[%s9222_s7 + $0x108] sm:$0xff] }
 0x28a   :  { %3456 = vst.msk [vmem:[%s9222_s7 + $0x100] sm:$0xff] %vm25_vm1, %v1351_v22  ;;  %3440 = vst.msk [vmem:[%s9222_s7 + $0x78] sm:$0xff] %vm25_vm1, %v1335_v28  ;;  %v1752_v22 = vld [vmem:[%s9222_s7 + $0xe8] sm:$0xff]  ;;  %v6810_v28 = vadd.f32 %v6798_v18, %v1645_v54  ;;  %v1448_v20 = vpop.permute.xlu0 %1447  ;;  %v1920_v40 = vadd.f32 %v1919_v46, %v1918_v27  ;;  %v1753_v54 = vld [vmem:[%s9222_s7 + $0xf0] sm:$0xff]  ;;  %v6844_v46 = vadd.f32 %v6798_v18, %v1608_v10 }
 0x28b   :  { %v1480_v14 = vpop.permute.xlu1 %1479  ;;  %9487 = vst [vmem:[#allocation45_spill] sm:$0xff] %v6801_v23  ;;  %9488 = vst [vmem:[#allocation46_spill] sm:$0xff] %v6807_v55  ;;  %v1528_v33 = vadd.f32 %v3473_v43, %v1448_v20  ;;  %v6834_v20 = vadd.f32 %v6798_v18, %v1752_v22  ;;  %v1995_v43 = vsel %vm25_vm1, %v6774_v51, 0.0  ;;  %v3409_v12 = vld [vmem:[%s9222_s7 + $0x80] sm:$0xff]  ;;  %v6869_v32 = vadd.f32 %v6798_v18, %v1609_v41 }
 0x28c   :  { %9489 = vst [vmem:[#allocation47_spill] sm:$0xff] %v6810_v28  ;;  %v1544_v60 = vadd.f32 %v3489_v63, %v1480_v14  ;;  %v1992_v63 = vadd.f32 %v1991_v4, %v1990_v58  ;;  %v6824_v14 = vadd.f32 %v6798_v18, %v1732_v8  ;;  %v1952_v58 = vsel %vm25_vm1, %v6757_v59, 0.0  ;;  %9492 = vst [vmem:[#allocation50_spill] sm:$0xff] %v6844_v46 }
 0x28d   :  { %9491 = vst [vmem:[#allocation49_spill] sm:$0xff] %v6834_v20  ;;  %v1843_v4 = vadd.f32 %v1842_v17, %v1841_v49  ;;  %3505 = vst.msk [vmem:[%s9221_s6 + $0x101] sm:$0xff] %vm25_vm1, %v1528_v33  ;;  %v1997_v8 = vsel %vm25_vm1, %v6801_v23, 0.0  ;;  %v1754_v27 = vld [vmem:[%s9222_s7 + $0xf8] sm:$0xff]  ;;  %v1733_v49 = vld [vmem:[%s9222_s7 + $0x50] sm:$0xff]  ;;  %v1921_v17 = vsel %vm27_vm2, %v6807_v55, 0.0  ;;  %v6866_v33 = vadd.f32 %v6798_v18, %v1753_v54 }
 0x28e   :  { %9490 = vst [vmem:[#allocation48_spill] sm:$0xff] %v6824_v14  ;;  %3521 = vst.msk [vmem:[%s9221_s6 + $0x211] sm:$0xff] %vm25_vm1, %v1544_v60  ;;  %v1646_v60 = vld [vmem:[%s9221_s6 + $0x208] sm:$0x1]  ;;  %v1994_v22 = vadd.f32 %v1993_v35, %v1992_v63  ;;  %v1923_v10 = vsel %vm25_vm1, %v6810_v28, 0.0  ;;  %v1256_v23 = vpop.permute.xlu0 %1255  ;;  %v1922_v51 = vadd.f32 %v1921_v17, %v1920_v40  ;;  %v1999_v28 = vsel %vm25_vm1, %v6834_v20, 0.0 }
 0x28f   :  { %v1288_v50 = vpop.permute.xlu1 %1287  ;;  %9493 = vst [vmem:[#allocation51_spill] sm:$0xff] %v6866_v33  ;;  %9494 = vst [vmem:[#allocation52_spill] sm:$0xff] %v6869_v32  ;;  %v1336_v34 = vadd.f32 %v3409_v12, %v1256_v23  ;;  %v6875_v55 = vadd.f32 %v6798_v18, %v1646_v60  ;;  %v6884_v41 = vadd.f32 %v6798_v18, %v1754_v27  ;;  %v1734_v40 = vld [vmem:[%s9222_s7 + $0x58] sm:$0xff]  ;;  %v1610_v12 = vld [vmem:[%s9221_s6 + $0xe8] sm:$0x1]  ;;  %v2001_v60 = vsel %vm25_vm1, %v6866_v33, 0.0 }
 0x290   :  { %v1352_v59 = vadd.f32 %v3425_v52, %v1288_v50  ;;  %v1996_v63 = vadd.f32 %v1995_v43, %v1994_v22  ;;  %v1924_v52 = vadd.f32 %v1923_v10, %v1922_v51  ;;  %v6890_v54 = vadd.f32 %v6798_v18, %v1733_v49  ;;  %v1611_v50 = vld [vmem:[%s9221_s6 + $0xf0] sm:$0xff] }
 0x291   :  { %v1755_v35 = vld [vmem:[%s9222_s7 + $0x100] sm:$0xff]  ;;  %9495 = vst [vmem:[#allocation53_spill] sm:$0xff] %v6884_v41  ;;  %v1953_v43 = vadd.f32 %v1952_v58, %v6754_v53  ;;  %3441 = vst.msk [vmem:[%s9222_s7 + $0x80] sm:$0xff] %vm25_vm1, %v1336_v34  ;;  %v1954_v34 = vsel %vm25_vm1, %v6824_v14, 0.0  ;;  %v6924_v17 = vadd.f32 %v6798_v18, %v1734_v40  ;;  %v1736_v40 = vld [vmem:[%s9222_s7 + $0x68] sm:$0xff] }
 0x292   :  { %3457 = vst.msk [vmem:[%s9222_s7 + $0x108] sm:$0xff] %vm25_vm1, %v1352_v59  ;;  %v1998_v23 = vadd.f32 %v1997_v8, %v1996_v63  ;;  %9496 = vst [vmem:[#allocation54_spill] sm:$0xff] %v6890_v54  ;;  %v1844_v59 = vsel %vm27_vm2, %v6844_v46, 0.0  ;;  %v6903_v51 = vadd.f32 %v6798_v18, %v1755_v35  ;;  %v1735_v53 = vld [vmem:[%s9222_s7 + $0x60] sm:$0xff]  ;;  %v1846_v8 = vsel %vm25_vm1, %v6869_v32, 0.0 }
 0x293   :  { %v1845_v58 = vadd.f32 %v1844_v59, %v1843_v4  ;;  %9498 = vst [vmem:[#allocation56_spill] sm:$0xff] %v6924_v17  ;;  %v1925_v35 = vsel %vm27_vm2, %v6875_v55, 0.0  ;;  %v2003_v63 = vsel %vm25_vm1, %v6884_v41, 0.0  ;;  %v6937_v59 = vadd.f32 %v6798_v18, %v1610_v12 }
 0x294   :  { %9497 = vst [vmem:[#allocation55_spill] sm:$0xff] %v6903_v51  ;;  %v2000_v49 = vadd.f32 %v1999_v28, %v1998_v23  ;;  %v1926_v32 = vadd.f32 %v1925_v35, %v1924_v52  ;;  %v1956_v23 = vsel %vm25_vm1, %v6890_v54, 0.0  ;;  %v2005_v46 = vsel %vm25_vm1, %v6903_v51, 0.0 }
 0x295   :  { %v1647_v27 = vld [vmem:[%s9221_s6 + $0x210] sm:$0xff]  ;;  %v1648_v22 = vld [vmem:[%s9221_s6 + $0x218] sm:$0x1]  ;;  %9500 = vst [vmem:[#allocation58_spill] sm:$0xff] %v6937_v59  ;;  %v6952_v12 = vadd.f32 %v6798_v18, %v1735_v53  ;;  %v1847_v52 = vadd.f32 %v1846_v8, %v1845_v58  ;;  %v1955_v54 = vadd.f32 %v1954_v34, %v1953_v43  ;;  %v6966_v53 = vadd.f32 %v6798_v18, %v1736_v40  ;;  %v1613_v43 = vld [vmem:[%s9221_s6 + $0x100] sm:$0xff] }
 0x296   :  { %v6927_v4 = vadd.f32 %v6798_v18, %v1647_v27  ;;  %v6930_v10 = vadd.f32 %v6798_v18, %v1648_v22  ;;  %v2002_v28 = vadd.f32 %v2001_v60, %v2000_v49  ;;  %v6945_v27 = vadd.f32 %v6798_v18, %v1611_v50  ;;  %v1737_v50 = vld [vmem:[%s9222_s7 + $0x70] sm:$0xff]  ;;  %v1612_v8 = vld [vmem:[%s9221_s6 + $0xf8] sm:$0x1] }
 0x297   :  { %9502 = vst [vmem:[#allocation60_spill] sm:$0xff] %v6952_v12  ;;  %9503 = vst [vmem:[#allocation61_spill] sm:$0xff] %v6966_v53  ;;  %v1958_v58 = vsel %vm25_vm1, %v6924_v17, 0.0  ;;  %v1957_v40 = vadd.f32 %v1956_v23, %v1955_v54  ;;  %v1960_v17 = vsel %vm25_vm1, %v6952_v12, 0.0  ;;  %v6994_v23 = vadd.f32 %v6798_v18, %v1612_v8  ;;  %v1614_v8 = vld [vmem:[%s9221_s6 + $0x108] sm:$0x1] }
 0x298   :  { %9499 = vst [vmem:[#allocation57_spill] sm:$0xff] %v6927_v4  ;;  %9501 = vst [vmem:[#allocation59_spill] sm:$0xff] %v6945_v27  ;;  %v1927_v22 = vsel %vm25_vm1, %v6927_v4, 0.0  ;;  %v2004_v35 = vadd.f32 %v2003_v63, %v2002_v28  ;;  %v1929_v14 = vsel %vm27_vm2, %v6930_v10, 0.0  ;;  %v1738_v28 = vld [vmem:[%s9222_s7 + $0x78] sm:$0xff]  ;;  %v1739_v54 = vld [vmem:[%s9222_s7 + $0x80] sm:$0xff] }
 0x299   :  { %v1756_v60 = vld [vmem:[%s9222_s7 + $0x108] sm:$0xff]  ;;  %v1928_v49 = vadd.f32 %v1927_v22, %v1926_v32  ;;  %v1848_v32 = vsel %vm27_vm2, %v6937_v59, 0.0  ;;  %v1850_v22 = vsel %vm25_vm1, %v6945_v27, 0.0  ;;  %v6986_v59 = vadd.f32 %v6798_v18, %v1737_v50  ;;  %9505 = vst [vmem:[#allocation63_spill] sm:$0xff] %v6994_v23 }
 0x29a   :  { %v6963_v51 = vadd.f32 %v6798_v18, %v1756_v60  ;;  %v2006_v63 = vadd.f32 %v2005_v46, %v2004_v35  ;;  %v1849_v41 = vadd.f32 %v1848_v32, %v1847_v52  ;;  %v6997_v35 = vadd.f32 %v6798_v18, %v1613_v43 }
 0x29b   :  { %v1930_v34 = vadd.f32 %v1929_v14, %v1928_v49  ;;  %9504 = vst [vmem:[#allocation62_spill] sm:$0xff] %v6986_v59  ;;  %v1959_v49 = vadd.f32 %v1958_v58, %v1957_v40  ;;  %v7000_v50 = vadd.f32 %v6798_v18, %v1738_v28  ;;  %v1962_v27 = vsel %vm25_vm1, %v6966_v53, 0.0 }
 0x29c   :  { %v2007_v60 = vsel %vm25_vm1, %v6963_v51, 0.0  ;;  %9506 = vst [vmem:[#allocation64_spill] sm:$0xff] %v6997_v35  ;;  %v1851_v58 = vadd.f32 %v1850_v22, %v1849_v41  ;;  %v1964_v40 = vsel %vm25_vm1, %v6986_v59, 0.0  ;;  %v1852_v53 = vsel %vm27_vm2, %v6994_v23, 0.0 }
 0x29d   :  { %v1931_v14 = vrot.slane %v1930_v34, 4  ;;  %v2008_v46 = vadd.f32 %v2007_v60, %v2006_v63  ;;  %9507 = vst [vmem:[#allocation65_spill] sm:$0xff] %v7000_v50  ;;  %v1961_v63 = vadd.f32 %v1960_v17, %v1959_v49  ;;  %v7007_v60 = vadd.f32 %v6798_v18, %v1739_v54 }
 0x29e   :  { %v1854_v17 = vsel %vm25_vm1, %v6997_v35, 0.0  ;;  %v1966_v41 = vsel %vm25_vm1, %v7000_v50, 0.0  ;;  %v7019_v49 = vadd.f32 %v6798_v18, %v1614_v8 }
 0x29f   :  { %v1932_v52 = vadd.f32 %v1931_v14, %v1930_v34  ;;  %v2009_v32 = vrot.slane %v2008_v46, 4  ;;  %v1963_v12 = vadd.f32 %v1962_v27, %v1961_v63  ;;  %v1853_v14 = vadd.f32 %v1852_v53, %v1851_v58 }
 0x2a0   :  { %9508 = vst [vmem:[#allocation66_spill] sm:$0xff] %v7019_v49  ;;  %v1968_v54 = vsel %vm25_vm1, %v7007_v60, 0.0  ;;  %v1856_v35 = vsel %vm27_vm2, %v7019_v49, 0.0  ;;  %v9541_v49 = vld [vmem:[#allocation57_spill] sm:$0xff] }
 0x2a1   :  { %v1933_v43 = vrot.slane %v1932_v52, 2  ;;  %v2010_v28 = vadd.f32 %v2009_v32, %v2008_v46  ;;  %v1965_v22 = vadd.f32 %v1964_v40, %v1963_v12  ;;  %v1855_v63 = vadd.f32 %v1854_v17, %v1853_v14 }
 0x2a3   :  { %v2011_v34 = vrot.slane %v2010_v28, 2  ;;  %v1934_v46 = vadd.f32 %v1933_v43, %v1932_v52  ;;  %v1967_v32 = vadd.f32 %v1966_v41, %v1965_v22  ;;  %v1857_v50 = vadd.f32 %v1856_v35, %v1855_v63 }
 0x2a5   :  { %v2012_v27 = vadd.f32 %v2011_v34, %v2010_v28  ;;  %v1969_v59 = vadd.f32 %v1968_v54, %v1967_v32  ;;  %v1935_v33 = vrot.slane %v1934_v46, 1  ;;  %v1858_v58 = vrot.slane %v1857_v50, 4 }
 0x2a7   :  { %v2013_v23 = vrot.slane %v2012_v27, 1  ;;  %v1970_v12 = vrot.slane %v1969_v59, 4  ;;  %v1936_v53 = vadd.f32 %v1935_v33, %v1934_v46  ;;  %v1859_v8 = vadd.f32 %v1858_v58, %v1857_v50 }
 0x2a9   :  { %v2014_v20 = vadd.f32 %v2013_v23, %v2012_v27  ;;  %v1971_v40 = vadd.f32 %v1970_v12, %v1969_v59  ;;  %v1860_v43 = vrot.slane %v1859_v8, 2 }
 0x2ab   :  { %v2016_v18 = vadd.f32 %v2014_v20, %v1936_v53  ;;  %v1972_v52 = vrot.slane %v1971_v40, 2  ;;  %v1861_v41 = vadd.f32 %v1860_v43, %v1859_v8 }
 0x2ad   :  { %v7025_v4 = vmul.f32 0.0034602077, %v2016_v18  ;;  %v1973_v17 = vadd.f32 %v1972_v52, %v1971_v40  ;;  %v1862_v59 = vrot.slane %v1861_v41, 1 }
 0x2af   :  { %v7029_v28 = vsub.f32 %v6930_v10, %v7025_v4  ;;  %v7033_v35 = vsub.f32 %v6963_v51, %v7025_v4  ;;  %v1974_v23 = vrot.slane %v1973_v17, 1  ;;  %v7037_v20 = vsub.f32 %v5781_v9, %v7025_v4 }
 0x2b0   :  { %v7041_v33 = vsub.f32 %v5784_v15, %v7025_v4  ;;  %v7045_v10 = vsub.f32 %v5797_v36, %v7025_v4  ;;  %v7049_v34 = vsub.f32 %v5856_v6, %v7025_v4  ;;  %v1863_v22 = vadd.f32 %v1862_v59, %v1861_v41 }
 0x2b1   :  { %9509 = vst [vmem:[#allocation67_spill] sm:$0xff] %v7029_v28  ;;  %9510 = vst [vmem:[#allocation68_spill] sm:$0xff] %v7033_v35  ;;  %v1975_v50 = vadd.f32 %v1974_v23, %v1973_v17  ;;  %v2156_v51 = vmul.f32 %v7037_v20, %v7037_v20  ;;  %v7057_v15 = vsub.f32 %v5859_v5, %v7025_v4 }
 0x2b2   :  { %v2157_v9 = vmul.f32 %v7041_v33, %v7041_v33  ;;  %v2158_v36 = vmul.f32 %v7045_v10, %v7045_v10  ;;  %v7063_v54 = vsub.f32 %v5914_v56, %v7025_v4  ;;  %v2159_v6 = vmul.f32 %v7049_v34, %v7049_v34 }
 0x2b3   :  { %v2015_v14 = vadd.f32 %v1975_v50, %v1863_v22  ;;  %v2263_v46 = vsel %vm25_vm1, %v2156_v51, 0.0  ;;  %v7071_v5 = vsub.f32 %v5939_v31, %v7025_v4  ;;  %v2160_v63 = vmul.f32 %v7057_v15, %v7057_v15 }
 0x2b4   :  { %v2264_v27 = vsel %vm27_vm2, %v2157_v9, 0.0  ;;  %v2266_v12 = vsel %vm25_vm1, %v2158_v36, 0.0  ;;  %v7078_v56 = vsub.f32 %v5969_v47, %v7025_v4  ;;  %v7082_v53 = vsub.f32 %v5977_v37, %v7025_v4 }
 0x2b5   :  { %v2265_v32 = vadd.f32 %v2264_v27, %v2263_v46  ;;  %v7084_v18 = vmul.f32 0.0034602077, %v2015_v14  ;;  %v7088_v31 = vsub.f32 %v6030_v0, %v7025_v4  ;;  %v7092_v40 = vsub.f32 %v6074_v19, %v7025_v4 }
 0x2b6   :  { %v2161_v8 = vmul.f32 %v7063_v54, %v7063_v54  ;;  %v2268_v47 = vsel %vm27_vm2, %v2159_v6, 0.0  ;;  %v7099_v37 = vsub.f32 %v6095_v11, %v7025_v4  ;;  %v7103_v52 = vsub.f32 %v6113_v24, %v7025_v4 }
 0x2b7   :  { %v2267_v58 = vadd.f32 %v2266_v12, %v2265_v32  ;;  %9511 = vst [vmem:[#allocation69_spill] sm:$0xff] %v7084_v18  ;;  %v7107_v0 = vsub.f32 %v6163_v44, %v7025_v4  ;;  %v7111_v19 = vsub.f32 %v6203_v39, %v7025_v4  ;;  %v7115_v17 = vsub.f32 %v6404_v45, %v7025_v4 }
 0x2b8   :  { %v2162_v11 = vmul.f32 %v7071_v5, %v7071_v5  ;;  %v2270_v41 = vsel %vm25_vm1, %v2160_v63, 0.0  ;;  %v7122_v24 = vsub.f32 %v6243_v2, %v7025_v4  ;;  %v7126_v44 = vsub.f32 %v6251_v48, %v7025_v4 }
 0x2b9   :  { %v2269_v43 = vadd.f32 %v2268_v47, %v2267_v58  ;;  %9512 = vst [vmem:[#allocation70_spill] sm:$0xff] %v7115_v17  ;;  %v7130_v39 = vsub.f32 %v6371_v16, %v7025_v4  ;;  %v7134_v45 = vsub.f32 %v6300_v57, %v7025_v4  ;;  %v7138_v59 = vsub.f32 %v6345_v1, %v7025_v4 }
 0x2ba   :  { %v2163_v2 = vmul.f32 %v7078_v56, %v7078_v56  ;;  %v2272_v50 = vsel %vm27_vm2, %v2161_v8, 0.0  ;;  %v7145_v48 = vsub.f32 %v6377_v42, %v7025_v4  ;;  %v7149_v16 = vsub.f32 %v6398_v38, %v7025_v4 }
 0x2bb   :  { %9513 = vst [vmem:[#allocation71_spill] sm:$0xff] %v7130_v39  ;;  %v2271_v23 = vadd.f32 %v2270_v41, %v2269_v43  ;;  %v7153_v57 = vsub.f32 %v6423_v62, %v7025_v4  ;;  %v7157_v1 = vsub.f32 %v6467_v29, %v7025_v4  ;;  %v2164_v9 = vmul.f32 %v7082_v53, %v7082_v53 }
 0x2bc   :  { %v2274_v22 = vsel %vm25_vm1, %v2162_v11, 0.0  ;;  %v2353_v42 = vmul.f32 %v7115_v17, %v7115_v17  ;;  %v7166_v38 = vsub.f32 %v6516_v30, %v7025_v4  ;;  %v7170_v62 = vsub.f32 %v6476_v3, %v7025_v4 }
 0x2bd   :  { %9514 = vst [vmem:[#allocation72_spill] sm:$0xff] %v7153_v57  ;;  %v2273_v51 = vadd.f32 %v2272_v50, %v2271_v23  ;;  %v2354_v29 = vmul.f32 %v7130_v39, %v7130_v39  ;;  %v7176_v14 = vsub.f32 %v6565_v26, %v7025_v4  ;;  %v7180_v6 = vsub.f32 %v6570_v7, %v7025_v4  ;;  %v9553_v39 = vld [vmem:[#allocation2_spill] sm:$0xff] }
 0x2be   :  { %9515 = vst [vmem:[#allocation73_spill] sm:$0xff] %v7170_v62  ;;  %v2165_v30 = vmul.f32 %v7088_v31, %v7088_v31  ;;  %v2276_v46 = vsel %vm27_vm2, %v2163_v2, 0.0  ;;  %v7187_v3 = vsub.f32 %v6641_v21, %v7025_v4  ;;  %v7191_v27 = vsub.f32 %v6538_v61, %v7025_v4  ;;  %v9524_v2 = vld [vmem:[#allocation31_spill] sm:$0xff] }
 0x2bf   :  { %v2275_v36 = vadd.f32 %v2274_v22, %v2273_v51  ;;  %9516 = vst [vmem:[#allocation74_spill] sm:$0xff] %v7176_v14  ;;  %9517 = vst [vmem:[#allocation75_spill] sm:$0xff] %v7180_v6  ;;  %v2355_v26 = vmul.f32 %v7153_v57, %v7153_v57  ;;  %v7197_v7 = vsub.f32 %v6644_v25, %v7025_v4  ;;  %v2278_v12 = vsel %vm25_vm1, %v2164_v9, 0.0  ;;  %v9522_v25 = vld [vmem:[#allocation38_spill] sm:$0xff]  ;;  %v9526_v22 = vld [vmem:[#allocation39_spill] sm:$0xff] }
 0x2c0   :  { %9518 = vst [vmem:[#allocation76_spill] sm:$0xff] %v7187_v3  ;;  %9519 = vst [vmem:[#allocation77_spill] sm:$0xff] %v7191_v27  ;;  %v2166_v63 = vmul.f32 %v7092_v40, %v7092_v40  ;;  %v2409_v21 = vsel %vm25_vm1, %v2353_v42, 0.0  ;;  %v7205_v58 = vsub.f32 %v6600_v13, %v7025_v4  ;;  %v2356_v8 = vmul.f32 %v7170_v62, %v7170_v62 }
 0x2c1   :  { %v2277_v32 = vadd.f32 %v2276_v46, %v2275_v36  ;;  %9520 = vst [vmem:[#allocation78_spill] sm:$0xff] %v7197_v7  ;;  %v2410_v47 = vsel %vm25_vm1, %v2354_v29, 0.0  ;;  %v7212_v43 = vsub.f32 %v9522_v25, %v7025_v4  ;;  %v2167_v11 = vmul.f32 %v7099_v37, %v7099_v37  ;;  %v9528_v46 = vld [vmem:[#allocation36_spill] sm:$0xff] }
 0x2c2   :  { %9521 = vst [vmem:[#allocation79_spill] sm:$0xff] %v7205_v58  ;;  %v2280_v41 = vsel %vm27_vm2, %v2165_v30, 0.0  ;;  %v2411_v23 = vadd.f32 %v2410_v47, %v2409_v21  ;;  %v7219_v13 = vsub.f32 %v9524_v2, %v7025_v4  ;;  %v2357_v51 = vmul.f32 %v7191_v27, %v7191_v27 }
 0x2c3   :  { %v2279_v61 = vadd.f32 %v2278_v12, %v2277_v32  ;;  %9523 = vst [vmem:[#allocation38_spill] sm:$0xff] %v7212_v43  ;;  %v2412_v9 = vsel %vm25_vm1, %v2355_v26, 0.0  ;;  %v7226_v42 = vsub.f32 %v9526_v22, %v7025_v4  ;;  %v2168_v36 = vmul.f32 %v7103_v52, %v7103_v52  ;;  %v9534_v22 = vld [vmem:[#allocation47_spill] sm:$0xff] }
 0x2c4   :  { %9525 = vst [vmem:[#allocation31_spill] sm:$0xff] %v7219_v13  ;;  %v2282_v29 = vsel %vm25_vm1, %v2166_v63, 0.0  ;;  %v2413_v30 = vadd.f32 %v2412_v9, %v2411_v23  ;;  %v7233_v32 = vsub.f32 %v9528_v46, %v7025_v4  ;;  %v2358_v21 = vmul.f32 %v7205_v58, %v7205_v58  ;;  %v9532_v23 = vld [vmem:[#allocation37_spill] sm:$0xff] }
 0x2c5   :  { %v2281_v50 = vadd.f32 %v2280_v41, %v2279_v61  ;;  %9527 = vst [vmem:[#allocation39_spill] sm:$0xff] %v7226_v42  ;;  %v2414_v26 = vsel %vm25_vm1, %v2356_v8, 0.0  ;;  %v9530_v61 = vld [vmem:[#allocation46_spill] sm:$0xff]  ;;  %v2169_v25 = vmul.f32 %v7107_v0, %v7107_v0  ;;  %v2284_v63 = vsel %vm27_vm2, %v2167_v11, 0.0 }
 0x2c6   :  { %9529 = vst [vmem:[#allocation36_spill] sm:$0xff] %v7233_v32  ;;  %v7240_v47 = vsub.f32 %v9530_v61, %v7025_v4  ;;  %v2415_v41 = vadd.f32 %v2414_v26, %v2413_v30  ;;  %v7247_v2 = vsub.f32 %v9532_v23, %v7025_v4  ;;  %v2359_v9 = vmul.f32 %v7219_v13, %v7219_v13  ;;  %v9536_v26 = vld [vmem:[#allocation42_spill] sm:$0xff] }
 0x2c7   :  { %v2283_v12 = vadd.f32 %v2282_v29, %v2281_v50  ;;  %v2416_v8 = vsel %vm25_vm1, %v2357_v51, 0.0  ;;  %v7254_v29 = vsub.f32 %v9534_v22, %v7025_v4  ;;  %v2170_v46 = vmul.f32 %v7111_v19, %v7111_v19 }
 0x2c8   :  { %9531 = vst [vmem:[#allocation46_spill] sm:$0xff] %v7240_v47  ;;  %9533 = vst [vmem:[#allocation37_spill] sm:$0xff] %v7247_v2  ;;  %v2286_v11 = vsel %vm25_vm1, %v2168_v36, 0.0  ;;  %v2417_v30 = vadd.f32 %v2416_v8, %v2415_v41  ;;  %v7261_v61 = vsub.f32 %v9536_v26, %v7025_v4  ;;  %v2418_v51 = vsel %vm25_vm1, %v2358_v21, 0.0  ;;  %v9539_v8 = vld [vmem:[#allocation44_spill] sm:$0xff] }
 0x2c9   :  { %v2285_v50 = vadd.f32 %v2284_v63, %v2283_v12  ;;  %9535 = vst [vmem:[#allocation47_spill] sm:$0xff] %v7254_v29  ;;  %v2360_v63 = vmul.f32 %v7233_v32, %v7233_v32  ;;  %v7268_v23 = vsub.f32 %v6875_v55, %v7025_v4  ;;  %v2171_v22 = vmul.f32 %v7122_v24, %v7122_v24 }
 0x2ca   :  { %9537 = vst [vmem:[#allocation42_spill] sm:$0xff] %v7261_v61  ;;  %v2288_v36 = vsel %vm27_vm2, %v2169_v25, 0.0  ;;  %v2419_v41 = vadd.f32 %v2418_v51, %v2417_v30  ;;  %v7275_v26 = vsub.f32 %v9539_v8, %v7025_v4  ;;  %v2420_v21 = vsel %vm25_vm1, %v2359_v9, 0.0  ;;  %v9543_v51 = vld [vmem:[#allocation45_spill] sm:$0xff] }
 0x2cb   :  { %v2287_v12 = vadd.f32 %v2286_v11, %v2285_v50  ;;  %9538 = vst [vmem:[#allocation80_spill] sm:$0xff] %v7268_v23  ;;  %v2361_v11 = vmul.f32 %v7247_v2, %v7247_v2  ;;  %v7282_v55 = vsub.f32 %v9541_v49, %v7025_v4  ;;  %v2172_v32 = vmul.f32 %v7126_v44, %v7126_v44  ;;  %v9545_v2 = vld [vmem:[#allocation49_spill] sm:$0xff] }
 0x2cc   :  { %9540 = vst [vmem:[#allocation44_spill] sm:$0xff] %v7275_v26  ;;  %v2290_v25 = vsel %vm25_vm1, %v2170_v46, 0.0  ;;  %v2421_v30 = vadd.f32 %v2420_v21, %v2419_v41  ;;  %v7289_v8 = vsub.f32 %v9543_v51, %v7025_v4  ;;  %v2422_v9 = vsel %vm25_vm1, %v2360_v63, 0.0  ;;  %v9547_v21 = vld [vmem:[#allocation51_spill] sm:$0xff] }
 0x2cd   :  { %v2289_v50 = vadd.f32 %v2288_v36, %v2287_v12  ;;  %9542 = vst [vmem:[#allocation57_spill] sm:$0xff] %v7282_v55  ;;  %v2362_v36 = vmul.f32 %v7261_v61, %v7261_v61  ;;  %v7296_v49 = vsub.f32 %v9545_v2, %v7025_v4  ;;  %v2173_v13 = vmul.f32 %v7134_v45, %v7134_v45  ;;  %v9549_v61 = vld [vmem:[#allocation53_spill] sm:$0xff] }
 0x2ce   :  { %9544 = vst [vmem:[#allocation45_spill] sm:$0xff] %v7289_v8  ;;  %v2292_v46 = vsel %vm27_vm2, %v2171_v22, 0.0  ;;  %v2423_v41 = vadd.f32 %v2422_v9, %v2421_v30  ;;  %v7303_v51 = vsub.f32 %v9547_v21, %v7025_v4  ;;  %v2424_v63 = vsel %vm25_vm1, %v2361_v11, 0.0  ;;  %v9551_v9 = vld [vmem:[#allocation55_spill] sm:$0xff] }
 0x2cf   :  { %v2291_v12 = vadd.f32 %v2290_v25, %v2289_v50  ;;  %9546 = vst [vmem:[#allocation49_spill] sm:$0xff] %v7296_v49  ;;  %v2363_v25 = vmul.f32 %v7275_v26, %v7275_v26  ;;  %v7310_v2 = vsub.f32 %v9549_v61, %v7025_v4  ;;  %v2174_v58 = vmul.f32 %v7138_v59, %v7138_v59 }
 0x2d0   :  { %9548 = vst [vmem:[#allocation51_spill] sm:$0xff] %v7303_v51  ;;  %v2294_v22 = vsel %vm25_vm1, %v2172_v32, 0.0  ;;  %v2425_v30 = vadd.f32 %v2424_v63, %v2423_v41  ;;  %v7317_v21 = vsub.f32 %v9551_v9, %v7025_v4  ;;  %v2426_v11 = vsel %vm25_vm1, %v2362_v36, 0.0 }
 0x2d1   :  { %v2293_v50 = vadd.f32 %v2292_v46, %v2291_v12  ;;  %9550 = vst [vmem:[#allocation53_spill] sm:$0xff] %v7310_v2  ;;  %v2364_v46 = vmul.f32 %v7289_v8, %v7289_v8  ;;  %v2175_v61 = vmul.f32 %v7145_v48, %v7145_v48  ;;  %v2176_v26 = vmul.f32 %v7149_v16, %v7149_v16 }
 0x2d2   :  { %9552 = vst [vmem:[#allocation55_spill] sm:$0xff] %v7317_v21  ;;  %v2296_v27 = vsel %vm27_vm2, %v2173_v13, 0.0  ;;  %v2427_v32 = vadd.f32 %v2426_v11, %v2425_v30  ;;  %v2177_v41 = vmul.f32 %v7157_v1, %v7157_v1  ;;  %v2428_v63 = vsel %vm25_vm1, %v2363_v25, 0.0 }
 0x2d3   :  { %v2295_v12 = vadd.f32 %v2294_v22, %v2293_v50  ;;  %v2365_v50 = vmul.f32 %v7296_v49, %v7296_v49  ;;  %v2178_v36 = vmul.f32 %v7166_v38, %v7166_v38  ;;  %v2179_v22 = vmul.f32 %v7176_v14, %v7176_v14 }
 0x2d4   :  { %v2298_v9 = vsel %vm25_vm1, %v2174_v58, 0.0  ;;  %v2429_v8 = vadd.f32 %v2428_v63, %v2427_v32  ;;  %v2180_v13 = vmul.f32 %v7180_v6, %v7180_v6  ;;  %v2181_v25 = vmul.f32 %v7187_v3, %v7187_v3  ;;  %v9609_v6 = vld [vmem:[#allocation28_spill] sm:$0xff] }
 0x2d5   :  { %v2297_v4 = vadd.f32 %v2296_v27, %v2295_v12  ;;  %v2366_v27 = vmul.f32 %v7303_v51, %v7303_v51  ;;  %v2430_v12 = vsel %vm25_vm1, %v2364_v46, 0.0  ;;  %v2182_v11 = vmul.f32 %v7197_v7, %v7197_v7 }
 0x2d6   :  { %v2300_v49 = vsel %vm27_vm2, %v2175_v61, 0.0  ;;  %v2431_v62 = vadd.f32 %v2430_v12, %v2429_v8  ;;  %v2183_v58 = vmul.f32 %v7212_v43, %v7212_v43  ;;  %v2432_v63 = vsel %vm25_vm1, %v2365_v50, 0.0  ;;  %v9597_v43 = vld [vmem:[#allocation19_spill] sm:$0xff] }
 0x2d7   :  { %v2299_v30 = vadd.f32 %v2298_v9, %v2297_v4  ;;  %v2367_v4 = vmul.f32 %v7310_v2, %v7310_v2  ;;  %v2184_v46 = vmul.f32 %v7226_v42, %v7226_v42  ;;  %v2185_v9 = vmul.f32 %v7240_v47, %v7240_v47  ;;  %v9595_v42 = vld [vmem:[#allocation29_spill] sm:$0xff] }
 0x2d8   :  { %v2302_v51 = vsel %vm25_vm1, %v2176_v26, 0.0  ;;  %v2433_v57 = vadd.f32 %v2432_v63, %v2431_v62  ;;  %v2186_v8 = vmul.f32 %v7254_v29, %v7254_v29  ;;  %v2187_v50 = vmul.f32 %v7268_v23, %v7268_v23 }
 0x2d9   :  { %v2301_v32 = vadd.f32 %v2300_v49, %v2299_v30  ;;  %v2368_v49 = vmul.f32 %v7317_v21, %v7317_v21  ;;  %v2434_v30 = vsel %vm25_vm1, %v2366_v27, 0.0  ;;  %v2304_v12 = vsel %vm27_vm2, %v2177_v41, 0.0 }
 0x2da   :  { %v2435_v2 = vadd.f32 %v2434_v30, %v2433_v57  ;;  %v7367_v17 = vsub.f32 %v9553_v39, %v7084_v18  ;;  %v2369_v26 = vmul.f32 %v7033_v35, %v7033_v35  ;;  %v2188_v27 = vmul.f32 %v7282_v55, %v7282_v55 }
 0x2db   :  { %v2303_v61 = vadd.f32 %v2302_v51, %v2301_v32  ;;  %v2436_v51 = vsel %vm25_vm1, %v2367_v4, 0.0  ;;  %v9555_v32 = vld [vmem:[#allocation3_spill] sm:$0xff]  ;;  %v2189_v57 = vmul.f32 %v7029_v28, %v7029_v28  ;;  %v2306_v41 = vsel %vm25_vm1, %v2178_v36, 0.0  ;;  %v9557_v4 = vld [vmem:[#allocation4_spill] sm:$0xff]  ;;  %v9559_v36 = vld [vmem:[#allocation5_spill] sm:$0xff] }
 0x2dc   :  { %9554 = vst [vmem:[#allocation2_spill] sm:$0xff] %v7367_v17  ;;  %v7374_v63 = vsub.f32 %v9555_v32, %v7084_v18  ;;  %v2437_v39 = vadd.f32 %v2436_v51, %v2435_v2  ;;  %v7385_v35 = vsub.f32 %v9557_v4, %v7084_v18  ;;  %v2310_v32 = vsel %vm25_vm1, %v2180_v13, 0.0 }
 0x2dd   :  { %v2305_v62 = vadd.f32 %v2304_v12, %v2303_v61  ;;  %v2308_v61 = vsel %vm27_vm2, %v2179_v22, 0.0  ;;  %v2438_v12 = vsel %vm25_vm1, %v2368_v49, 0.0  ;;  %v2312_v21 = vsel %vm27_vm2, %v2181_v25, 0.0 }
 0x2de   :  { %9556 = vst [vmem:[#allocation3_spill] sm:$0xff] %v7374_v63  ;;  %9558 = vst [vmem:[#allocation4_spill] sm:$0xff] %v7385_v35  ;;  %v2439_v55 = vadd.f32 %v2438_v12, %v2437_v39  ;;  %v2122_v28 = vmul.f32 %v7367_v17, %v7367_v17  ;;  %v2440_v2 = vsel %vm25_vm1, %v2369_v26, 0.0  ;;  %v7394_v22 = vsub.f32 %v9559_v36, %v7084_v18 }
 0x2df   :  { %v2307_v30 = vadd.f32 %v2306_v41, %v2305_v62  ;;  %v2123_v49 = vmul.f32 %v7374_v63, %v7374_v63  ;;  %v2314_v62 = vsel %vm25_vm1, %v2182_v11, 0.0  ;;  %v2316_v13 = vsel %vm27_vm2, %v2183_v58, 0.0 }
 0x2e0   :  { %9560 = vst [vmem:[#allocation5_spill] sm:$0xff] %v7394_v22  ;;  %v2318_v25 = vsel %vm25_vm1, %v2184_v46, 0.0  ;;  %v2441_v51 = vadd.f32 %v2440_v2, %v2439_v55  ;;  %v2320_v39 = vsel %vm27_vm2, %v2185_v9, 0.0  ;;  %v2322_v12 = vsel %vm25_vm1, %v2186_v8, 0.0  ;;  %v9565_v8 = vld [vmem:[#allocation8_spill] sm:$0xff] }
 0x2e1   :  { %v2309_v23 = vadd.f32 %v2308_v61, %v2307_v30  ;;  %v9561_v30 = vld [vmem:[#allocation6_spill] sm:$0xff]  ;;  %v2124_v61 = vmul.f32 %v7385_v35, %v7385_v35  ;;  %v2324_v4 = vsel %vm27_vm2, %v2187_v50, 0.0  ;;  %v2326_v11 = vsel %vm25_vm1, %v2188_v27, 0.0  ;;  %v9567_v50 = vld [vmem:[#allocation9_spill] sm:$0xff] }
 0x2e2   :  { %v7404_v26 = vsub.f32 %v9561_v30, %v7084_v18  ;;  %v2190_v58 = vsel %vm25_vm1, %v2122_v28, 0.0  ;;  %v2125_v9 = vmul.f32 %v7394_v22, %v7394_v22  ;;  %v2328_v2 = vsel %vm27_vm2, %v2189_v57, 0.0  ;;  %v9571_v57 = vld [vmem:[#allocation11_spill] sm:$0xff] }
 0x2e3   :  { %v2311_v41 = vadd.f32 %v2310_v32, %v2309_v23  ;;  %v9563_v23 = vld [vmem:[#allocation7_spill] sm:$0xff]  ;;  %v2191_v32 = vsel %vm27_vm2, %v2123_v49, 0.0  ;;  %v7422_v36 = vsub.f32 %v9565_v8, %v7084_v18  ;;  %v7426_v27 = vsub.f32 %v9567_v50, %v7084_v18  ;;  %v9573_v8 = vld [vmem:[#allocation12_spill] sm:$0xff]  ;;  %v9577_v50 = vld [vmem:[#allocation14_spill] sm:$0xff] }
 0x2e4   :  { %9562 = vst [vmem:[#allocation6_spill] sm:$0xff] %v7404_v26  ;;  %v7414_v55 = vsub.f32 %v9563_v23, %v7084_v18  ;;  %v2192_v28 = vadd.f32 %v2191_v32, %v2190_v58  ;;  %v2126_v23 = vmul.f32 %v7404_v26, %v7404_v26  ;;  %v2193_v49 = vsel %vm25_vm1, %v2124_v61, 0.0  ;;  %v9575_v58 = vld [vmem:[#allocation13_spill] sm:$0xff]  ;;  %v9579_v26 = vld [vmem:[#allocation15_spill] sm:$0xff] }
 0x2e5   :  { %v2313_v46 = vadd.f32 %v2312_v21, %v2311_v41  ;;  %9566 = vst [vmem:[#allocation8_spill] sm:$0xff] %v7422_v36  ;;  %9568 = vst [vmem:[#allocation9_spill] sm:$0xff] %v7426_v27  ;;  %v9569_v41 = vld [vmem:[#allocation10_spill] sm:$0xff]  ;;  %v7437_v22 = vsub.f32 %v9571_v57, %v7084_v18  ;;  %v7441_v35 = vsub.f32 %v9573_v8, %v7084_v18  ;;  %v2195_v57 = vsel %vm27_vm2, %v2125_v9, 0.0  ;;  %v9581_v8 = vld [vmem:[#allocation16_spill] sm:$0xff] }
 0x2e6   :  { %9564 = vst [vmem:[#allocation7_spill] sm:$0xff] %v7414_v55  ;;  %v7430_v30 = vsub.f32 %v9569_v41, %v7084_v18  ;;  %v7449_v41 = vsub.f32 %v9577_v50, %v7084_v18  ;;  %v2127_v61 = vmul.f32 %v7414_v55, %v7414_v55  ;;  %v7456_v63 = vsub.f32 %v9579_v26, %v7084_v18  ;;  %v9587_v55 = vld [vmem:[#allocation21_spill] sm:$0xff] }
 0x2e7   :  { %v2315_v21 = vadd.f32 %v2314_v62, %v2313_v46  ;;  %9572 = vst [vmem:[#allocation11_spill] sm:$0xff] %v7437_v22  ;;  %9574 = vst [vmem:[#allocation12_spill] sm:$0xff] %v7441_v35  ;;  %v7445_v62 = vsub.f32 %v9575_v58, %v7084_v18  ;;  %v2194_v46 = vadd.f32 %v2193_v49, %v2192_v28  ;;  %v9583_v28 = vld [vmem:[#allocation17_spill] sm:$0xff]  ;;  %v9585_v58 = vld [vmem:[#allocation18_spill] sm:$0xff]  ;;  %v2197_v26 = vsel %vm25_vm1, %v2126_v23, 0.0 }
 0x2e8   :  { %9570 = vst [vmem:[#allocation10_spill] sm:$0xff] %v7430_v30  ;;  %9578 = vst [vmem:[#allocation14_spill] sm:$0xff] %v7449_v41  ;;  %v7460_v17 = vsub.f32 %v9581_v8, %v7084_v18  ;;  %v7468_v50 = vsub.f32 %v9585_v58, %v7084_v18  ;;  %v2128_v9 = vmul.f32 %v7422_v36, %v7422_v36  ;;  %v9589_v8 = vld [vmem:[#allocation24_spill] sm:$0xff]  ;;  %v2199_v23 = vsel %vm27_vm2, %v2127_v61, 0.0  ;;  %v9593_v36 = vld [vmem:[#allocation26_spill] sm:$0xff] }
 0x2e9   :  { %9576 = vst [vmem:[#allocation13_spill] sm:$0xff] %v7445_v62  ;;  %v2317_v32 = vadd.f32 %v2316_v13, %v2315_v21  ;;  %9580 = vst [vmem:[#allocation15_spill] sm:$0xff] %v7456_v63  ;;  %v7464_v13 = vsub.f32 %v9583_v28, %v7084_v18  ;;  %v2196_v21 = vadd.f32 %v2195_v57, %v2194_v46  ;;  %v9591_v46 = vld [vmem:[#allocation25_spill] sm:$0xff]  ;;  %v2442_v28 = vrot.slane %v2441_v51, 4 }
 0x2ea   :  { %9582 = vst [vmem:[#allocation16_spill] sm:$0xff] %v7460_v17  ;;  %9586 = vst [vmem:[#allocation18_spill] sm:$0xff] %v7468_v50  ;;  %v7475_v29 = vsub.f32 %v9587_v55, %v7084_v18  ;;  %v7479_v47 = vsub.f32 %v9589_v8, %v7084_v18  ;;  %v2129_v58 = vmul.f32 %v7426_v27, %v7426_v27  ;;  %v9601_v27 = vld [vmem:[#allocation32_spill] sm:$0xff] }
 0x2eb   :  { %9584 = vst [vmem:[#allocation17_spill] sm:$0xff] %v7464_v13  ;;  %v2319_v49 = vadd.f32 %v2318_v25, %v2317_v32  ;;  %v7483_v25 = vsub.f32 %v9591_v46, %v7084_v18  ;;  %v2198_v32 = vadd.f32 %v2197_v26, %v2196_v21  ;;  %v7490_v55 = vsub.f32 %v9593_v36, %v7084_v18 }
 0x2ec   :  { %9588 = vst [vmem:[#allocation21_spill] sm:$0xff] %v7475_v29  ;;  %9590 = vst [vmem:[#allocation24_spill] sm:$0xff] %v7479_v47  ;;  %v7494_v8 = vsub.f32 %v9595_v42, %v7084_v18  ;;  %v7498_v46 = vsub.f32 %v9597_v43, %v7084_v18  ;;  %v2130_v61 = vmul.f32 %v7430_v30, %v7430_v30  ;;  %v2201_v36 = vsel %vm25_vm1, %v2128_v9, 0.0  ;;  %v9603_v42 = vld [vmem:[#allocation22_spill] sm:$0xff]  ;;  %v9605_v43 = vld [vmem:[#allocation23_spill] sm:$0xff] }
 0x2ed   :  { %9592 = vst [vmem:[#allocation25_spill] sm:$0xff] %v7483_v25  ;;  %v2321_v57 = vadd.f32 %v2320_v39, %v2319_v49  ;;  %9594 = vst [vmem:[#allocation26_spill] sm:$0xff] %v7490_v55  ;;  %v2200_v21 = vadd.f32 %v2199_v23, %v2198_v32  ;;  %v9599_v49 = vld [vmem:[#allocation20_spill] sm:$0xff]  ;;  %v7509_v7 = vsub.f32 %v9601_v27, %v7084_v18  ;;  %v2203_v9 = vsel %vm27_vm2, %v2129_v58, 0.0  ;;  %v9607_v30 = vld [vmem:[#allocation27_spill] sm:$0xff] }
 0x2ee   :  { %9596 = vst [vmem:[#allocation29_spill] sm:$0xff] %v7494_v8  ;;  %9598 = vst [vmem:[#allocation19_spill] sm:$0xff] %v7498_v46  ;;  %v7502_v26 = vsub.f32 %v9599_v49, %v7084_v18  ;;  %v7513_v3 = vsub.f32 %v9603_v42, %v7084_v18  ;;  %v2443_v23 = vadd.f32 %v2442_v28, %v2441_v51  ;;  %v2205_v51 = vsel %vm25_vm1, %v2130_v61, 0.0 }
 0x2ef   :  { %v2323_v39 = vadd.f32 %v2322_v12, %v2321_v57  ;;  %9602 = vst [vmem:[#allocation32_spill] sm:$0xff] %v7509_v7  ;;  %v7517_v12 = vsub.f32 %v9605_v43, %v7084_v18  ;;  %v2202_v32 = vadd.f32 %v2201_v36, %v2200_v21  ;;  %v2131_v49 = vmul.f32 %v7437_v22, %v7437_v22 }
 0x2f0   :  { %9600 = vst [vmem:[#allocation20_spill] sm:$0xff] %v7502_v26  ;;  %9604 = vst [vmem:[#allocation22_spill] sm:$0xff] %v7513_v3  ;;  %v7524_v27 = vsub.f32 %v9607_v30, %v7084_v18  ;;  %v7528_v42 = vsub.f32 %v9609_v6, %v7084_v18  ;;  %v2132_v43 = vmul.f32 %v7441_v35, %v7441_v35  ;;  %v9611_v30 = vld [vmem:[#allocation30_spill] sm:$0xff]  ;;  %v9613_v6 = vld [vmem:[#allocation33_spill] sm:$0xff]  ;;  %v2444_v61 = vrot.slane %v2443_v23, 2 }
 0x2f1   :  { %9606 = vst [vmem:[#allocation23_spill] sm:$0xff] %v7517_v12  ;;  %v2325_v57 = vadd.f32 %v2324_v4, %v2323_v39  ;;  %v2204_v14 = vadd.f32 %v2203_v9, %v2202_v32  ;;  %v2336_v4 = vmul.f32 %v7498_v46, %v7498_v46  ;;  %v2337_v28 = vmul.f32 %v7502_v26, %v7502_v26  ;;  %v9615_v26 = vld [vmem:[#allocation43_spill] sm:$0xff] }
 0x2f2   :  { %9608 = vst [vmem:[#allocation27_spill] sm:$0xff] %v7524_v27  ;;  %9610 = vst [vmem:[#allocation28_spill] sm:$0xff] %v7528_v42  ;;  %v7539_v58 = vsub.f32 %v9611_v30, %v7084_v18  ;;  %v7543_v39 = vsub.f32 %v9613_v6, %v7084_v18  ;;  %v2133_v36 = vmul.f32 %v7445_v62, %v7445_v62  ;;  %v2209_v35 = vsel %vm25_vm1, %v2132_v43, 0.0 }
 0x2f3   :  { %v2327_v21 = vadd.f32 %v2326_v11, %v2325_v57  ;;  %v2206_v11 = vadd.f32 %v2205_v51, %v2204_v14  ;;  %v2207_v57 = vsel %vm27_vm2, %v2131_v49, 0.0  ;;  %v2338_v9 = vmul.f32 %v7513_v3, %v7513_v3 }
 0x2f4   :  { %9612 = vst [vmem:[#allocation30_spill] sm:$0xff] %v7539_v58  ;;  %9614 = vst [vmem:[#allocation33_spill] sm:$0xff] %v7543_v39  ;;  %v7552_v46 = vsub.f32 %v9615_v26, %v7084_v18  ;;  %v2134_v30 = vmul.f32 %v7449_v41, %v7449_v41  ;;  %v2339_v14 = vmul.f32 %v7517_v12, %v7517_v12  ;;  %v2371_v49 = vsel %vm25_vm1, %v2337_v28, 0.0 }
 0x2f5   :  { %v2329_v32 = vadd.f32 %v2328_v2, %v2327_v21  ;;  %v2208_v6 = vadd.f32 %v2207_v57, %v2206_v11  ;;  %v2370_v2 = vsel %vm25_vm1, %v2336_v4, 0.0  ;;  %v2135_v21 = vmul.f32 %v7456_v63, %v7456_v63  ;;  %v9617_v57 = vld [vmem:[#allocation48_spill] sm:$0xff] }
 0x2f6   :  { %9616 = vst [vmem:[#allocation43_spill] sm:$0xff] %v7552_v46  ;;  %v2211_v26 = vsel %vm27_vm2, %v2133_v36, 0.0  ;;  %v2372_v3 = vadd.f32 %v2371_v49, %v2370_v2  ;;  %v2445_v41 = vadd.f32 %v2444_v61, %v2443_v23  ;;  %v2340_v43 = vmul.f32 %v7524_v27, %v7524_v27  ;;  %v9659_v27 = vld [vmem:[#allocation80_spill] sm:$0xff] }
 0x2f7   :  { %v2330_v22 = vrot.slane %v2329_v32, 4  ;;  %v2210_v51 = vadd.f32 %v2209_v35, %v2208_v6  ;;  %v2373_v11 = vsel %vm25_vm1, %v2338_v9, 0.0  ;;  %v7569_v12 = vsub.f32 %v9617_v57, %v7084_v18 }
 0x2f8   :  { %v2136_v4 = vmul.f32 %v7460_v17, %v7460_v17  ;;  %v2374_v63 = vadd.f32 %v2373_v11, %v2372_v3  ;;  %v2213_v36 = vsel %vm25_vm1, %v2134_v30, 0.0  ;;  %v2375_v23 = vsel %vm25_vm1, %v2339_v14, 0.0  ;;  %v9619_v30 = vld [vmem:[#allocation54_spill] sm:$0xff] }
 0x2f9   :  { %v2331_v62 = vadd.f32 %v2330_v22, %v2329_v32  ;;  %9618 = vst [vmem:[#allocation48_spill] sm:$0xff] %v7569_v12  ;;  %v2212_v28 = vadd.f32 %v2211_v26, %v2210_v51  ;;  %v2341_v22 = vmul.f32 %v7528_v42, %v7528_v42  ;;  %v2137_v32 = vmul.f32 %v7464_v13, %v7464_v13  ;;  %v9658_v42 = vld [vmem:[#allocation47_spill] sm:$0xff]  ;;  %v9689_v13 = vld [vmem:[#allocation37_spill] sm:$0xff]  ;;  %v9690_v17 = vld [vmem:[#allocation42_spill] sm:$0xff] }
 0x2fa   :  { %v2215_v9 = vsel %vm27_vm2, %v2135_v21, 0.0  ;;  %v2376_v6 = vadd.f32 %v2375_v23, %v2374_v63  ;;  %v2446_v49 = vrot.slane %v2445_v41, 1  ;;  %v2342_v3 = vmul.f32 %v7539_v58, %v7539_v58 }
 0x2fb   :  { %v2332_v35 = vrot.slane %v2331_v62, 2  ;;  %v2214_v61 = vadd.f32 %v2213_v36, %v2212_v28  ;;  %v2377_v51 = vsel %vm25_vm1, %v2340_v43, 0.0  ;;  %v7585_v26 = vsub.f32 %v9619_v30, %v7084_v18 }
 0x2fc   :  { %v2138_v14 = vmul.f32 %v7468_v50, %v7468_v50  ;;  %v2378_v57 = vadd.f32 %v2377_v51, %v2376_v6  ;;  %v2217_v21 = vsel %vm25_vm1, %v2136_v4, 0.0  ;;  %v2343_v63 = vmul.f32 %v7543_v39, %v7543_v39  ;;  %v9621_v4 = vld [vmem:[#allocation56_spill] sm:$0xff] }
 0x2fd   :  { %v2333_v2 = vadd.f32 %v2332_v35, %v2331_v62  ;;  %9620 = vst [vmem:[#allocation54_spill] sm:$0xff] %v7585_v26  ;;  %v2216_v11 = vadd.f32 %v2215_v9, %v2214_v61  ;;  %v2379_v62 = vsel %vm25_vm1, %v2341_v22, 0.0  ;;  %v2139_v43 = vmul.f32 %v7475_v29, %v7475_v29  ;;  %v9688_v50 = vld [vmem:[#allocation36_spill] sm:$0xff] }
 0x2fe   :  { %v2219_v36 = vsel %vm27_vm2, %v2137_v32, 0.0  ;;  %v2380_v23 = vadd.f32 %v2379_v62, %v2378_v57  ;;  %v2447_v58 = vadd.f32 %v2446_v49, %v2445_v41  ;;  %v2344_v61 = vmul.f32 %v7552_v46, %v7552_v46  ;;  %v9623_v49 = vld [vmem:[#allocation60_spill] sm:$0xff]  ;;  %v9657_v46 = vld [vmem:[#allocation46_spill] sm:$0xff] }
 0x2ff   :  { %v2334_v28 = vrot.slane %v2333_v2, 1  ;;  %v2218_v35 = vadd.f32 %v2217_v21, %v2216_v11  ;;  %v2381_v9 = vsel %vm25_vm1, %v2342_v3, 0.0  ;;  %v7601_v6 = vsub.f32 %v9621_v4, %v7084_v18 }
 0x300   :  { %v2140_v22 = vmul.f32 %v7479_v47, %v7479_v47  ;;  %v2382_v39 = vadd.f32 %v2381_v9, %v2380_v23  ;;  %v2221_v32 = vsel %vm25_vm1, %v2138_v14, 0.0  ;;  %v2345_v41 = vmul.f32 %v7569_v12, %v7569_v12  ;;  %v9656_v12 = vld [vmem:[#allocation39_spill] sm:$0xff] }
 0x301   :  { %v2335_v30 = vadd.f32 %v2334_v28, %v2333_v2  ;;  %9622 = vst [vmem:[#allocation56_spill] sm:$0xff] %v7601_v6  ;;  %v2220_v51 = vadd.f32 %v2219_v36, %v2218_v35  ;;  %v2383_v2 = vsel %vm25_vm1, %v2343_v63, 0.0  ;;  %v7611_v3 = vsub.f32 %v9623_v49, %v7084_v18  ;;  %v9625_v36 = vld [vmem:[#allocation61_spill] sm:$0xff] }
 0x302   :  { %v2141_v57 = vmul.f32 %v7483_v25, %v7483_v25  ;;  %v2384_v21 = vadd.f32 %v2383_v2, %v2382_v39  ;;  %v2223_v35 = vsel %vm27_vm2, %v2139_v43, 0.0  ;;  %v2385_v14 = vsel %vm25_vm1, %v2344_v61, 0.0 }
 0x303   :  { %v2449_v11 = vadd.f32 %v2447_v58, %v2335_v30  ;;  %9624 = vst [vmem:[#allocation60_spill] sm:$0xff] %v7611_v3  ;;  %v2222_v28 = vadd.f32 %v2221_v32, %v2220_v51  ;;  %v2346_v58 = vmul.f32 %v7585_v26, %v7585_v26  ;;  %v7621_v63 = vsub.f32 %v9625_v36, %v7084_v18  ;;  %v9655_v26 = vld [vmem:[#allocation38_spill] sm:$0xff] }
 0x304   :  { %v2142_v23 = vmul.f32 %v7490_v55, %v7490_v55  ;;  %v2386_v9 = vadd.f32 %v2385_v14, %v2384_v21  ;;  %v2225_v39 = vsel %vm25_vm1, %v2140_v22, 0.0  ;;  %v2347_v43 = vmul.f32 %v7601_v6, %v7601_v6 }
 0x305   :  { %v2451_v62 = vmul.f32 0.0034602077, %v2449_v11  ;;  %9626 = vst [vmem:[#allocation61_spill] sm:$0xff] %v7621_v63  ;;  %v2224_v30 = vadd.f32 %v2223_v35, %v2222_v28  ;;  %v2387_v51 = vsel %vm25_vm1, %v2345_v41, 0.0  ;;  %v9627_v11 = vld [vmem:[#allocation34_spill] sm:$0xff]  ;;  %v2143_v32 = vmul.f32 %v7494_v8, %v7494_v8 }
 0x306   :  { %v7631_v61 = vsub.f32 %v9627_v11, %v7084_v18  ;;  %v2388_v49 = vadd.f32 %v2387_v51, %v2386_v9  ;;  %v2227_v28 = vsel %vm27_vm2, %v2141_v57, 0.0  ;;  %v2348_v22 = vmul.f32 %v7611_v3, %v7611_v3  ;;  %v9631_v35 = vld [vmem:[#allocation62_spill] sm:$0xff]  ;;  %v9633_v51 = vld [vmem:[#allocation40_spill] sm:$0xff] }
 0x307   :  { %v2453_v4 = vadd.f32 1e-05, %v2451_v62  ;;  %v2226_v2 = vadd.f32 %v2225_v39, %v2224_v30  ;;  %v2389_v21 = vsel %vm25_vm1, %v2346_v58, 0.0  ;;  %v9629_v62 = vld [vmem:[#allocation35_spill] sm:$0xff]  ;;  %v7645_v14 = vsub.f32 %v9631_v35, %v7084_v18  ;;  %v9635_v35 = vld [vmem:[#allocation41_spill] sm:$0xff]  ;;  %v9654_v3 = vld [vmem:[#allocation78_spill] sm:$0xff] }
 0x308   :  { %9628 = vst [vmem:[#allocation34_spill] sm:$0xff] %v7631_v61  ;;  %v7641_v41 = vsub.f32 %v9629_v62, %v7084_v18  ;;  %v2390_v11 = vadd.f32 %v2389_v21, %v2388_v49  ;;  %v2144_v30 = vmul.f32 %v7509_v7, %v7509_v7  ;;  %v2229_v57 = vsel %vm25_vm1, %v2142_v23, 0.0 }
 0x309   :  { %3636 = vrsqrt.f32 %v2453_v4  ;;  %9632 = vst [vmem:[#allocation62_spill] sm:$0xff] %v7645_v14  ;;  %v2228_v36 = vadd.f32 %v2227_v28, %v2226_v2  ;;  %v2349_v9 = vmul.f32 %v7621_v63, %v7621_v63  ;;  %v2391_v58 = vsel %vm25_vm1, %v2347_v43, 0.0  ;;  %v9639_v63 = vld [vmem:[#allocation50_spill] sm:$0xff] }
 0x30a   :  { %9630 = vst [vmem:[#allocation35_spill] sm:$0xff] %v7641_v41  ;;  %v2392_v39 = vadd.f32 %v2391_v58, %v2390_v11  ;;  %v7655_v62 = vsub.f32 %v9633_v51, %v7084_v18  ;;  %v7659_v2 = vsub.f32 %v9635_v35, %v7084_v18  ;;  %v2231_v49 = vsel %vm27_vm2, %v2143_v32, 0.0  ;;  %v9637_v11 = vld [vmem:[#allocation65_spill] sm:$0xff] }
 0x30b   :  { %v2230_v4 = vadd.f32 %v2229_v57, %v2228_v36  ;;  %v2393_v28 = vsel %vm25_vm1, %v2348_v22, 0.0  ;;  %v2145_v23 = vmul.f32 %v7631_v61, %v7631_v61  ;;  %v2350_v43 = vmul.f32 %v7645_v14, %v7645_v14 }
 0x30c   :  { %9634 = vst [vmem:[#allocation40_spill] sm:$0xff] %v7655_v62  ;;  %9636 = vst [vmem:[#allocation41_spill] sm:$0xff] %v7659_v2  ;;  %v2394_v36 = vadd.f32 %v2393_v28, %v2392_v39  ;;  %v7669_v57 = vsub.f32 %v9637_v11, %v7084_v18  ;;  %v2146_v58 = vmul.f32 %v7641_v41, %v7641_v41  ;;  %v2233_v51 = vsel %vm25_vm1, %v2144_v30, 0.0 }
 0x30d   :  { %v2232_v21 = vadd.f32 %v2231_v49, %v2230_v4  ;;  %v2395_v32 = vsel %vm25_vm1, %v2349_v9, 0.0  ;;  %v7677_v4 = vsub.f32 %v9639_v63, %v7084_v18  ;;  %v9641_v49 = vld [vmem:[#allocation52_spill] sm:$0xff]  ;;  %v7685_v28 = vsub.f32 %v7007_v60, %v7084_v18 }
 0x30e   :  { %9638 = vst [vmem:[#allocation65_spill] sm:$0xff] %v7669_v57  ;;  %v2396_v35 = vadd.f32 %v2395_v32, %v2394_v36  ;;  %v7681_v39 = vsub.f32 %v9641_v49, %v7084_v18  ;;  %v7689_v11 = vmul.f32 %v7655_v62, %v7655_v62  ;;  %v7693_v30 = vmul.f32 %v7659_v2, %v7659_v2  ;;  %v9660_v2 = vld [vmem:[#allocation57_spill] sm:$0xff]  ;;  %v9661_v62 = vld [vmem:[#allocation67_spill] sm:$0xff] }
 0x30f   :  { %v2234_v22 = vadd.f32 %v2233_v51, %v2232_v21  ;;  %9640 = vst [vmem:[#allocation50_spill] sm:$0xff] %v7677_v4  ;;  %9643 = vst [vmem:[#allocation81_spill] sm:$0xff] %v7685_v28  ;;  %v2235_v9 = vsel %vm27_vm2, %v2145_v23, 0.0  ;;  %v2397_v63 = vsel %vm25_vm1, %v2350_v43, 0.0  ;;  %v7702_v51 = vsel %vm25_vm1, %v2146_v58, 0.0  ;;  %v9695_v28 = vld [vmem:[#allocation53_spill] sm:$0xff] }
 0x310   :  { %9642 = vst [vmem:[#allocation52_spill] sm:$0xff] %v7681_v39  ;;  %9644 = vst [vmem:[#allocation82_spill] sm:$0xff] %v7689_v11  ;;  %v7706_v60 = vmul.f32 %v7669_v57, %v7669_v57  ;;  %v7708_v32 = vadd.f32 %v2397_v63, %v2396_v35  ;;  %v9652_v63 = vld [vmem:[#allocation75_spill] sm:$0xff]  ;;  %v9653_v57 = vld [vmem:[#allocation76_spill] sm:$0xff] }
 0x311   :  { %9645 = vst [vmem:[#allocation83_spill] sm:$0xff] %v7693_v30  ;;  %v7699_v36 = vadd.f32 %v2235_v9, %v2234_v22  ;;  %9647 = vst [vmem:[#allocation85_spill] sm:$0xff] %v7702_v51  ;;  %v9691_v30 = vld [vmem:[#allocation44_spill] sm:$0xff]  ;;  %v9692_v39 = vld [vmem:[#allocation45_spill] sm:$0xff] }
 0x312   :  { %9648 = vst [vmem:[#allocation86_spill] sm:$0xff] %v7706_v60  ;;  %9649 = vst [vmem:[#allocation87_spill] sm:$0xff] %v7708_v32  ;;  %v9693_v32 = vld [vmem:[#allocation49_spill] sm:$0xff]  ;;  %v9694_v60 = vld [vmem:[#allocation51_spill] sm:$0xff] }
 0x313   :  { %v7697_v21 = vpop.eup %3636  ;;  %9646 = vst [vmem:[#allocation84_spill] sm:$0xff] %v7699_v36  ;;  %v9696_v11 = vld [vmem:[#allocation55_spill] sm:$0xff]  ;;  %v9697_v4 = vld [vmem:[#allocation68_spill] sm:$0xff] }
 0x314   :  { %v2490_v49 = vmul.f32 %v7697_v21, %v7037_v20  ;;  %v2491_v23 = vmul.f32 %v7697_v21, %v7041_v33  ;;  %v2492_v43 = vmul.f32 %v7697_v21, %v7045_v10  ;;  %v2493_v22 = vmul.f32 %v7697_v21, %v7049_v34 }
 0x315   :  { %v2494_v58 = vmul.f32 %v7697_v21, %v7057_v15  ;;  %v2495_v9 = vmul.f32 %v7697_v21, %v7063_v54  ;;  %v2496_v35 = vmul.f32 %v7697_v21, %v7071_v5  ;;  %v2497_v20 = vmul.f32 %v7697_v21, %v7078_v56 }
 0x316   :  { %v2498_v33 = vmul.f32 %v7697_v21, %v7082_v53  ;;  %v2499_v10 = vmul.f32 %v7697_v21, %v7088_v31  ;;  %v2500_v34 = vmul.f32 %v7697_v21, %v7092_v40  ;;  %v2501_v15 = vmul.f32 %v7697_v21, %v7099_v37 }
 0x317   :  { %v2502_v54 = vmul.f32 %v7697_v21, %v7103_v52  ;;  %v2503_v5 = vmul.f32 %v7697_v21, %v7107_v0  ;;  %v2504_v56 = vmul.f32 %v7697_v21, %v7111_v19  ;;  %v2505_v53 = vmul.f32 %v7697_v21, %v7122_v24  ;;  %v7753_v0 = vld [vmem:[%s9224_s3] ss:$0 sm:$0xff] }
 0x318   :  { %v2506_v31 = vmul.f32 %v7697_v21, %v7126_v44  ;;  %v2507_v40 = vmul.f32 %v7697_v21, %v7134_v45  ;;  %v2508_v37 = vmul.f32 %v7697_v21, %v7138_v59  ;;  %v2509_v52 = vmul.f32 %v7697_v21, %v7145_v48  ;;  %9650 = vst [vmem:[#allocation88_spill] sm:$0xff] %v7753_v0  ;;  %v9651_v45 = vld [vmem:[#allocation74_spill] sm:$0xff] }
 0x319   :  { %v2510_v19 = vmul.f32 %v7697_v21, %v7149_v16  ;;  %v2511_v24 = vmul.f32 %v7697_v21, %v7157_v1  ;;  %v2512_v44 = vmul.f32 %v7697_v21, %v7166_v38  ;;  %v2513_v59 = vmul.f32 %v7697_v21, %v9651_v45 }
 0x31a   :  { %v2514_v48 = vmul.f32 %v7697_v21, %v9652_v63  ;;  %v2515_v14 = vmul.f32 %v7697_v21, %v9653_v57  ;;  %v2516_v6 = vmul.f32 %v7697_v21, %v9654_v3  ;;  %v2517_v16 = vmul.f32 %v7697_v21, %v9655_v26 }
 0x31b   :  { %v2518_v1 = vmul.f32 %v7697_v21, %v9656_v12  ;;  %v2519_v38 = vmul.f32 %v7697_v21, %v9657_v46  ;;  %v2520_v45 = vmul.f32 %v7697_v21, %v9658_v42  ;;  %v2521_v63 = vmul.f32 %v7697_v21, %v9659_v27 }
 0x31c   :  { %v2522_v57 = vmul.f32 %v7697_v21, %v9660_v2  ;;  %v2523_v3 = vmul.f32 %v7697_v21, %v9661_v62  ;;  %v2564_v26 = vmul.f32 %v7753_v0, %v2490_v49  ;;  %v2565_v41 = vmul.f32 %v7753_v0, %v2491_v23 }
 0x31d   :  { %v2566_v12 = vmul.f32 %v7753_v0, %v2492_v43  ;;  %v2567_v46 = vmul.f32 %v7753_v0, %v2493_v22  ;;  %v2568_v61 = vmul.f32 %v7753_v0, %v2494_v58  ;;  %v2569_v42 = vmul.f32 %v7753_v0, %v2495_v9 }
 0x31e   :  { %v2570_v27 = vmul.f32 %v7753_v0, %v2496_v35  ;;  %v2571_v7 = vmul.f32 %v7753_v0, %v2497_v20  ;;  %v2572_v2 = vmul.f32 %v7753_v0, %v2498_v33  ;;  %v2573_v62 = vmul.f32 %v7753_v0, %v2499_v10 }
 0x31f   :  { %v2574_v49 = vmul.f32 %v7753_v0, %v2500_v34  ;;  %v2575_v23 = vmul.f32 %v7753_v0, %v2501_v15  ;;  %v2576_v43 = vmul.f32 %v7753_v0, %v2502_v54  ;;  %v2577_v22 = vmul.f32 %v7753_v0, %v2503_v5  ;;  %v7808_v54 = vld [vmem:[%s9225_s4] ss:$0 sm:$0xff] }
 0x320   :  { %v2578_v58 = vmul.f32 %v7753_v0, %v2504_v56  ;;  %v2579_v9 = vmul.f32 %v7753_v0, %v2505_v53  ;;  %v2580_v35 = vmul.f32 %v7753_v0, %v2506_v31  ;;  %v2581_v20 = vmul.f32 %v7753_v0, %v2507_v40  ;;  %9662 = vst [vmem:[#allocation74_spill] sm:$0xff] %v7808_v54 }
 0x321   :  { %v2582_v33 = vmul.f32 %v7753_v0, %v2508_v37  ;;  %v2583_v10 = vmul.f32 %v7753_v0, %v2509_v52  ;;  %v2584_v34 = vmul.f32 %v7753_v0, %v2510_v19  ;;  %v2585_v15 = vmul.f32 %v7753_v0, %v2511_v24 }
 0x322   :  { %v2586_v5 = vmul.f32 %v7753_v0, %v2512_v44  ;;  %v2587_v56 = vmul.f32 %v7753_v0, %v2513_v59  ;;  %v2588_v53 = vmul.f32 %v7753_v0, %v2514_v48  ;;  %v2589_v31 = vmul.f32 %v7753_v0, %v2515_v14 }
 0x323   :  { %v2590_v40 = vmul.f32 %v7753_v0, %v2516_v6  ;;  %v2591_v37 = vmul.f32 %v7753_v0, %v2517_v16  ;;  %v2592_v52 = vmul.f32 %v7753_v0, %v2518_v1  ;;  %v2593_v19 = vmul.f32 %v7753_v0, %v2519_v38 }
 0x324   :  { %v2594_v24 = vmul.f32 %v7753_v0, %v2520_v45  ;;  %v2595_v8 = vmul.f32 %v7753_v0, %v2521_v63  ;;  %v2596_v44 = vmul.f32 %v7753_v0, %v2522_v57  ;;  %v2597_v59 = vmul.f32 %v7753_v0, %v2523_v3 }
 0x325   :  { %v7823_v48 = vadd.f32 %v7808_v54, %v2564_v26  ;;  %v7826_v14 = vadd.f32 %v7808_v54, %v2565_v41  ;;  %v7829_v6 = vadd.f32 %v7808_v54, %v2566_v12  ;;  %v7832_v16 = vadd.f32 %v7808_v54, %v2567_v46 }
 0x326   :  { %v7835_v1 = vadd.f32 %v7808_v54, %v2568_v61  ;;  %v7838_v38 = vadd.f32 %v7808_v54, %v2569_v42  ;;  %v7841_v45 = vadd.f32 %v7808_v54, %v2570_v27  ;;  %v7844_v63 = vadd.f32 %v7808_v54, %v2571_v7 }
 0x327   :  { %v7847_v41 = vadd.f32 %v7808_v54, %v2572_v2  ;;  %v7850_v57 = vadd.f32 %v7808_v54, %v2573_v62  ;;  %v7853_v3 = vadd.f32 %v7808_v54, %v2574_v49  ;;  %v7856_v61 = vadd.f32 %v7808_v54, %v2575_v23 }
 0x328   :  { %v7859_v26 = vadd.f32 %v7808_v54, %v2576_v43  ;;  %v7862_v12 = vadd.f32 %v7808_v54, %v2577_v22  ;;  %v7865_v7 = vadd.f32 %v7808_v54, %v2578_v58  ;;  %v7868_v46 = vadd.f32 %v7808_v54, %v2579_v9 }
 0x329   :  { %v7871_v42 = vadd.f32 %v7808_v54, %v2580_v35  ;;  %v7874_v27 = vadd.f32 %v7808_v54, %v2581_v20  ;;  %v7877_v2 = vadd.f32 %v7808_v54, %v2582_v33  ;;  %v7880_v62 = vadd.f32 %v7808_v54, %v2583_v10 }
 0x32a   :  { %v7883_v49 = vadd.f32 %v7808_v54, %v2584_v34  ;;  %v7886_v23 = vadd.f32 %v7808_v54, %v2585_v15  ;;  %v7889_v43 = vadd.f32 %v7808_v54, %v2586_v5  ;;  %v7892_v22 = vadd.f32 %v7808_v54, %v2587_v56 }
 0x32b   :  { %9663 = vst [vmem:[#allocation75_spill] sm:$0xff] %v7871_v42  ;;  %9664 = vst [vmem:[#allocation76_spill] sm:$0xff] %v7874_v27  ;;  %v7895_v58 = vadd.f32 %v7808_v54, %v2588_v53  ;;  %v7898_v9 = vadd.f32 %v7808_v54, %v2589_v31  ;;  %v7901_v35 = vadd.f32 %v7808_v54, %v2590_v40  ;;  %v9681_v53 = vld [vmem:[#allocation70_spill] sm:$0xff]  ;;  %v9682_v40 = vld [vmem:[#allocation71_spill] sm:$0xff] }
 0x32c   :  { %9665 = vst [vmem:[#allocation78_spill] sm:$0xff] %v7877_v2  ;;  %9666 = vst [vmem:[#allocation38_spill] sm:$0xff] %v7880_v62  ;;  %v7904_v20 = vadd.f32 %v7808_v54, %v2591_v37  ;;  %v7907_v33 = vadd.f32 %v7808_v54, %v2592_v52  ;;  %v7910_v10 = vadd.f32 %v7808_v54, %v2593_v19  ;;  %v9683_v52 = vld [vmem:[#allocation72_spill] sm:$0xff] }
 0x32d   :  { %9667 = vst [vmem:[#allocation39_spill] sm:$0xff] %v7883_v49  ;;  %9668 = vst [vmem:[#allocation46_spill] sm:$0xff] %v7886_v23  ;;  %v7913_v34 = vadd.f32 %v7808_v54, %v2594_v24  ;;  %v7916_v15 = vadd.f32 %v7808_v54, %v2595_v8  ;;  %v7919_v5 = vadd.f32 %v7808_v54, %v2596_v44  ;;  %v9684_v24 = vld [vmem:[#allocation73_spill] sm:$0xff]  ;;  %v9686_v44 = vld [vmem:[#allocation79_spill] sm:$0xff] }
 0x32e   :  { %9669 = vst [vmem:[#allocation47_spill] sm:$0xff] %v7889_v43  ;;  %9670 = vst [vmem:[#allocation80_spill] sm:$0xff] %v7892_v22  ;;  %v7922_v56 = vadd.f32 %v7808_v54, %v2597_v59  ;;  %v2689_v31 = vmul.f32 %v7697_v21, %v9681_v53  ;;  %v2690_v37 = vmul.f32 %v7697_v21, %v9682_v40  ;;  %v9685_v8 = vld [vmem:[#allocation77_spill] sm:$0xff]  ;;  %v9687_v59 = vld [vmem:[#allocation31_spill] sm:$0xff] }
 0x32f   :  { %9671 = vst [vmem:[#allocation57_spill] sm:$0xff] %v7895_v58  ;;  %9672 = vst [vmem:[#allocation67_spill] sm:$0xff] %v7898_v9  ;;  %v2691_v19 = vmul.f32 %v7697_v21, %v9683_v52  ;;  %v2692_v55 = vmul.f32 %v7697_v21, %v9684_v24  ;;  %v2693_v25 = vmul.f32 %v7697_v21, %v9685_v8 }
 0x330   :  { %9673 = vst [vmem:[#allocation89_spill] sm:$0xff] %v7901_v35  ;;  %9674 = vst [vmem:[#allocation90_spill] sm:$0xff] %v7904_v20  ;;  %v2694_v47 = vmul.f32 %v7697_v21, %v9686_v44  ;;  %v2695_v29 = vmul.f32 %v7697_v21, %v9687_v59  ;;  %v2696_v53 = vmul.f32 %v7697_v21, %v9688_v50 }
 0x331   :  { %9675 = vst [vmem:[#allocation91_spill] sm:$0xff] %v7907_v33  ;;  %9676 = vst [vmem:[#allocation92_spill] sm:$0xff] %v7910_v10  ;;  %v2697_v40 = vmul.f32 %v7697_v21, %v9689_v13  ;;  %v2698_v52 = vmul.f32 %v7697_v21, %v9690_v17  ;;  %v2699_v24 = vmul.f32 %v7697_v21, %v9691_v30 }
 0x332   :  { %9677 = vst [vmem:[#allocation93_spill] sm:$0xff] %v7913_v34  ;;  %9678 = vst [vmem:[#allocation94_spill] sm:$0xff] %v7916_v15  ;;  %v2700_v8 = vmul.f32 %v7697_v21, %v9692_v39  ;;  %v2701_v44 = vmul.f32 %v7697_v21, %v9693_v32  ;;  %v2702_v59 = vmul.f32 %v7697_v21, %v9694_v60 }
 0x333   :  { %9679 = vst [vmem:[#allocation95_spill] sm:$0xff] %v7919_v5  ;;  %9680 = vst [vmem:[#allocation96_spill] sm:$0xff] %v7922_v56  ;;  %v2703_v50 = vmul.f32 %v7697_v21, %v9695_v28  ;;  %v2704_v13 = vmul.f32 %v7697_v21, %v9696_v11  ;;  %v2705_v17 = vmul.f32 %v7697_v21, %v9697_v4 }
 0x334   :  { %v2723_v30 = vmul.f32 %v7753_v0, %v2689_v31  ;;  %v2724_v51 = vmul.f32 %v7753_v0, %v2690_v37  ;;  %v2725_v39 = vmul.f32 %v7753_v0, %v2691_v19  ;;  %v2726_v32 = vmul.f32 %v7753_v0, %v2692_v55 }
 0x335   :  { %v2727_v36 = vmul.f32 %v7753_v0, %v2693_v25  ;;  %v2728_v60 = vmul.f32 %v7753_v0, %v2694_v47  ;;  %v2729_v28 = vmul.f32 %v7753_v0, %v2695_v29  ;;  %v2730_v18 = vmul.f32 %v7753_v0, %v2696_v53 }
 0x336   :  { %v2731_v11 = vmul.f32 %v7753_v0, %v2697_v40  ;;  %v2732_v4 = vmul.f32 %v7753_v0, %v2698_v52  ;;  %v2733_v21 = vmul.f32 %v7753_v0, %v2699_v24  ;;  %v2734_v31 = vmul.f32 %v7753_v0, %v2700_v8 }
 0x337   :  { %v2735_v37 = vmul.f32 %v7753_v0, %v2701_v44  ;;  %v2736_v55 = vmul.f32 %v7753_v0, %v2702_v59  ;;  %v2737_v25 = vmul.f32 %v7753_v0, %v2703_v50  ;;  %v2738_v47 = vmul.f32 %v7753_v0, %v2704_v13 }
 0x338   :  { %v2739_v29 = vmul.f32 %v7753_v0, %v2705_v17  ;;  %v7976_v19 = vadd.f32 %v7808_v54, %v2723_v30  ;;  %v7979_v53 = vadd.f32 %v7808_v54, %v2724_v51  ;;  %v7982_v40 = vadd.f32 %v7808_v54, %v2725_v39 }
 0x339   :  { %v7985_v52 = vadd.f32 %v7808_v54, %v2726_v32  ;;  %v7988_v24 = vadd.f32 %v7808_v54, %v2727_v36  ;;  %v7991_v8 = vadd.f32 %v7808_v54, %v2728_v60  ;;  %v7994_v44 = vadd.f32 %v7808_v54, %v2729_v28 }
 0x33a   :  { %9698 = vst [vmem:[#allocation70_spill] sm:$0xff] %v7976_v19  ;;  %9699 = vst [vmem:[#allocation71_spill] sm:$0xff] %v7979_v53  ;;  %v7997_v59 = vadd.f32 %v7808_v54, %v2730_v18  ;;  %v8000_v51 = vadd.f32 %v7808_v54, %v2731_v11  ;;  %v8003_v50 = vadd.f32 %v7808_v54, %v2732_v4  ;;  %v2883_v28 = vmin.f32 %v7844_v63, 0.0 }
 0x33b   :  { %9700 = vst [vmem:[#allocation72_spill] sm:$0xff] %v7982_v40  ;;  %9701 = vst [vmem:[#allocation73_spill] sm:$0xff] %v7985_v52  ;;  %v8006_v13 = vadd.f32 %v7808_v54, %v2733_v21  ;;  %v8009_v36 = vadd.f32 %v7808_v54, %v2734_v31  ;;  %v8012_v17 = vadd.f32 %v7808_v54, %v2735_v37  ;;  %v2876_v21 = vmin.f32 %v7823_v48, 0.0 }
 0x33c   :  { %9702 = vst [vmem:[#allocation77_spill] sm:$0xff] %v7988_v24  ;;  %9703 = vst [vmem:[#allocation79_spill] sm:$0xff] %v7991_v8  ;;  %v8015_v30 = vadd.f32 %v7808_v54, %v2736_v55  ;;  %v8018_v18 = vadd.f32 %v7808_v54, %v2737_v25  ;;  %v8021_v39 = vadd.f32 %v7808_v54, %v2738_v47  ;;  %v2877_v31 = vmin.f32 %v7826_v14, 0.0 }
 0x33d   :  { %9704 = vst [vmem:[#allocation31_spill] sm:$0xff] %v7994_v44  ;;  %9705 = vst [vmem:[#allocation36_spill] sm:$0xff] %v7997_v59  ;;  %v8024_v32 = vadd.f32 %v7808_v54, %v2739_v29  ;;  %v2878_v37 = vmin.f32 %v7829_v6, 0.0  ;;  %v2879_v55 = vmin.f32 %v7832_v16, 0.0  ;;  %v2880_v25 = vmin.f32 %v7835_v1, 0.0 }
 0x33e   :  { %9706 = vst [vmem:[#allocation37_spill] sm:$0xff] %v8000_v51  ;;  %9707 = vst [vmem:[#allocation42_spill] sm:$0xff] %v8003_v50  ;;  %v2881_v47 = vmin.f32 %v7838_v38, 0.0  ;;  %v2882_v29 = vmin.f32 %v7841_v45, 0.0  ;;  %v2884_v11 = vmin.f32 %v7847_v41, 0.0  ;;  %v2885_v4 = vmin.f32 %v7850_v57, 0.0 }
 0x33f   :  { %9708 = vst [vmem:[#allocation44_spill] sm:$0xff] %v8006_v13  ;;  %9709 = vst [vmem:[#allocation45_spill] sm:$0xff] %v8009_v36  ;;  %v2886_v60 = vmin.f32 %v7853_v3, 0.0  ;;  %v2887_v54 = vmin.f32 %v7856_v61, 0.0  ;;  %v2888_v0 = vmin.f32 %v7859_v26, 0.0  ;;  %v2894_v36 = vmin.f32 %v7877_v2, 0.0 }
 0x340   :  { %9710 = vst [vmem:[#allocation49_spill] sm:$0xff] %v8012_v17  ;;  %9711 = vst [vmem:[#allocation51_spill] sm:$0xff] %v8015_v30  ;;  %v2892_v30 = vmin.f32 %v7871_v42, 0.0  ;;  %v2893_v17 = vmin.f32 %v7874_v27, 0.0  ;;  %v2895_v13 = vmin.f32 %v7880_v62, 0.0  ;;  %v2896_v50 = vmin.f32 %v7883_v49, 0.0 }
 0x341   :  { %9712 = vst [vmem:[#allocation53_spill] sm:$0xff] %v8018_v18  ;;  %9713 = vst [vmem:[#allocation55_spill] sm:$0xff] %v8021_v39  ;;  %v2890_v39 = vmin.f32 %v7865_v7, 0.0  ;;  %v2891_v18 = vmin.f32 %v7868_v46, 0.0  ;;  %v8084_v51 = vld [vmem:[%s9226_s5] ss:$0 sm:$0xff] }
 0x342   :  { %9714 = vst [vmem:[#allocation68_spill] sm:$0xff] %v8024_v32  ;;  %v2889_v32 = vmin.f32 %v7862_v12, 0.0  ;;  %9715 = vst [vmem:[#allocation97_spill] sm:$0xff] %v8084_v51  ;;  %v2897_v59 = vmin.f32 %v7886_v23, 0.0  ;;  %v2898_v44 = vmin.f32 %v7889_v43, 0.0  ;;  %v2899_v8 = vmin.f32 %v7892_v22, 0.0 }
 0x343   :  { %v2900_v24 = vmin.f32 %v7895_v58, 0.0  ;;  %v2901_v52 = vmin.f32 %v7898_v9, 0.0  ;;  %v2902_v40 = vmin.f32 %v7901_v35, 0.0  ;;  %v2903_v53 = vmin.f32 %v7904_v20, 0.0 }
 0x344   :  { %v2904_v19 = vmin.f32 %v7907_v33, 0.0  ;;  %v2905_v49 = vmin.f32 %v7910_v10, 0.0  ;;  %v2906_v62 = vmin.f32 %v7913_v34, 0.0  ;;  %v2907_v23 = vmin.f32 %v7916_v15, 0.0 }
 0x345   :  { %v2908_v43 = vmin.f32 %v7919_v5, 0.0  ;;  %v2909_v22 = vmin.f32 %v7922_v56, 0.0  ;;  %v2950_v58 = vmul.f32 %v8084_v51, %v2876_v21  ;;  %v2951_v9 = vmul.f32 %v8084_v51, %v2877_v31 }
 0x346   :  { %v2952_v35 = vmul.f32 %v8084_v51, %v2878_v37  ;;  %v2953_v20 = vmul.f32 %v8084_v51, %v2879_v55  ;;  %v2954_v33 = vmul.f32 %v8084_v51, %v2880_v25  ;;  %v2955_v10 = vmul.f32 %v8084_v51, %v2881_v47 }
 0x347   :  { %v2956_v34 = vmul.f32 %v8084_v51, %v2882_v29  ;;  %v2957_v15 = vmul.f32 %v8084_v51, %v2883_v28  ;;  %v2958_v5 = vmul.f32 %v8084_v51, %v2884_v11  ;;  %v2959_v56 = vmul.f32 %v8084_v51, %v2885_v4 }
 0x348   :  { %v2960_v21 = vmul.f32 %v8084_v51, %v2886_v60  ;;  %v2961_v31 = vmul.f32 %v8084_v51, %v2887_v54  ;;  %v2962_v37 = vmul.f32 %v8084_v51, %v2888_v0  ;;  %v2963_v55 = vmul.f32 %v8084_v51, %v2889_v32 }
 0x349   :  { %v2964_v25 = vmul.f32 %v8084_v51, %v2890_v39  ;;  %v2965_v47 = vmul.f32 %v8084_v51, %v2891_v18  ;;  %v2966_v29 = vmul.f32 %v8084_v51, %v2892_v30  ;;  %v2967_v28 = vmul.f32 %v8084_v51, %v2893_v17 }
 0x34a   :  { %v2968_v11 = vmul.f32 %v8084_v51, %v2894_v36  ;;  %v2969_v4 = vmul.f32 %v8084_v51, %v2895_v13  ;;  %v2970_v60 = vmul.f32 %v8084_v51, %v2896_v50  ;;  %v2971_v54 = vmul.f32 %v8084_v51, %v2897_v59 }
 0x34b   :  { %v2972_v0 = vmul.f32 %v8084_v51, %v2898_v44  ;;  %v2973_v32 = vmul.f32 %v8084_v51, %v2899_v8  ;;  %v2974_v39 = vmul.f32 %v8084_v51, %v2900_v24  ;;  %v2975_v18 = vmul.f32 %v8084_v51, %v2901_v52 }
 0x34c   :  { %v2976_v30 = vmul.f32 %v8084_v51, %v2902_v40  ;;  %v2977_v17 = vmul.f32 %v8084_v51, %v2903_v53  ;;  %v2978_v36 = vmul.f32 %v8084_v51, %v2904_v19  ;;  %v2979_v13 = vmul.f32 %v8084_v51, %v2905_v49 }
 0x34d   :  { %v2980_v50 = vmul.f32 %v8084_v51, %v2906_v62  ;;  %v2981_v59 = vmul.f32 %v8084_v51, %v2907_v23  ;;  %v2982_v44 = vmul.f32 %v8084_v51, %v2908_v43  ;;  %v2983_v8 = vmul.f32 %v8084_v51, %v2909_v22 }
 0x34e   :  { %v9716_v24 = vmax.f32 %v7823_v48, 0.0  ;;  %v9717_v52 = vmax.f32 %v7826_v14, 0.0  ;;  %v9718_v53 = vmax.f32 %v7829_v6, 0.0  ;;  %v9719_v19 = vmax.f32 %v7832_v16, 0.0 }
 0x34f   :  { %v9720_v62 = vmax.f32 %v7835_v1, 0.0  ;;  %v9721_v23 = vmax.f32 %v7838_v38, 0.0  ;;  %v9722_v22 = vmax.f32 %v7841_v45, 0.0  ;;  %v9723_v48 = vmax.f32 %v7844_v63, 0.0 }
 0x350   :  { %v3018_v2 = vadd.f32 %v2950_v58, %v9716_v24  ;;  %v3019_v40 = vadd.f32 %v2951_v9, %v9717_v52  ;;  %v3020_v27 = vadd.f32 %v2952_v35, %v9718_v53  ;;  %v3021_v49 = vadd.f32 %v2953_v20, %v9719_v19  ;;  %v9748_v52 = vld [vmem:[#allocation57_spill] sm:$0xff] }
 0x351   :  { %v3022_v42 = vadd.f32 %v2954_v33, %v9720_v62  ;;  %v3023_v43 = vadd.f32 %v2955_v10, %v9721_v23  ;;  %v3024_v51 = vadd.f32 %v2956_v34, %v9722_v22  ;;  %v3025_v58 = vadd.f32 %v2957_v15, %v9723_v48  ;;  %v9754_v62 = vld [vmem:[#allocation90_spill] sm:$0xff]  ;;  %v9756_v22 = vld [vmem:[#allocation91_spill] sm:$0xff] }
 0x352   :  { %v9724_v14 = vmax.f32 %v7847_v41, 0.0  ;;  %3222 = vst.msk [vmem:[%s9221_s6 + $0x110] sm:$0xff] %vm25_vm1, %v3018_v2  ;;  %v9725_v6 = vmax.f32 %v7850_v57, 0.0  ;;  %v9726_v1 = vmax.f32 %v7853_v3, 0.0  ;;  %v9727_v45 = vmax.f32 %v7856_v61, 0.0  ;;  %3224 = vst.msk [vmem:[%s9221_s6 + $0x120] sm:$0xff] %vm25_vm1, %v3020_v27 }
 0x353   :  { %v9728_v63 = vmax.f32 %v7859_v26, 0.0  ;;  %3223 = vst.msk [vmem:[%s9221_s6 + $0x118] sm:$0x1] %vm27_vm2, %v3019_v40  ;;  %3225 = vst.msk [vmem:[%s9221_s6 + $0x128] sm:$0x1] %vm27_vm2, %v3021_v49  ;;  %v9729_v41 = vmax.f32 %v7862_v12, 0.0 }
 0x354   :  { %v3026_v9 = vadd.f32 %v2958_v5, %v9724_v14  ;;  %v3027_v16 = vadd.f32 %v2959_v56, %v9725_v6  ;;  %v3028_v38 = vadd.f32 %v2960_v21, %v9726_v1  ;;  %v3029_v35 = vadd.f32 %v2961_v31, %v9727_v45  ;;  %3226 = vst.msk [vmem:[%s9221_s6 + $0x130] sm:$0xff] %vm25_vm1, %v3022_v42  ;;  %v9732_v27 = vld [vmem:[#allocation75_spill] sm:$0xff]  ;;  %v9734_v12 = vld [vmem:[#allocation76_spill] sm:$0xff]  ;;  %v9736_v42 = vld [vmem:[#allocation78_spill] sm:$0xff] }
 0x355   :  { %v3030_v20 = vadd.f32 %v2962_v37, %v9728_v63  ;;  %v3031_v57 = vadd.f32 %v2963_v55, %v9729_v41  ;;  %v9730_v3 = vmax.f32 %v7865_v7, 0.0  ;;  %v9731_v26 = vmax.f32 %v7868_v46, 0.0  ;;  %3227 = vst.msk [vmem:[%s9221_s6 + $0x138] sm:$0x1] %vm27_vm2, %v3023_v43  ;;  %3229 = vst.msk [vmem:[%s9221_s6 + $0x148] sm:$0x1] %vm27_vm2, %v3025_v58 }
 0x356   :  { %v9733_v33 = vmax.f32 %v9732_v27, 0.0  ;;  %3228 = vst.msk [vmem:[%s9221_s6 + $0x140] sm:$0xff] %vm25_vm1, %v3024_v51  ;;  %3230 = vst.msk [vmem:[%s9221_s6 + $0x150] sm:$0xff] %vm25_vm1, %v3026_v9  ;;  %v9735_v7 = vmax.f32 %v9734_v12, 0.0  ;;  %v9737_v34 = vmax.f32 %v9736_v42, 0.0  ;;  %v9738_v5 = vld [vmem:[#allocation38_spill] sm:$0xff] }
 0x357   :  { %v3032_v61 = vadd.f32 %v2964_v25, %v9730_v3  ;;  %v3033_v2 = vadd.f32 %v2965_v47, %v9731_v26  ;;  %v9739_v56 = vmax.f32 %v9738_v5, 0.0  ;;  %v9740_v51 = vld [vmem:[#allocation39_spill] sm:$0xff]  ;;  %3231 = vst.msk [vmem:[%s9221_s6 + $0x158] sm:$0x1] %vm27_vm2, %v3027_v16  ;;  %3233 = vst.msk [vmem:[%s9221_s6 + $0x168] sm:$0x1] %vm27_vm2, %v3029_v35 }
 0x358   :  { %v3034_v10 = vadd.f32 %v2966_v29, %v9733_v33  ;;  %v3035_v46 = vadd.f32 %v2967_v28, %v9735_v7  ;;  %v3036_v15 = vadd.f32 %v2968_v11, %v9737_v34  ;;  %v9741_v31 = vmax.f32 %v9740_v51, 0.0  ;;  %3232 = vst.msk [vmem:[%s9221_s6 + $0x160] sm:$0xff] %vm25_vm1, %v3028_v38  ;;  %3234 = vst.msk [vmem:[%s9221_s6 + $0x170] sm:$0xff] %vm25_vm1, %v3030_v20  ;;  %v9742_v55 = vld [vmem:[#allocation46_spill] sm:$0xff]  ;;  %v9744_v29 = vld [vmem:[#allocation47_spill] sm:$0xff] }
 0x359   :  { %v3037_v21 = vadd.f32 %v2969_v4, %v9739_v56  ;;  %v9743_v25 = vmax.f32 %v9742_v55, 0.0  ;;  %v9745_v28 = vmax.f32 %v9744_v29, 0.0  ;;  %v9746_v4 = vld [vmem:[#allocation80_spill] sm:$0xff]  ;;  %v9749_v40 = vmax.f32 %v9748_v52, 0.0  ;;  %3235 = vst.msk [vmem:[%s9221_s6 + $0x178] sm:$0x1] %vm27_vm2, %v3031_v57 }
 0x35a   :  { %v3038_v37 = vadd.f32 %v2970_v60, %v9741_v31  ;;  %v9747_v60 = vmax.f32 %v9746_v4, 0.0  ;;  %3236 = vst.msk [vmem:[%s9221_s6 + $0x180] sm:$0xff] %vm25_vm1, %v3032_v61  ;;  %3238 = vst.msk [vmem:[%s9221_s6 + $0x190] sm:$0xff] %vm25_vm1, %v3034_v10  ;;  %v9755_v23 = vmax.f32 %v9754_v62, 0.0  ;;  %v9757_v48 = vmax.f32 %v9756_v22, 0.0  ;;  %v9762_v6 = vld [vmem:[#allocation94_spill] sm:$0xff] }
 0x35b   :  { %v3039_v47 = vadd.f32 %v2971_v54, %v9743_v25  ;;  %v3040_v11 = vadd.f32 %v2972_v0, %v9745_v28  ;;  %v3042_v53 = vadd.f32 %v2974_v39, %v9749_v40  ;;  %3237 = vst.msk [vmem:[%s9221_s6 + $0x188] sm:$0x1] %vm27_vm2, %v3033_v2  ;;  %v9750_v54 = vld [vmem:[#allocation67_spill] sm:$0xff]  ;;  %v9752_v39 = vld [vmem:[#allocation89_spill] sm:$0xff]  ;;  %3239 = vst.msk [vmem:[%s9221_s6 + $0x198] sm:$0x1] %vm27_vm2, %v3035_v46 }
 0x35c   :  { %v3041_v24 = vadd.f32 %v2973_v32, %v9747_v60  ;;  %v9751_v0 = vmax.f32 %v9750_v54, 0.0  ;;  %v9753_v19 = vmax.f32 %v9752_v39, 0.0  ;;  %v3045_v43 = vadd.f32 %v2977_v17, %v9755_v23  ;;  %3240 = vst.msk [vmem:[%s9221_s6 + $0x1a0] sm:$0xff] %vm25_vm1, %v3036_v15  ;;  %3242 = vst.msk [vmem:[%s9221_s6 + $0x1b0] sm:$0xff] %vm25_vm1, %v3038_v37  ;;  %v9764_v38 = vld [vmem:[#allocation95_spill] sm:$0xff]  ;;  %v9770_v57 = vld [vmem:[#allocation72_spill] sm:$0xff] }
 0x35d   :  { %v3046_v58 = vadd.f32 %v2978_v36, %v9757_v48  ;;  %3241 = vst.msk [vmem:[%s9221_s6 + $0x1a8] sm:$0x1] %vm27_vm2, %v3037_v21  ;;  %v9760_v36 = vld [vmem:[#allocation93_spill] sm:$0xff]  ;;  %v9763_v16 = vmax.f32 %v9762_v6, 0.0  ;;  %v9765_v45 = vmax.f32 %v9764_v38, 0.0  ;;  %v9769_v20 = vld [vmem:[#allocation71_spill] sm:$0xff] }
 0x35e   :  { %v3043_v32 = vadd.f32 %v2975_v18, %v9751_v0  ;;  %v3044_v49 = vadd.f32 %v2976_v30, %v9753_v19  ;;  %v9758_v18 = vld [vmem:[#allocation92_spill] sm:$0xff]  ;;  %v9761_v14 = vmax.f32 %v9760_v36, 0.0  ;;  %3243 = vst.msk [vmem:[%s9221_s6 + $0x1b8] sm:$0x1] %vm27_vm2, %v3039_v47  ;;  %3245 = vst.msk [vmem:[%s9221_s6 + $0x1c8] sm:$0x1] %vm27_vm2, %v3041_v24 }
 0x35f   :  { %v9759_v30 = vmax.f32 %v9758_v18, 0.0  ;;  %v3049_v1 = vadd.f32 %v2981_v59, %v9763_v16  ;;  %v3050_v35 = vadd.f32 %v2982_v44, %v9765_v45  ;;  %3244 = vst.msk [vmem:[%s9221_s6 + $0x1c0] sm:$0xff] %vm25_vm1, %v3040_v11  ;;  %3246 = vst.msk [vmem:[%s9221_s6 + $0x1d0] sm:$0xff] %vm25_vm1, %v3042_v53  ;;  %v9768_v44 = vld [vmem:[#allocation70_spill] sm:$0xff]  ;;  %v3070_v41 = vmax.f32 %v9769_v20, 0.0  ;;  %v9772_v26 = vld [vmem:[#allocation77_spill] sm:$0xff] }
 0x360   :  { %v3048_v9 = vadd.f32 %v2980_v50, %v9761_v14  ;;  %v3069_v63 = vmax.f32 %v9768_v44, 0.0  ;;  %v3071_v3 = vmax.f32 %v9770_v57, 0.0  ;;  %3247 = vst.msk [vmem:[%s9221_s6 + $0x1d8] sm:$0x1] %vm27_vm2, %v3043_v32  ;;  %3249 = vst.msk [vmem:[%s9221_s6 + $0x1e8] sm:$0x1] %vm27_vm2, %v3045_v43 }
 0x361   :  { %v3047_v17 = vadd.f32 %v2979_v13, %v9759_v30  ;;  %v9766_v13 = vld [vmem:[#allocation96_spill] sm:$0xff]  ;;  %3248 = vst.msk [vmem:[%s9221_s6 + $0x1e0] sm:$0xff] %vm25_vm1, %v3044_v49  ;;  %3250 = vst.msk [vmem:[%s9221_s6 + $0x1f0] sm:$0xff] %vm25_vm1, %v3046_v58  ;;  %v3073_v2 = vmax.f32 %v9772_v26, 0.0  ;;  %v9773_v27 = vld [vmem:[#allocation79_spill] sm:$0xff]  ;;  %v3103_v52 = vmin.f32 %v9768_v44, 0.0 }
 0x362   :  { %v9767_v50 = vmax.f32 %v9766_v13, 0.0  ;;  %v3074_v33 = vmax.f32 %v9773_v27, 0.0  ;;  %v9774_v10 = vld [vmem:[#allocation31_spill] sm:$0xff]  ;;  %3252 = vst.msk [vmem:[%s9221_s6 + $0x200] sm:$0xff] %vm25_vm1, %v3048_v9  ;;  %3254 = vst.msk [vmem:[%s9221_s6 + $0x210] sm:$0xff] %vm25_vm1, %v3050_v35  ;;  %v9775_v7 = vld [vmem:[#allocation36_spill] sm:$0xff] }
 0x363   :  { %v3075_v12 = vmax.f32 %v9774_v10, 0.0  ;;  %3251 = vst.msk [vmem:[%s9221_s6 + $0x1f8] sm:$0x1] %vm27_vm2, %v3047_v17  ;;  %3253 = vst.msk [vmem:[%s9221_s6 + $0x208] sm:$0x1] %vm27_vm2, %v3049_v1  ;;  %v3076_v46 = vmax.f32 %v9775_v7, 0.0 }
 0x364   :  { %v3051_v59 = vadd.f32 %v2983_v8, %v9767_v50  ;;  %v9771_v8 = vld [vmem:[#allocation73_spill] sm:$0xff]  ;;  %v9777_v15 = vld [vmem:[#allocation42_spill] sm:$0xff]  ;;  %v9778_v56 = vld [vmem:[#allocation44_spill] sm:$0xff]  ;;  %v3104_v40 = vmin.f32 %v9769_v20, 0.0  ;;  %v3105_v53 = vmin.f32 %v9770_v57, 0.0  ;;  %v3107_v0 = vmin.f32 %v9772_v26, 0.0 }
 0x365   :  { %v3072_v61 = vmax.f32 %v9771_v8, 0.0  ;;  %v9776_v42 = vld [vmem:[#allocation37_spill] sm:$0xff]  ;;  %v3078_v5 = vmax.f32 %v9777_v15, 0.0  ;;  %v3079_v21 = vmax.f32 %v9778_v56, 0.0  ;;  %v9781_v25 = vld [vmem:[#allocation51_spill] sm:$0xff]  ;;  %v9784_v60 = vld [vmem:[#allocation68_spill] sm:$0xff] }
 0x366   :  { %v3077_v34 = vmax.f32 %v9776_v42, 0.0  ;;  %3255 = vst.msk [vmem:[%s9221_s6 + $0x218] sm:$0x1] %vm27_vm2, %v3051_v59  ;;  %v9779_v51 = vld [vmem:[#allocation45_spill] sm:$0xff]  ;;  %v3082_v47 = vmax.f32 %v9781_v25, 0.0  ;;  %v9783_v11 = vld [vmem:[#allocation55_spill] sm:$0xff] }
 0x367   :  { %v3080_v31 = vmax.f32 %v9779_v51, 0.0  ;;  %v9780_v37 = vld [vmem:[#allocation49_spill] sm:$0xff]  ;;  %v3084_v4 = vmax.f32 %v9783_v11, 0.0  ;;  %v3085_v24 = vmax.f32 %v9784_v60, 0.0  ;;  %v3106_v54 = vmin.f32 %v9771_v8, 0.0 }
 0x368   :  { %v3081_v55 = vmax.f32 %v9780_v37, 0.0  ;;  %v9782_v29 = vld [vmem:[#allocation53_spill] sm:$0xff]  ;;  %v3108_v32 = vmin.f32 %v9773_v27, 0.0  ;;  %v3109_v39 = vmin.f32 %v9774_v10, 0.0  ;;  %v3110_v19 = vmin.f32 %v9775_v7, 0.0 }
 0x369   :  { %v3083_v28 = vmax.f32 %v9782_v29, 0.0  ;;  %v3111_v49 = vmin.f32 %v9776_v42, 0.0  ;;  %v3112_v62 = vmin.f32 %v9777_v15, 0.0  ;;  %v3113_v23 = vmin.f32 %v9778_v56, 0.0  ;;  %v9785_v17 = vld [vmem:[#allocation97_spill] sm:$0xff] }
 0x36a   :  { %v3114_v43 = vmin.f32 %v9779_v51, 0.0  ;;  %v3115_v22 = vmin.f32 %v9780_v37, 0.0  ;;  %v3116_v48 = vmin.f32 %v9781_v25, 0.0  ;;  %v3117_v58 = vmin.f32 %v9782_v29, 0.0 }
 0x36b   :  { %v3118_v18 = vmin.f32 %v9783_v11, 0.0  ;;  %v3119_v30 = vmin.f32 %v9784_v60, 0.0  ;;  %v3137_v36 = vmul.f32 %v9785_v17, %v3103_v52  ;;  %v3138_v14 = vmul.f32 %v9785_v17, %v3104_v40  ;;  %v9793_v52 = vld [vmem:[#allocation86_spill] sm:$0xff] }
 0x36c   :  { %v3139_v9 = vmul.f32 %v9785_v17, %v3105_v53  ;;  %v3140_v6 = vmul.f32 %v9785_v17, %v3106_v54  ;;  %v3141_v16 = vmul.f32 %v9785_v17, %v3107_v0  ;;  %v3142_v1 = vmul.f32 %v9785_v17, %v3108_v32  ;;  %v9794_v54 = vld [vmem:[#allocation87_spill] sm:$0xff] }
 0x36d   :  { %v3143_v38 = vmul.f32 %v9785_v17, %v3109_v39  ;;  %v3144_v45 = vmul.f32 %v9785_v17, %v3110_v19  ;;  %v3145_v35 = vmul.f32 %v9785_v17, %v3111_v49  ;;  %v3146_v13 = vmul.f32 %v9785_v17, %v3112_v62  ;;  %v9795_v32 = vld [vmem:[#allocation59_spill] sm:$0xff]  ;;  %v9796_v19 = vld [vmem:[#allocation52_spill] sm:$0xff] }
 0x36e   :  { %v3147_v50 = vmul.f32 %v9785_v17, %v3113_v23  ;;  %v3148_v59 = vmul.f32 %v9785_v17, %v3114_v43  ;;  %v3149_v44 = vmul.f32 %v9785_v17, %v3115_v22  ;;  %v3150_v20 = vmul.f32 %v9785_v17, %v3116_v48  ;;  %v9797_v62 = vld [vmem:[#allocation83_spill] sm:$0xff] }
 0x36f   :  { %v3151_v57 = vmul.f32 %v9785_v17, %v3117_v58  ;;  %v3152_v8 = vmul.f32 %v9785_v17, %v3118_v18  ;;  %v3153_v26 = vmul.f32 %v9785_v17, %v3119_v30  ;;  %v3171_v27 = vadd.f32 %v3137_v36, %v3069_v63  ;;  %v9798_v22 = vld [vmem:[#allocation63_spill] sm:$0xff] }
 0x370   :  { %v3172_v10 = vadd.f32 %v3138_v14, %v3070_v41  ;;  %v3173_v7 = vadd.f32 %v3139_v9, %v3071_v3  ;;  %v3174_v42 = vadd.f32 %v3140_v6, %v3072_v61  ;;  %v3175_v15 = vadd.f32 %v3141_v16, %v3073_v2  ;;  %v9799_v9 = vld [vmem:[#allocation64_spill] sm:$0xff] }
 0x371   :  { %v3176_v56 = vadd.f32 %v3142_v1, %v3074_v33  ;;  %v3177_v51 = vadd.f32 %v3143_v38, %v3075_v12  ;;  %v3178_v37 = vadd.f32 %v3144_v45, %v3076_v46  ;;  %v3179_v25 = vadd.f32 %v3145_v35, %v3077_v34  ;;  %3273 = vst.msk [vmem:[%s9222_s7 + $0x88] sm:$0xff] %vm25_vm1, %v3171_v27  ;;  %v9786_v33 = vld [vmem:[#allocation69_spill] sm:$0xff]  ;;  %v9787_v12 = vld [vmem:[#allocation58_spill] sm:$0xff]  ;;  %v9788_v34 = vld [vmem:[#allocation84_spill] sm:$0xff] }
 0x372   :  { %v3180_v29 = vadd.f32 %v3146_v13, %v3078_v5  ;;  %v3181_v11 = vadd.f32 %v3147_v50, %v3079_v21  ;;  %v3182_v60 = vadd.f32 %v3148_v59, %v3080_v31  ;;  %3274 = vst.msk [vmem:[%s9222_s7 + $0x90] sm:$0xff] %vm25_vm1, %v3172_v10  ;;  %3275 = vst.msk [vmem:[%s9222_s7 + $0x98] sm:$0xff] %vm25_vm1, %v3173_v7  ;;  %v9789_v5 = vld [vmem:[#allocation85_spill] sm:$0xff]  ;;  %v9790_v31 = vld [vmem:[#allocation50_spill] sm:$0xff]  ;;  %v2399_v40 = vsel %vm25_vm1, %v9793_v52, 0.0 }
 0x373   :  { %3276 = vst.msk [vmem:[%s9222_s7 + $0xa0] sm:$0xff] %vm25_vm1, %v3174_v42  ;;  %v3183_v63 = vadd.f32 %v3149_v44, %v3081_v55  ;;  %v3184_v41 = vadd.f32 %v3150_v20, %v3082_v47  ;;  %v3185_v3 = vadd.f32 %v3151_v57, %v3083_v28  ;;  %v3186_v61 = vadd.f32 %v3152_v8, %v3084_v4  ;;  %v9791_v47 = vld [vmem:[#allocation82_spill] sm:$0xff]  ;;  %v9792_v4 = vld [vmem:[#allocation81_spill] sm:$0xff] }
 0x374   :  { %3277 = vst.msk [vmem:[%s9222_s7 + $0xa8] sm:$0xff] %vm25_vm1, %v3175_v15  ;;  %3278 = vst.msk [vmem:[%s9222_s7 + $0xb0] sm:$0xff] %vm25_vm1, %v3176_v56  ;;  %v3187_v2 = vadd.f32 %v3153_v26, %v3085_v24  ;;  %v8438_v46 = vsub.f32 %v9787_v12, %v9786_v33  ;;  %v2238_v21 = vadd.f32 %v9789_v5, %v9788_v34  ;;  %v2239_v28 = vsel %vm27_vm2, %v9791_v47, 0.0  ;;  %v9800_v45 = vld [vmem:[#allocation66_spill] sm:$0xff]  ;;  %v9802_v47 = vld [vmem:[#allocation3_spill] sm:$0xff] }
 0x375   :  { %3279 = vst.msk [vmem:[%s9222_s7 + $0xb8] sm:$0xff] %vm25_vm1, %v3177_v51  ;;  %3280 = vst.msk [vmem:[%s9222_s7 + $0xc0] sm:$0xff] %vm25_vm1, %v3178_v37  ;;  %v2149_v55 = vmul.f32 %v9790_v31, %v9790_v31  ;;  %v2352_v24 = vmul.f32 %v9792_v4, %v9792_v4  ;;  %v2400_v0 = vadd.f32 %v2399_v40, %v9794_v54  ;;  %v2241_v23 = vsel %vm25_vm1, %v9797_v62, 0.0  ;;  %v9804_v40 = vld [vmem:[#allocation5_spill] sm:$0xff]  ;;  %v9805_v54 = vld [vmem:[#allocation6_spill] sm:$0xff] }
 0x376   :  { %3281 = vst.msk [vmem:[%s9222_s7 + $0xc8] sm:$0xff] %vm25_vm1, %v3179_v25  ;;  %3282 = vst.msk [vmem:[%s9222_s7 + $0xd0] sm:$0xff] %vm25_vm1, %v3180_v29  ;;  %v2240_v53 = vadd.f32 %v2239_v28, %v2238_v21  ;;  %v8473_v39 = vsub.f32 %v9795_v32, %v9786_v33  ;;  %v2150_v49 = vmul.f32 %v9796_v19, %v9796_v19  ;;  %v9801_v21 = vld [vmem:[#allocation2_spill] sm:$0xff]  ;;  %v9806_v32 = vld [vmem:[#allocation7_spill] sm:$0xff] }
 0x377   :  { %3283 = vst.msk [vmem:[%s9222_s7 + $0xd8] sm:$0xff] %vm25_vm1, %v3181_v11  ;;  %3284 = vst.msk [vmem:[%s9222_s7 + $0xe0] sm:$0xff] %vm25_vm1, %v3182_v60  ;;  %v8481_v48 = vsub.f32 %v9798_v22, %v9786_v33  ;;  %v2151_v58 = vmul.f32 %v8438_v46, %v8438_v46  ;;  %v2243_v18 = vsel %vm27_vm2, %v2149_v55, 0.0  ;;  %v2401_v30 = vsel %vm25_vm1, %v2352_v24, 0.0  ;;  %v9803_v24 = vld [vmem:[#allocation4_spill] sm:$0xff] }
 0x378   :  { %3285 = vst.msk [vmem:[%s9222_s7 + $0xe8] sm:$0xff] %vm25_vm1, %v3183_v63  ;;  %3286 = vst.msk [vmem:[%s9222_s7 + $0xf0] sm:$0xff] %vm25_vm1, %v3184_v41  ;;  %v2242_v43 = vadd.f32 %v2241_v23, %v2240_v53  ;;  %v2402_v14 = vadd.f32 %v2401_v30, %v2400_v0  ;;  %v8489_v6 = vsub.f32 %v9799_v9, %v9786_v33  ;;  %v2245_v1 = vsel %vm25_vm1, %v2150_v49, 0.0  ;;  %v9807_v62 = vld [vmem:[#allocation8_spill] sm:$0xff]  ;;  %v9810_v30 = vld [vmem:[#allocation11_spill] sm:$0xff] }
 0x379   :  { %3287 = vst.msk [vmem:[%s9222_s7 + $0xf8] sm:$0xff] %vm25_vm1, %v3185_v3  ;;  %3288 = vst.msk [vmem:[%s9222_s7 + $0x100] sm:$0xff] %vm25_vm1, %v3186_v61  ;;  %v2152_v16 = vmul.f32 %v8473_v39, %v8473_v39  ;;  %v8496_v35 = vsub.f32 %v9800_v45, %v9786_v33  ;;  %v2153_v13 = vmul.f32 %v8481_v48, %v8481_v48  ;;  %v2247_v50 = vsel %vm27_vm2, %v2151_v58, 0.0  ;;  %v9809_v58 = vld [vmem:[#allocation10_spill] sm:$0xff] }
 0x37a   :  { %3289 = vst.msk [vmem:[%s9222_s7 + $0x108] sm:$0xff] %vm25_vm1, %v3187_v2  ;;  %v2244_v36 = vadd.f32 %v2243_v18, %v2242_v43  ;;  %v2403_v44 = vrot.slane %v2402_v14, 4  ;;  %v2154_v20 = vmul.f32 %v8489_v6, %v8489_v6  ;;  %v9808_v43 = vld [vmem:[#allocation9_spill] sm:$0xff] }
 0x37b   :  { %v2249_v57 = vsel %vm25_vm1, %v2152_v16, 0.0  ;;  %v2155_v26 = vmul.f32 %v8496_v35, %v8496_v35  ;;  %v2251_v27 = vsel %vm27_vm2, %v2153_v13, 0.0  ;;  %v9812_v16 = vld [vmem:[#allocation13_spill] sm:$0xff]  ;;  %v9814_v13 = vld [vmem:[#allocation15_spill] sm:$0xff] }
 0x37c   :  { %v2246_v38 = vadd.f32 %v2245_v1, %v2244_v36  ;;  %v2404_v7 = vadd.f32 %v2403_v44, %v2402_v14  ;;  %v2253_v42 = vsel %vm25_vm1, %v2154_v20, 0.0  ;;  %v9811_v14 = vld [vmem:[#allocation12_spill] sm:$0xff]  ;;  %v9816_v20 = vld [vmem:[#allocation17_spill] sm:$0xff] }
 0x37d   :  { %v2255_v56 = vsel %vm27_vm2, %v2155_v26, 0.0 }
 0x37e   :  { %v2248_v59 = vadd.f32 %v2247_v50, %v2246_v38  ;;  %v2405_v37 = vrot.slane %v2404_v7, 2  ;;  %v9813_v38 = vld [vmem:[#allocation14_spill] sm:$0xff] }
 0x380   :  { %v2250_v8 = vadd.f32 %v2249_v57, %v2248_v59  ;;  %v2406_v11 = vadd.f32 %v2405_v37, %v2404_v7  ;;  %v9815_v59 = vld [vmem:[#allocation16_spill] sm:$0xff] }
 0x381   :  { %v9819_v7 = vld [vmem:[#allocation24_spill] sm:$0xff] }
 0x382   :  { %v2252_v10 = vadd.f32 %v2251_v27, %v2250_v8  ;;  %v2407_v41 = vrot.slane %v2406_v11, 1  ;;  %v9817_v8 = vld [vmem:[#allocation18_spill] sm:$0xff]  ;;  %v9818_v27 = vld [vmem:[#allocation21_spill] sm:$0xff] }
 0x384   :  { %v2254_v15 = vadd.f32 %v2253_v42, %v2252_v10  ;;  %v2408_v2 = vadd.f32 %v2407_v41, %v2406_v11  ;;  %v9823_v11 = vld [vmem:[#allocation32_spill] sm:$0xff] }
 0x386   :  { %v2256_v51 = vadd.f32 %v2255_v56, %v2254_v15  ;;  %v9820_v15 = vld [vmem:[#allocation25_spill] sm:$0xff] }
 0x388   :  { %v2257_v25 = vrot.slane %v2256_v51, 4 }
 0x38a   :  { %v2258_v29 = vadd.f32 %v2257_v25, %v2256_v51  ;;  %v9821_v51 = vld [vmem:[#allocation26_spill] sm:$0xff]  ;;  %v9822_v25 = vld [vmem:[#allocation29_spill] sm:$0xff] }
 0x38c   :  { %v2259_v60 = vrot.slane %v2258_v29, 2 }
 0x38e   :  { %v2260_v63 = vadd.f32 %v2259_v60, %v2258_v29 }
 0x390   :  { %v2261_v3 = vrot.slane %v2260_v63, 1 }
 0x392   :  { %v2262_v61 = vadd.f32 %v2261_v3, %v2260_v63  ;;  %v9824_v63 = vld [vmem:[#allocation34_spill] sm:$0xff]  ;;  %v9825_v3 = vld [vmem:[#allocation35_spill] sm:$0xff] }
 0x394   :  { %v2448_v33 = vadd.f32 %v2408_v2, %v2262_v61  ;;  %v9826_v2 = vld [vmem:[#allocation40_spill] sm:$0xff] }
 0x396   :  { %v2450_v12 = vmul.f32 0.0034602077, %v2448_v33 }
 0x398   :  { %v2452_v34 = vadd.f32 1e-05, %v2450_v12  ;;  %v9827_v12 = vld [vmem:[#allocation41_spill] sm:$0xff] }
 0x39a   :  { %3638 = vrsqrt.f32 %v2452_v34 }
 0x3a4   :  { %v8509_v5 = vpop.eup %3638 }
 0x3a5   :  { %v2456_v55 = vmul.f32 %v8509_v5, %v9801_v21  ;;  %v2457_v28 = vmul.f32 %v8509_v5, %v9802_v47  ;;  %v2458_v52 = vmul.f32 %v8509_v5, %v9803_v24  ;;  %v2459_v53 = vmul.f32 %v8509_v5, %v9804_v40 }
 0x3a6   :  { %v2460_v0 = vmul.f32 %v8509_v5, %v9805_v54  ;;  %v2461_v49 = vmul.f32 %v8509_v5, %v9806_v32  ;;  %v2462_v23 = vmul.f32 %v8509_v5, %v9807_v62  ;;  %v2463_v22 = vmul.f32 %v8509_v5, %v9808_v43  ;;  %v9828_v43 = vld [vmem:[#allocation88_spill] sm:$0xff] }
 0x3a7   :  { %v2464_v18 = vmul.f32 %v8509_v5, %v9809_v58  ;;  %v2465_v36 = vmul.f32 %v8509_v5, %v9810_v30  ;;  %v2466_v9 = vmul.f32 %v8509_v5, %v9811_v14  ;;  %v2467_v1 = vmul.f32 %v8509_v5, %v9812_v16 }
 0x3a8   :  { %v2468_v45 = vmul.f32 %v8509_v5, %v9813_v38  ;;  %v2469_v50 = vmul.f32 %v8509_v5, %v9814_v13  ;;  %v2470_v44 = vmul.f32 %v8509_v5, %v9815_v59  ;;  %v2471_v57 = vmul.f32 %v8509_v5, %v9816_v20 }
 0x3a9   :  { %v2472_v26 = vmul.f32 %v8509_v5, %v9817_v8  ;;  %v2473_v10 = vmul.f32 %v8509_v5, %v9818_v27  ;;  %v2474_v42 = vmul.f32 %v8509_v5, %v9819_v7  ;;  %v2475_v56 = vmul.f32 %v8509_v5, %v9820_v15  ;;  %v9829_v7 = vld [vmem:[#allocation74_spill] sm:$0xff] }
 0x3aa   :  { %v2476_v37 = vmul.f32 %v8509_v5, %v9821_v51  ;;  %v2477_v29 = vmul.f32 %v8509_v5, %v9822_v25  ;;  %v2478_v60 = vmul.f32 %v8509_v5, %v9823_v11  ;;  %v2479_v41 = vmul.f32 %v8509_v5, %v9824_v63 }
 0x3ab   :  { %v2480_v61 = vmul.f32 %v8509_v5, %v9825_v3  ;;  %v2481_v33 = vmul.f32 %v8509_v5, %v9826_v2  ;;  %v2482_v34 = vmul.f32 %v8509_v5, %v9827_v12  ;;  %v2483_v21 = vmul.f32 %v8509_v5, %v9790_v31 }
 0x3ac   :  { %v2484_v47 = vmul.f32 %v8509_v5, %v9796_v19  ;;  %v2485_v24 = vmul.f32 %v8509_v5, %v8438_v46  ;;  %v2486_v40 = vmul.f32 %v8509_v5, %v8473_v39  ;;  %v2487_v54 = vmul.f32 %v8509_v5, %v8481_v48 }
 0x3ad   :  { %v2488_v32 = vmul.f32 %v8509_v5, %v8489_v6  ;;  %v2489_v62 = vmul.f32 %v8509_v5, %v8496_v35  ;;  %v2530_v31 = vmul.f32 %v9828_v43, %v2456_v55  ;;  %v2531_v58 = vmul.f32 %v9828_v43, %v2457_v28 }
 0x3ae   :  { %v2532_v19 = vmul.f32 %v9828_v43, %v2458_v52  ;;  %v2533_v46 = vmul.f32 %v9828_v43, %v2459_v53  ;;  %v2534_v30 = vmul.f32 %v9828_v43, %v2460_v0  ;;  %v2535_v39 = vmul.f32 %v9828_v43, %v2461_v49 }
 0x3af   :  { %v2536_v48 = vmul.f32 %v9828_v43, %v2462_v23  ;;  %v2537_v14 = vmul.f32 %v9828_v43, %v2463_v22  ;;  %v2538_v6 = vmul.f32 %v9828_v43, %v2464_v18  ;;  %v2539_v35 = vmul.f32 %v9828_v43, %v2465_v36 }
 0x3b0   :  { %v2540_v55 = vmul.f32 %v9828_v43, %v2466_v9  ;;  %v2541_v28 = vmul.f32 %v9828_v43, %v2467_v1  ;;  %v2542_v52 = vmul.f32 %v9828_v43, %v2468_v45  ;;  %v2543_v53 = vmul.f32 %v9828_v43, %v2469_v50 }
 0x3b1   :  { %v2544_v0 = vmul.f32 %v9828_v43, %v2470_v44  ;;  %v2545_v49 = vmul.f32 %v9828_v43, %v2471_v57  ;;  %v2546_v23 = vmul.f32 %v9828_v43, %v2472_v26  ;;  %v2547_v22 = vmul.f32 %v9828_v43, %v2473_v10  ;;  %v8614_v26 = vld [vmem:[%s9224_s3] ss:$0 sm:$0xff] }
 0x3b2   :  { %v2548_v18 = vmul.f32 %v9828_v43, %v2474_v42  ;;  %v2549_v36 = vmul.f32 %v9828_v43, %v2475_v56  ;;  %v2550_v9 = vmul.f32 %v9828_v43, %v2476_v37  ;;  %v2551_v16 = vmul.f32 %v9828_v43, %v2477_v29 }
 0x3b3   :  { %v2552_v1 = vmul.f32 %v9828_v43, %v2478_v60  ;;  %v2553_v38 = vmul.f32 %v9828_v43, %v2479_v41  ;;  %v2554_v45 = vmul.f32 %v9828_v43, %v2480_v61  ;;  %v2555_v13 = vmul.f32 %v9828_v43, %v2481_v33 }
 0x3b4   :  { %v2556_v50 = vmul.f32 %v9828_v43, %v2482_v34  ;;  %v2557_v59 = vmul.f32 %v9828_v43, %v2483_v21  ;;  %v2558_v44 = vmul.f32 %v9828_v43, %v2484_v47  ;;  %v2559_v20 = vmul.f32 %v9828_v43, %v2485_v24 }
 0x3b5   :  { %v2560_v57 = vmul.f32 %v9828_v43, %v2486_v40  ;;  %v2561_v8 = vmul.f32 %v9828_v43, %v2487_v54  ;;  %v2562_v27 = vmul.f32 %v8614_v26, %v2488_v32  ;;  %v2563_v10 = vmul.f32 %v8614_v26, %v2489_v62 }
 0x3b6   :  { %v8619_v42 = vadd.f32 %v9829_v7, %v2530_v31  ;;  %v8622_v15 = vadd.f32 %v9829_v7, %v2531_v58  ;;  %v8625_v56 = vadd.f32 %v9829_v7, %v2532_v19  ;;  %v8628_v51 = vadd.f32 %v9829_v7, %v2533_v46 }
 0x3b7   :  { %v8631_v37 = vadd.f32 %v9829_v7, %v2534_v30  ;;  %v8634_v25 = vadd.f32 %v9829_v7, %v2535_v39  ;;  %v8637_v29 = vadd.f32 %v9829_v7, %v2536_v48  ;;  %v8640_v11 = vadd.f32 %v9829_v7, %v2537_v14 }
 0x3b8   :  { %v8643_v60 = vadd.f32 %v9829_v7, %v2538_v6  ;;  %v8646_v63 = vadd.f32 %v9829_v7, %v2539_v35  ;;  %v8649_v41 = vadd.f32 %v9829_v7, %v2540_v55  ;;  %v8652_v3 = vadd.f32 %v9829_v7, %v2541_v28  ;;  %v9848_v35 = vld [vmem:[#allocation19_spill] sm:$0xff]  ;;  %v9849_v28 = vld [vmem:[#allocation20_spill] sm:$0xff] }
 0x3b9   :  { %v8655_v61 = vadd.f32 %v9829_v7, %v2542_v52  ;;  %v8658_v2 = vadd.f32 %v9829_v7, %v2543_v53  ;;  %v8661_v33 = vadd.f32 %v9829_v7, %v2544_v0  ;;  %v8664_v12 = vadd.f32 %v9829_v7, %v2545_v49  ;;  %v9850_v53 = vld [vmem:[#allocation22_spill] sm:$0xff]  ;;  %v9851_v49 = vld [vmem:[#allocation23_spill] sm:$0xff] }
 0x3ba   :  { %v8667_v34 = vadd.f32 %v9829_v7, %v2546_v23  ;;  %v8670_v21 = vadd.f32 %v9829_v7, %v2547_v22  ;;  %v8673_v47 = vadd.f32 %v9829_v7, %v2548_v18  ;;  %v8676_v24 = vadd.f32 %v9829_v7, %v2549_v36  ;;  %v9852_v22 = vld [vmem:[#allocation27_spill] sm:$0xff]  ;;  %v9853_v36 = vld [vmem:[#allocation28_spill] sm:$0xff] }
 0x3bb   :  { %v8679_v40 = vadd.f32 %v9829_v7, %v2550_v9  ;;  %v8682_v54 = vadd.f32 %v9829_v7, %v2551_v16  ;;  %v8685_v32 = vadd.f32 %v9829_v7, %v2552_v1  ;;  %v8688_v62 = vadd.f32 %v9829_v7, %v2553_v38  ;;  %v9854_v16 = vld [vmem:[#allocation30_spill] sm:$0xff]  ;;  %v9855_v38 = vld [vmem:[#allocation33_spill] sm:$0xff] }
 0x3bc   :  { %9830 = vst [vmem:[#allocation75_spill] sm:$0xff] %v8667_v34  ;;  %9831 = vst [vmem:[#allocation76_spill] sm:$0xff] %v8670_v21  ;;  %v8691_v43 = vadd.f32 %v9829_v7, %v2554_v45  ;;  %v8694_v31 = vadd.f32 %v9829_v7, %v2555_v13  ;;  %v8697_v58 = vadd.f32 %v9829_v7, %v2556_v50  ;;  %v9856_v13 = vld [vmem:[#allocation43_spill] sm:$0xff] }
 0x3bd   :  { %9832 = vst [vmem:[#allocation78_spill] sm:$0xff] %v8673_v47  ;;  %9833 = vst [vmem:[#allocation38_spill] sm:$0xff] %v8676_v24  ;;  %v8700_v19 = vadd.f32 %v9829_v7, %v2557_v59  ;;  %v8703_v46 = vadd.f32 %v9829_v7, %v2558_v44  ;;  %v8706_v30 = vadd.f32 %v9829_v7, %v2559_v20  ;;  %v9857_v59 = vld [vmem:[#allocation48_spill] sm:$0xff]  ;;  %v9858_v20 = vld [vmem:[#allocation54_spill] sm:$0xff] }
 0x3be   :  { %9834 = vst [vmem:[#allocation39_spill] sm:$0xff] %v8679_v40  ;;  %9835 = vst [vmem:[#allocation46_spill] sm:$0xff] %v8682_v54  ;;  %v8709_v39 = vadd.f32 %v9829_v7, %v2560_v57  ;;  %v8712_v48 = vadd.f32 %v9829_v7, %v2561_v8  ;;  %v8715_v14 = vadd.f32 %v9829_v7, %v2562_v27  ;;  %v9859_v8 = vld [vmem:[#allocation56_spill] sm:$0xff] }
 0x3bf   :  { %9836 = vst [vmem:[#allocation47_spill] sm:$0xff] %v8685_v32  ;;  %9837 = vst [vmem:[#allocation80_spill] sm:$0xff] %v8688_v62  ;;  %v8718_v6 = vadd.f32 %v9829_v7, %v2563_v10  ;;  %v2672_v55 = vmul.f32 %v8509_v5, %v9848_v35  ;;  %v2673_v52 = vmul.f32 %v8509_v5, %v9849_v28  ;;  %v9860_v10 = vld [vmem:[#allocation60_spill] sm:$0xff]  ;;  %v9861_v35 = vld [vmem:[#allocation61_spill] sm:$0xff] }
 0x3c0   :  { %9838 = vst [vmem:[#allocation57_spill] sm:$0xff] %v8691_v43  ;;  %9839 = vst [vmem:[#allocation67_spill] sm:$0xff] %v8694_v31  ;;  %v2674_v0 = vmul.f32 %v8509_v5, %v9850_v53  ;;  %v2675_v23 = vmul.f32 %v8509_v5, %v9851_v49  ;;  %v2676_v18 = vmul.f32 %v8509_v5, %v9852_v22  ;;  %v9862_v53 = vld [vmem:[#allocation62_spill] sm:$0xff]  ;;  %v9863_v22 = vld [vmem:[#allocation65_spill] sm:$0xff] }
 0x3c1   :  { %9840 = vst [vmem:[#allocation89_spill] sm:$0xff] %v8697_v58  ;;  %9841 = vst [vmem:[#allocation90_spill] sm:$0xff] %v8700_v19  ;;  %v2677_v9 = vmul.f32 %v8509_v5, %v9853_v36  ;;  %v2678_v1 = vmul.f32 %v8509_v5, %v9854_v16  ;;  %v2679_v45 = vmul.f32 %v8509_v5, %v9855_v38 }
 0x3c2   :  { %9842 = vst [vmem:[#allocation91_spill] sm:$0xff] %v8703_v46  ;;  %9843 = vst [vmem:[#allocation92_spill] sm:$0xff] %v8706_v30  ;;  %v2680_v50 = vmul.f32 %v8509_v5, %v9856_v13  ;;  %v2681_v44 = vmul.f32 %v8509_v5, %v9857_v59  ;;  %v2682_v57 = vmul.f32 %v8509_v5, %v9858_v20 }
 0x3c3   :  { %9844 = vst [vmem:[#allocation93_spill] sm:$0xff] %v8709_v39  ;;  %9845 = vst [vmem:[#allocation94_spill] sm:$0xff] %v8712_v48  ;;  %v2683_v27 = vmul.f32 %v8509_v5, %v9859_v8  ;;  %v2684_v7 = vmul.f32 %v8509_v5, %v9860_v10  ;;  %v2685_v28 = vmul.f32 %v8509_v5, %v9861_v35 }
 0x3c4   :  { %9846 = vst [vmem:[#allocation95_spill] sm:$0xff] %v8715_v14  ;;  %9847 = vst [vmem:[#allocation96_spill] sm:$0xff] %v8718_v6  ;;  %v2686_v49 = vmul.f32 %v8509_v5, %v9862_v53  ;;  %v2687_v36 = vmul.f32 %v8509_v5, %v9863_v22  ;;  %v2688_v16 = vmul.f32 %v8509_v5, %v9792_v4 }
 0x3c5   :  { %v2706_v38 = vmul.f32 %v8614_v26, %v2672_v55  ;;  %v2707_v13 = vmul.f32 %v8614_v26, %v2673_v52  ;;  %v2708_v59 = vmul.f32 %v8614_v26, %v2674_v0  ;;  %v2709_v20 = vmul.f32 %v8614_v26, %v2675_v23 }
 0x3c6   :  { %v2710_v8 = vmul.f32 %v8614_v26, %v2676_v18  ;;  %v2711_v10 = vmul.f32 %v8614_v26, %v2677_v9  ;;  %v2712_v35 = vmul.f32 %v8614_v26, %v2678_v1  ;;  %v2713_v53 = vmul.f32 %v8614_v26, %v2679_v45  ;;  %v3642_v1 = vld [vmem:[%s9225_s4] ss:$0 sm:$0xff] }
 0x3c7   :  { %v2714_v22 = vmul.f32 %v8614_v26, %v2680_v50  ;;  %v2715_v4 = vmul.f32 %v8614_v26, %v2681_v44  ;;  %v2716_v5 = vmul.f32 %v8614_v26, %v2682_v57  ;;  %v2717_v55 = vmul.f32 %v8614_v26, %v2683_v27 }
 0x3c8   :  { %v2718_v52 = vmul.f32 %v8614_v26, %v2684_v7  ;;  %v2719_v0 = vmul.f32 %v8614_v26, %v2685_v28  ;;  %v2720_v23 = vmul.f32 %v8614_v26, %v2686_v49  ;;  %v2721_v18 = vmul.f32 %v8614_v26, %v2687_v36 }
 0x3c9   :  { %v2722_v9 = vmul.f32 %v8614_v26, %v2688_v16  ;;  %v8774_v45 = vadd.f32 %v3642_v1, %v2706_v38  ;;  %v8776_v50 = vadd.f32 %v3642_v1, %v2707_v13  ;;  %v8778_v44 = vadd.f32 %v3642_v1, %v2708_v59 }
 0x3ca   :  { %v8780_v57 = vadd.f32 %v3642_v1, %v2709_v20  ;;  %v8782_v27 = vadd.f32 %v3642_v1, %v2710_v8  ;;  %v8784_v7 = vadd.f32 %v3642_v1, %v2711_v10  ;;  %v8786_v28 = vadd.f32 %v3642_v1, %v2712_v35 }
 0x3cb   :  { %9864 = vst [vmem:[#allocation70_spill] sm:$0xff] %v8774_v45  ;;  %9865 = vst [vmem:[#allocation71_spill] sm:$0xff] %v8776_v50  ;;  %v8788_v49 = vadd.f32 %v3642_v1, %v2713_v53  ;;  %v8790_v26 = vadd.f32 %v3642_v1, %v2714_v22  ;;  %v8792_v36 = vadd.f32 %v3642_v1, %v2715_v4  ;;  %v2850_v22 = vmin.f32 %v8643_v60, 0.0 }
 0x3cc   :  { %9866 = vst [vmem:[#allocation72_spill] sm:$0xff] %v8778_v44  ;;  %9867 = vst [vmem:[#allocation73_spill] sm:$0xff] %v8780_v57  ;;  %v8794_v16 = vadd.f32 %v3642_v1, %v2716_v5  ;;  %v8796_v38 = vadd.f32 %v3642_v1, %v2717_v55  ;;  %v8798_v13 = vadd.f32 %v3642_v1, %v2718_v52  ;;  %v2842_v5 = vmin.f32 %v8619_v42, 0.0 }
 0x3cd   :  { %9868 = vst [vmem:[#allocation77_spill] sm:$0xff] %v8782_v27  ;;  %9869 = vst [vmem:[#allocation79_spill] sm:$0xff] %v8784_v7  ;;  %v8800_v59 = vadd.f32 %v3642_v1, %v2719_v0  ;;  %v8802_v20 = vadd.f32 %v3642_v1, %v2720_v23  ;;  %v8804_v8 = vadd.f32 %v3642_v1, %v2721_v18  ;;  %v2843_v55 = vmin.f32 %v8622_v15, 0.0 }
 0x3ce   :  { %9870 = vst [vmem:[#allocation31_spill] sm:$0xff] %v8786_v28  ;;  %9871 = vst [vmem:[#allocation36_spill] sm:$0xff] %v8788_v49  ;;  %v8806_v10 = vadd.f32 %v3642_v1, %v2722_v9  ;;  %v2844_v52 = vmin.f32 %v8625_v56, 0.0  ;;  %v2845_v0 = vmin.f32 %v8628_v51, 0.0  ;;  %v2846_v23 = vmin.f32 %v8631_v37, 0.0 }
 0x3cf   :  { %9872 = vst [vmem:[#allocation37_spill] sm:$0xff] %v8790_v26  ;;  %9873 = vst [vmem:[#allocation42_spill] sm:$0xff] %v8792_v36  ;;  %v2847_v18 = vmin.f32 %v8634_v25, 0.0  ;;  %v2848_v9 = vmin.f32 %v8637_v29, 0.0  ;;  %v2849_v1 = vmin.f32 %v8640_v11, 0.0  ;;  %v2851_v4 = vmin.f32 %v8646_v63, 0.0 }
 0x3d0   :  { %9874 = vst [vmem:[#allocation44_spill] sm:$0xff] %v8794_v16  ;;  %9875 = vst [vmem:[#allocation45_spill] sm:$0xff] %v8796_v38  ;;  %v2852_v53 = vmin.f32 %v8649_v41, 0.0  ;;  %v2853_v35 = vmin.f32 %v8652_v3, 0.0  ;;  %v2859_v38 = vmin.f32 %v8670_v21, 0.0  ;;  %v2860_v16 = vmin.f32 %v8673_v47, 0.0 }
 0x3d1   :  { %9876 = vst [vmem:[#allocation49_spill] sm:$0xff] %v8798_v13  ;;  %9877 = vst [vmem:[#allocation51_spill] sm:$0xff] %v8800_v59  ;;  %v2857_v59 = vmin.f32 %v8664_v12, 0.0  ;;  %v2858_v13 = vmin.f32 %v8667_v34, 0.0  ;;  %v2861_v36 = vmin.f32 %v8676_v24, 0.0  ;;  %v2862_v26 = vmin.f32 %v8679_v40, 0.0 }
 0x3d2   :  { %9878 = vst [vmem:[#allocation53_spill] sm:$0xff] %v8802_v20  ;;  %9879 = vst [vmem:[#allocation55_spill] sm:$0xff] %v8804_v8  ;;  %v2855_v8 = vmin.f32 %v8658_v2, 0.0  ;;  %v2856_v20 = vmin.f32 %v8661_v33, 0.0  ;;  %v2863_v49 = vmin.f32 %v8682_v54, 0.0  ;;  %v2864_v28 = vmin.f32 %v8685_v32, 0.0 }
 0x3d3   :  { %9880 = vst [vmem:[#allocation68_spill] sm:$0xff] %v8806_v10  ;;  %v2854_v10 = vmin.f32 %v8655_v61, 0.0  ;;  %v2865_v7 = vmin.f32 %v8688_v62, 0.0  ;;  %v2866_v27 = vmin.f32 %v8691_v43, 0.0  ;;  %v2867_v57 = vmin.f32 %v8694_v31, 0.0 }
 0x3d4   :  { %v2868_v44 = vmin.f32 %v8697_v58, 0.0  ;;  %v2869_v50 = vmin.f32 %v8700_v19, 0.0  ;;  %v2870_v45 = vmin.f32 %v8703_v46, 0.0  ;;  %v2871_v24 = vmin.f32 %v8706_v30, 0.0 }
 0x3d5   :  { %v2872_v40 = vmin.f32 %v8709_v39, 0.0  ;;  %v2873_v54 = vmin.f32 %v8712_v48, 0.0  ;;  %v2874_v32 = vmin.f32 %v8715_v14, 0.0  ;;  %v2875_v62 = vmin.f32 %v8718_v6, 0.0 }
 0x3d6   :  { %v2916_v43 = vmul.f32 %v9785_v17, %v2842_v5  ;;  %v2917_v31 = vmul.f32 %v9785_v17, %v2843_v55  ;;  %v2918_v58 = vmul.f32 %v9785_v17, %v2844_v52  ;;  %v2919_v19 = vmul.f32 %v9785_v17, %v2845_v0 }
 0x3d7   :  { %v2920_v46 = vmul.f32 %v9785_v17, %v2846_v23  ;;  %v2921_v30 = vmul.f32 %v9785_v17, %v2847_v18  ;;  %v2922_v39 = vmul.f32 %v9785_v17, %v2848_v9  ;;  %v2923_v48 = vmul.f32 %v9785_v17, %v2849_v1 }
 0x3d8   :  { %v2924_v14 = vmul.f32 %v9785_v17, %v2850_v22  ;;  %v2925_v6 = vmul.f32 %v9785_v17, %v2851_v4  ;;  %v2926_v5 = vmul.f32 %v9785_v17, %v2852_v53  ;;  %v2927_v55 = vmul.f32 %v9785_v17, %v2853_v35 }
 0x3d9   :  { %v2928_v52 = vmul.f32 %v9785_v17, %v2854_v10  ;;  %v2929_v0 = vmul.f32 %v9785_v17, %v2855_v8  ;;  %v2930_v23 = vmul.f32 %v9785_v17, %v2856_v20  ;;  %v2931_v18 = vmul.f32 %v9785_v17, %v2857_v59 }
 0x3da   :  { %v2932_v9 = vmul.f32 %v9785_v17, %v2858_v13  ;;  %v2933_v1 = vmul.f32 %v9785_v17, %v2859_v38  ;;  %v2934_v22 = vmul.f32 %v9785_v17, %v2860_v16  ;;  %v2935_v4 = vmul.f32 %v9785_v17, %v2861_v36 }
 0x3db   :  { %v2936_v53 = vmul.f32 %v9785_v17, %v2862_v26  ;;  %v2937_v35 = vmul.f32 %v9785_v17, %v2863_v49  ;;  %v2938_v10 = vmul.f32 %v9785_v17, %v2864_v28  ;;  %v2939_v8 = vmul.f32 %v9785_v17, %v2865_v7 }
 0x3dc   :  { %v2940_v20 = vmul.f32 %v9785_v17, %v2866_v27  ;;  %v2941_v59 = vmul.f32 %v9785_v17, %v2867_v57  ;;  %v2942_v13 = vmul.f32 %v9785_v17, %v2868_v44  ;;  %v2943_v38 = vmul.f32 %v9785_v17, %v2869_v50 }
 0x3dd   :  { %v2944_v16 = vmul.f32 %v9785_v17, %v2870_v45  ;;  %v2945_v36 = vmul.f32 %v9785_v17, %v2871_v24  ;;  %v2946_v26 = vmul.f32 %v9785_v17, %v2872_v40  ;;  %v2947_v49 = vmul.f32 %v9785_v17, %v2873_v54 }
 0x3de   :  { %v2948_v28 = vmul.f32 %v9785_v17, %v2874_v32  ;;  %v2949_v7 = vmul.f32 %v9785_v17, %v2875_v62  ;;  %v9881_v27 = vmax.f32 %v8619_v42, 0.0  ;;  %v9882_v57 = vmax.f32 %v8622_v15, 0.0 }
 0x3df   :  { %v9883_v50 = vmax.f32 %v8625_v56, 0.0  ;;  %v9884_v45 = vmax.f32 %v8628_v51, 0.0  ;;  %v9885_v40 = vmax.f32 %v8631_v37, 0.0  ;;  %v9886_v54 = vmax.f32 %v8634_v25, 0.0 }
 0x3e0   :  { %v2984_v47 = vadd.f32 %v2916_v43, %v9881_v27  ;;  %v2985_v44 = vadd.f32 %v2917_v31, %v9882_v57  ;;  %v9887_v17 = vmax.f32 %v8637_v29, 0.0  ;;  %v9888_v42 = vmax.f32 %v8640_v11, 0.0 }
 0x3e1   :  { %v2986_v21 = vadd.f32 %v2918_v58, %v9883_v50  ;;  %v2987_v24 = vadd.f32 %v2919_v19, %v9884_v45  ;;  %v2988_v34 = vadd.f32 %v2920_v46, %v9885_v40  ;;  %v2989_v32 = vadd.f32 %v2921_v30, %v9886_v54  ;;  %v9919_v54 = vld [vmem:[#allocation90_spill] sm:$0xff] }
 0x3e2   :  { %v2990_v62 = vadd.f32 %v2922_v39, %v9887_v17  ;;  %v2991_v43 = vadd.f32 %v2923_v48, %v9888_v42  ;;  %v9889_v15 = vmax.f32 %v8643_v60, 0.0  ;;  %3188 = vst.msk [vmem:[%s9221_s6] sm:$0xff] %vm25_vm1, %v2984_v47  ;;  %v9890_v56 = vmax.f32 %v8646_v63, 0.0 }
 0x3e3   :  { %v9891_v37 = vmax.f32 %v8649_v41, 0.0  ;;  %v9892_v29 = vmax.f32 %v8652_v3, 0.0  ;;  %v9893_v11 = vmax.f32 %v8655_v61, 0.0  ;;  %3189 = vst.msk [vmem:[%s9221_s6 + $0x8] sm:$0x1] %vm27_vm2, %v2985_v44  ;;  %v9894_v60 = vmax.f32 %v8658_v2, 0.0 }
 0x3e4   :  { %v2992_v31 = vadd.f32 %v2924_v14, %v9889_v15  ;;  %v2993_v51 = vadd.f32 %v2925_v6, %v9890_v56  ;;  %3190 = vst.msk [vmem:[%s9221_s6 + $0x10] sm:$0xff] %vm25_vm1, %v2986_v21  ;;  %3192 = vst.msk [vmem:[%s9221_s6 + $0x20] sm:$0xff] %vm25_vm1, %v2988_v34  ;;  %v9895_v41 = vmax.f32 %v8661_v33, 0.0  ;;  %v9896_v61 = vmax.f32 %v8664_v12, 0.0  ;;  %v9897_v21 = vld [vmem:[#allocation75_spill] sm:$0xff]  ;;  %v9899_v2 = vld [vmem:[#allocation76_spill] sm:$0xff] }
 0x3e5   :  { %v2994_v25 = vadd.f32 %v2926_v5, %v9891_v37  ;;  %v2995_v58 = vadd.f32 %v2927_v55, %v9892_v29  ;;  %v2996_v19 = vadd.f32 %v2928_v52, %v9893_v11  ;;  %3191 = vst.msk [vmem:[%s9221_s6 + $0x18] sm:$0x1] %vm27_vm2, %v2987_v24  ;;  %v2997_v63 = vadd.f32 %v2929_v0, %v9894_v60  ;;  %v9901_v34 = vld [vmem:[#allocation78_spill] sm:$0xff]  ;;  %v9905_v55 = vld [vmem:[#allocation39_spill] sm:$0xff]  ;;  %v9913_v44 = vld [vmem:[#allocation57_spill] sm:$0xff] }
 0x3e6   :  { %v2998_v3 = vadd.f32 %v2930_v23, %v9895_v41  ;;  %v2999_v47 = vadd.f32 %v2931_v18, %v9896_v61  ;;  %v9898_v46 = vmax.f32 %v9897_v21, 0.0  ;;  %3193 = vst.msk [vmem:[%s9221_s6 + $0x28] sm:$0x1] %vm27_vm2, %v2989_v32  ;;  %3195 = vst.msk [vmem:[%s9221_s6 + $0x38] sm:$0x1] %vm27_vm2, %v2991_v43  ;;  %v9900_v33 = vmax.f32 %v9899_v2, 0.0 }
 0x3e7   :  { %3194 = vst.msk [vmem:[%s9221_s6 + $0x30] sm:$0xff] %vm25_vm1, %v2990_v62  ;;  %3196 = vst.msk [vmem:[%s9221_s6 + $0x40] sm:$0xff] %vm25_vm1, %v2992_v31  ;;  %v9902_v39 = vmax.f32 %v9901_v34, 0.0  ;;  %v9903_v14 = vld [vmem:[#allocation38_spill] sm:$0xff]  ;;  %v9906_v52 = vmax.f32 %v9905_v55, 0.0  ;;  %v9914_v50 = vmax.f32 %v9913_v44, 0.0 }
 0x3e8   :  { %v3000_v30 = vadd.f32 %v2932_v9, %v9898_v46  ;;  %v3001_v12 = vadd.f32 %v2933_v1, %v9900_v33  ;;  %v9904_v6 = vmax.f32 %v9903_v14, 0.0  ;;  %3197 = vst.msk [vmem:[%s9221_s6 + $0x48] sm:$0x1] %vm27_vm2, %v2993_v51  ;;  %3199 = vst.msk [vmem:[%s9221_s6 + $0x58] sm:$0x1] %vm27_vm2, %v2995_v58  ;;  %v9907_v23 = vld [vmem:[#allocation46_spill] sm:$0xff] }
 0x3e9   :  { %v3002_v48 = vadd.f32 %v2934_v22, %v9902_v39  ;;  %v3004_v0 = vadd.f32 %v2936_v53, %v9906_v52  ;;  %3198 = vst.msk [vmem:[%s9221_s6 + $0x50] sm:$0xff] %vm25_vm1, %v2994_v25  ;;  %3200 = vst.msk [vmem:[%s9221_s6 + $0x60] sm:$0xff] %vm25_vm1, %v2996_v19  ;;  %v9908_v18 = vmax.f32 %v9907_v23, 0.0  ;;  %v9909_v1 = vld [vmem:[#allocation47_spill] sm:$0xff]  ;;  %v9911_v53 = vld [vmem:[#allocation80_spill] sm:$0xff]  ;;  %v3008_v45 = vadd.f32 %v2940_v20, %v9914_v50 }
 0x3ea   :  { %v3003_v5 = vadd.f32 %v2935_v4, %v9904_v6  ;;  %v9910_v22 = vmax.f32 %v9909_v1, 0.0  ;;  %v9912_v27 = vmax.f32 %v9911_v53, 0.0  ;;  %3201 = vst.msk [vmem:[%s9221_s6 + $0x68] sm:$0x1] %vm27_vm2, %v2997_v63  ;;  %3203 = vst.msk [vmem:[%s9221_s6 + $0x78] sm:$0x1] %vm27_vm2, %v2999_v47 }
 0x3eb   :  { %v3005_v9 = vadd.f32 %v2937_v35, %v9908_v18  ;;  %3202 = vst.msk [vmem:[%s9221_s6 + $0x70] sm:$0xff] %vm25_vm1, %v2998_v3  ;;  %3204 = vst.msk [vmem:[%s9221_s6 + $0x80] sm:$0xff] %vm25_vm1, %v3000_v30  ;;  %v9915_v35 = vld [vmem:[#allocation67_spill] sm:$0xff]  ;;  %v9917_v20 = vld [vmem:[#allocation89_spill] sm:$0xff]  ;;  %v9920_v32 = vmax.f32 %v9919_v54, 0.0 }
 0x3ec   :  { %v3006_v4 = vadd.f32 %v2938_v10, %v9910_v22  ;;  %v3007_v57 = vadd.f32 %v2939_v8, %v9912_v27  ;;  %v9916_v10 = vmax.f32 %v9915_v35, 0.0  ;;  %v9918_v24 = vmax.f32 %v9917_v20, 0.0  ;;  %v9921_v62 = vld [vmem:[#allocation91_spill] sm:$0xff]  ;;  %3205 = vst.msk [vmem:[%s9221_s6 + $0x88] sm:$0x1] %vm27_vm2, %v3001_v12  ;;  %v9927_v56 = vld [vmem:[#allocation94_spill] sm:$0xff] }
 0x3ed   :  { %v3011_v17 = vadd.f32 %v2943_v38, %v9920_v32  ;;  %v9922_v42 = vmax.f32 %v9921_v62, 0.0  ;;  %3206 = vst.msk [vmem:[%s9221_s6 + $0x90] sm:$0xff] %vm25_vm1, %v3002_v48  ;;  %3208 = vst.msk [vmem:[%s9221_s6 + $0xa0] sm:$0xff] %vm25_vm1, %v3004_v0  ;;  %v9928_v51 = vmax.f32 %v9927_v56, 0.0  ;;  %v9929_v25 = vld [vmem:[#allocation95_spill] sm:$0xff]  ;;  %v9935_v63 = vld [vmem:[#allocation72_spill] sm:$0xff] }
 0x3ee   :  { %v3009_v8 = vadd.f32 %v2941_v59, %v9916_v10  ;;  %v3010_v40 = vadd.f32 %v2942_v13, %v9918_v24  ;;  %3207 = vst.msk [vmem:[%s9221_s6 + $0x98] sm:$0x1] %vm27_vm2, %v3003_v5  ;;  %v9923_v59 = vld [vmem:[#allocation92_spill] sm:$0xff]  ;;  %v9930_v29 = vmax.f32 %v9929_v25, 0.0  ;;  %3209 = vst.msk [vmem:[%s9221_s6 + $0xa8] sm:$0x1] %vm27_vm2, %v3005_v9 }
 0x3ef   :  { %v3012_v43 = vadd.f32 %v2944_v16, %v9922_v42  ;;  %v9924_v13 = vmax.f32 %v9923_v59, 0.0  ;;  %v9925_v16 = vld [vmem:[#allocation93_spill] sm:$0xff]  ;;  %v3015_v37 = vadd.f32 %v2947_v49, %v9928_v51  ;;  %3210 = vst.msk [vmem:[%s9221_s6 + $0xb0] sm:$0xff] %vm25_vm1, %v3006_v4  ;;  %3212 = vst.msk [vmem:[%s9221_s6 + $0xc0] sm:$0xff] %vm25_vm1, %v3008_v45  ;;  %v9934_v19 = vld [vmem:[#allocation71_spill] sm:$0xff]  ;;  %v3054_v41 = vmax.f32 %v9935_v63, 0.0 }
 0x3f0   :  { %v9926_v15 = vmax.f32 %v9925_v16, 0.0  ;;  %v3016_v58 = vadd.f32 %v2948_v28, %v9930_v29  ;;  %3211 = vst.msk [vmem:[%s9221_s6 + $0xb8] sm:$0x1] %vm27_vm2, %v3007_v57  ;;  %v9933_v28 = vld [vmem:[#allocation70_spill] sm:$0xff]  ;;  %v3053_v60 = vmax.f32 %v9934_v19, 0.0  ;;  %v9937_v61 = vld [vmem:[#allocation77_spill] sm:$0xff] }
 0x3f1   :  { %v3013_v38 = vadd.f32 %v2945_v36, %v9924_v13  ;;  %v9931_v36 = vld [vmem:[#allocation96_spill] sm:$0xff]  ;;  %v3052_v11 = vmax.f32 %v9933_v28, 0.0  ;;  %3213 = vst.msk [vmem:[%s9221_s6 + $0xc8] sm:$0x1] %vm27_vm2, %v3009_v8  ;;  %3215 = vst.msk [vmem:[%s9221_s6 + $0xd8] sm:$0x1] %vm27_vm2, %v3011_v17 }
 0x3f2   :  { %v3014_v31 = vadd.f32 %v2946_v26, %v9926_v15  ;;  %v9932_v26 = vmax.f32 %v9931_v36, 0.0  ;;  %3214 = vst.msk [vmem:[%s9221_s6 + $0xd0] sm:$0xff] %vm25_vm1, %v3010_v40  ;;  %3216 = vst.msk [vmem:[%s9221_s6 + $0xe0] sm:$0xff] %vm25_vm1, %v3012_v43  ;;  %v3056_v47 = vmax.f32 %v9937_v61, 0.0  ;;  %v9938_v21 = vld [vmem:[#allocation79_spill] sm:$0xff]  ;;  %v9940_v33 = vld [vmem:[#allocation36_spill] sm:$0xff] }
 0x3f3   :  { %v3057_v46 = vmax.f32 %v9938_v21, 0.0  ;;  %v9939_v30 = vld [vmem:[#allocation31_spill] sm:$0xff]  ;;  %3217 = vst.msk [vmem:[%s9221_s6 + $0xe8] sm:$0x1] %vm27_vm2, %v3013_v38  ;;  %3219 = vst.msk [vmem:[%s9221_s6 + $0xf8] sm:$0x1] %vm27_vm2, %v3015_v37 }
 0x3f4   :  { %v3017_v49 = vadd.f32 %v2949_v7, %v9932_v26  ;;  %v9936_v7 = vld [vmem:[#allocation73_spill] sm:$0xff]  ;;  %v3058_v2 = vmax.f32 %v9939_v30, 0.0  ;;  %3218 = vst.msk [vmem:[%s9221_s6 + $0xf0] sm:$0xff] %vm25_vm1, %v3014_v31  ;;  %3220 = vst.msk [vmem:[%s9221_s6 + $0x100] sm:$0xff] %vm25_vm1, %v3016_v58  ;;  %v3059_v12 = vmax.f32 %v9940_v33, 0.0  ;;  %v9942_v48 = vld [vmem:[#allocation42_spill] sm:$0xff] }
 0x3f5   :  { %v3055_v3 = vmax.f32 %v9936_v7, 0.0  ;;  %v9941_v34 = vld [vmem:[#allocation37_spill] sm:$0xff]  ;;  %v3061_v14 = vmax.f32 %v9942_v48, 0.0  ;;  %v9943_v6 = vld [vmem:[#allocation44_spill] sm:$0xff]  ;;  %v9946_v18 = vld [vmem:[#allocation51_spill] sm:$0xff]  ;;  %v3086_v44 = vmin.f32 %v9933_v28, 0.0 }
 0x3f6   :  { %v3060_v39 = vmax.f32 %v9941_v34, 0.0  ;;  %v3062_v5 = vmax.f32 %v9943_v6, 0.0  ;;  %3221 = vst.msk [vmem:[%s9221_s6 + $0x108] sm:$0x1] %vm27_vm2, %v3017_v49  ;;  %v9944_v55 = vld [vmem:[#allocation45_spill] sm:$0xff]  ;;  %v3065_v9 = vmax.f32 %v9946_v18, 0.0 }
 0x3f7   :  { %v3063_v52 = vmax.f32 %v9944_v55, 0.0  ;;  %v9945_v0 = vld [vmem:[#allocation49_spill] sm:$0xff]  ;;  %v9948_v4 = vld [vmem:[#allocation55_spill] sm:$0xff]  ;;  %v9949_v27 = vld [vmem:[#allocation68_spill] sm:$0xff]  ;;  %v3087_v50 = vmin.f32 %v9934_v19, 0.0  ;;  %v3088_v45 = vmin.f32 %v9935_v63, 0.0 }
 0x3f8   :  { %v3064_v23 = vmax.f32 %v9945_v0, 0.0  ;;  %v9947_v1 = vld [vmem:[#allocation53_spill] sm:$0xff]  ;;  %v3067_v53 = vmax.f32 %v9948_v4, 0.0  ;;  %v3068_v57 = vmax.f32 %v9949_v27, 0.0  ;;  %v3089_v35 = vmin.f32 %v9936_v7, 0.0 }
 0x3f9   :  { %v3066_v22 = vmax.f32 %v9947_v1, 0.0  ;;  %v3090_v10 = vmin.f32 %v9937_v61, 0.0  ;;  %v3091_v8 = vmin.f32 %v9938_v21, 0.0  ;;  %v3092_v20 = vmin.f32 %v9939_v30, 0.0  ;;  %v3643_v38 = vld [vmem:[%s9226_s5] ss:$0 sm:$0xff] }
 0x3fa   :  { %v3093_v24 = vmin.f32 %v9940_v33, 0.0  ;;  %v3094_v40 = vmin.f32 %v9941_v34, 0.0  ;;  %v3095_v54 = vmin.f32 %v9942_v48, 0.0  ;;  %v3096_v32 = vmin.f32 %v9943_v6, 0.0 }
 0x3fb   :  { %v3097_v17 = vmin.f32 %v9944_v55, 0.0  ;;  %v3098_v62 = vmin.f32 %v9945_v0, 0.0  ;;  %v3099_v42 = vmin.f32 %v9946_v18, 0.0  ;;  %v3100_v43 = vmin.f32 %v9947_v1, 0.0 }
 0x3fc   :  { %v3101_v59 = vmin.f32 %v9948_v4, 0.0  ;;  %v3102_v13 = vmin.f32 %v9949_v27, 0.0  ;;  %v3120_v16 = vmul.f32 %v3643_v38, %v3086_v44  ;;  %v3121_v15 = vmul.f32 %v3643_v38, %v3087_v50 }
 0x3fd   :  { %v3122_v31 = vmul.f32 %v3643_v38, %v3088_v45  ;;  %v3123_v56 = vmul.f32 %v3643_v38, %v3089_v35  ;;  %v3124_v51 = vmul.f32 %v3643_v38, %v3090_v10  ;;  %v3125_v37 = vmul.f32 %v3643_v38, %v3091_v8 }
 0x3fe   :  { %v3126_v25 = vmul.f32 %v3643_v38, %v3092_v20  ;;  %v3127_v29 = vmul.f32 %v3643_v38, %v3093_v24  ;;  %v3128_v58 = vmul.f32 %v3643_v38, %v3094_v40  ;;  %v3129_v36 = vmul.f32 %v3643_v38, %v3095_v54 }
 0x3ff   :  { %v3130_v26 = vmul.f32 %v3643_v38, %v3096_v32  ;;  %v3131_v49 = vmul.f32 %v3643_v38, %v3097_v17  ;;  %v3132_v28 = vmul.f32 %v3643_v38, %v3098_v62  ;;  %v3133_v19 = vmul.f32 %v3643_v38, %v3099_v42 }
 0x400   :  { %v3134_v63 = vmul.f32 %v3643_v38, %v3100_v43  ;;  %v3135_v7 = vmul.f32 %v3643_v38, %v3101_v59  ;;  %v3136_v61 = vmul.f32 %v3643_v38, %v3102_v13  ;;  %v3154_v21 = vadd.f32 %v3120_v16, %v3052_v11 }
 0x401   :  { %v3155_v30 = vadd.f32 %v3121_v15, %v3053_v60  ;;  %v3156_v33 = vadd.f32 %v3122_v31, %v3054_v41  ;;  %v3157_v34 = vadd.f32 %v3123_v56, %v3055_v3  ;;  %v3158_v48 = vadd.f32 %v3124_v51, %v3056_v47 }
 0x402   :  { %v3159_v6 = vadd.f32 %v3125_v37, %v3057_v46  ;;  %v3160_v55 = vadd.f32 %v3126_v25, %v3058_v2  ;;  %v3161_v0 = vadd.f32 %v3127_v29, %v3059_v12  ;;  %v3162_v18 = vadd.f32 %v3128_v58, %v3060_v39  ;;  %3256 = vst.msk [vmem:[%s9222_s7] sm:$0xff] %vm25_vm1, %v3154_v21 }
 0x403   :  { %v3163_v1 = vadd.f32 %v3129_v36, %v3061_v14  ;;  %v3164_v4 = vadd.f32 %v3130_v26, %v3062_v5  ;;  %v3165_v27 = vadd.f32 %v3131_v49, %v3063_v52  ;;  %3257 = vst.msk [vmem:[%s9222_s7 + $0x8] sm:$0xff] %vm25_vm1, %v3155_v30  ;;  %3258 = vst.msk [vmem:[%s9222_s7 + $0x10] sm:$0xff] %vm25_vm1, %v3156_v33 }
 0x404   :  { %3259 = vst.msk [vmem:[%s9222_s7 + $0x18] sm:$0xff] %vm25_vm1, %v3157_v34  ;;  %v3166_v11 = vadd.f32 %v3132_v28, %v3064_v23  ;;  %v3167_v60 = vadd.f32 %v3133_v19, %v3065_v9  ;;  %v3168_v41 = vadd.f32 %v3134_v63, %v3066_v22  ;;  %v3169_v3 = vadd.f32 %v3135_v7, %v3067_v53 }
 0x405   :  { %3260 = vst.msk [vmem:[%s9222_s7 + $0x20] sm:$0xff] %vm25_vm1, %v3158_v48  ;;  %3261 = vst.msk [vmem:[%s9222_s7 + $0x28] sm:$0xff] %vm25_vm1, %v3159_v6  ;;  %v3170_v47 = vadd.f32 %v3136_v61, %v3068_v57 }
 0x406   :  { %3262 = vst.msk [vmem:[%s9222_s7 + $0x30] sm:$0xff] %vm25_vm1, %v3160_v55  ;;  %3263 = vst.msk [vmem:[%s9222_s7 + $0x38] sm:$0xff] %vm25_vm1, %v3161_v0 }
 0x407   :  { %3264 = vst.msk [vmem:[%s9222_s7 + $0x40] sm:$0xff] %vm25_vm1, %v3162_v18  ;;  %3265 = vst.msk [vmem:[%s9222_s7 + $0x48] sm:$0xff] %vm25_vm1, %v3163_v1 }
 0x408   :  { %3266 = vst.msk [vmem:[%s9222_s7 + $0x50] sm:$0xff] %vm25_vm1, %v3164_v4  ;;  %3267 = vst.msk [vmem:[%s9222_s7 + $0x58] sm:$0xff] %vm25_vm1, %v3165_v27 }
 0x409   :  { %3268 = vst.msk [vmem:[%s9222_s7 + $0x60] sm:$0xff] %vm25_vm1, %v3166_v11  ;;  %3269 = vst.msk [vmem:[%s9222_s7 + $0x68] sm:$0xff] %vm25_vm1, %v3167_v60 }
 0x40a   :  { %3270 = vst.msk [vmem:[%s9222_s7 + $0x70] sm:$0xff] %vm25_vm1, %v3168_v41  ;;  %3271 = vst.msk [vmem:[%s9222_s7 + $0x78] sm:$0xff] %vm25_vm1, %v3169_v3 }
 0x40b   :  { %3272 = vst.msk [vmem:[%s9222_s7 + $0x80] sm:$0xff] %vm25_vm1, %v3170_v47 }

</bundles_post_ra>
